<compile_context>
chip_gen: v7x
topology: tpu7x:2x2x1
jax: 0.10.0
libtpu: 0.0.40
codegen_flags: <defaults>
</compile_context>

<pallas_src>
import jax
import jax.numpy as jnp
from jax.experimental import pallas as pl
from jax.experimental.pallas import tpu as pltpu


def mlp_kernel(x_ref,
               w1_ref, b1_ref,
               w2_ref, b2_ref,
               w3_ref, b3_ref,
               w4_ref, b4_ref,
               o_ref):
    # layer 1 + ReLU   (bf16 operands -> f32 accumulation on the MXU)
    h1 = jnp.dot(x_ref[...], w1_ref[...], preferred_element_type=jnp.float32)
    h1 = jnp.maximum(h1 + b1_ref[...], 0.0).astype(jnp.bfloat16)
    # layer 2 + ReLU
    h2 = jnp.dot(h1, w2_ref[...], preferred_element_type=jnp.float32)
    h2 = jnp.maximum(h2 + b2_ref[...], 0.0).astype(jnp.bfloat16)
    # layer 3 + ReLU
    h3 = jnp.dot(h2, w3_ref[...], preferred_element_type=jnp.float32)
    h3 = jnp.maximum(h3 + b3_ref[...], 0.0).astype(jnp.bfloat16)
    # layer 4 + softmax over features (dim=1), all in f32
    logits = jnp.dot(h3, w4_ref[...], preferred_element_type=jnp.float32)
    logits = logits + b4_ref[...]
    m = jnp.max(logits, axis=1, keepdims=True)
    e = jnp.exp(logits - m)
    denom = jnp.sum(e, axis=1, keepdims=True)
    o_ref[...] = e * pl.reciprocal(denom, approx=False)


def mlp_forward(x, params, *, batch_tile=256):
    """x: (B, 784) float32/bfloat16; params: list of (W(in,out) bf16, b(1,out) f32)."""
    (w1, b1), (w2, b2), (w3, b3), (w4, b4) = params
    B = x.shape[0]

    # Batch tile: multiple of 8 (sublane), capped at batch_tile; pad B up to it.
    TB = min(batch_tile, max(8, ((B + 7) // 8) * 8))
    Bp = ((B + TB - 1) // TB) * TB
    xb = x.astype(jnp.bfloat16)
    if Bp != B:
        xb = jnp.pad(xb, ((0, Bp - B), (0, 0)))

    grid = (Bp // TB,)

    def resident(shape):
        # Weights / biases: same block for every batch tile -> DMA'd once, stay in VMEM.
        return pl.BlockSpec(shape, lambda i: (0, 0))

    out = pl.pallas_call(
        mlp_kernel,
        out_shape=jax.ShapeDtypeStruct((Bp, 10), jnp.float32),
        grid=grid,
        in_specs=[
            pl.BlockSpec((TB, 784), lambda i: (i, 0)),   # x tile (pipelined)
            resident((784, 400)), resident((1, 400)),
            resident((400, 200)), resident((1, 200)),
            resident((200, 100)), resident((1, 100)),
            resident((100, 10)),  resident((1, 10)),
        ],
        out_specs=pl.BlockSpec((TB, 10), lambda i: (i, 0)),
        compiler_params=pltpu.CompilerParams(
            dimension_semantics=("parallel",)),
    )(xb, w1, b1, w2, b2, w3, b3, w4, b4)

    return out[:B]


def init_params(key):
    """Deterministic init matching nn.Linear shapes.

    PyTorch nn.Linear(in, out) stores weight (out, in); here we store the
    transpose (in, out) so the kernel computes x @ W + b directly.
    Weights are cast once to bf16 (halves the dominant weight DMA); biases stay
    f32 and 2-D (1, out) for clean TPU broadcasting / f32 VPU epilogue.
    """
    dims = [(784, 400), (400, 200), (200, 100), (100, 10)]
    params = []
    for (fan_in, fan_out) in dims:
        key, kw, kb = jax.random.split(key, 3)
        bound = 1.0 / jnp.sqrt(fan_in)
        w = jax.random.uniform(kw, (fan_in, fan_out), jnp.float32, -bound, bound)
        b = jax.random.uniform(kb, (1, fan_out), jnp.float32, -bound, bound)
        params.append((w.astype(jnp.bfloat16), b))
    return params


def reference_forward(x, params):
    """Pure-JAX reference with the same bf16-operand / f32-accumulate recipe."""
    h = x.astype(jnp.bfloat16)
    for i, (w, b) in enumerate(params):
        h = jnp.dot(h, w, preferred_element_type=jnp.float32) + b
        if i < 3:
            h = jnp.maximum(h, 0.0).astype(jnp.bfloat16)
    return jax.nn.softmax(h, axis=1)


if __name__ == "__main__":
    key = jax.random.PRNGKey(0)
    key, kx = jax.random.split(key)
    batch = 384  # exercises two 256-row tiles + padding of the last tile
    x = jax.random.normal(kx, (batch, 784), jnp.float32)

    params = init_params(key)

    out = mlp_forward(x, params)
    out = jax.block_until_ready(out)

    ref = reference_forward(x, params)
    assert out.shape == (batch, 10)
    assert jnp.allclose(out, ref, atol=1e-4, rtol=1e-4), "mismatch vs reference"
    assert jnp.allclose(jnp.sum(out, axis=1), 1.0, atol=1e-5), "softmax rows must sum to 1"

    print("KERNEL_OK")
</pallas_src>

<mosaic_0001>
module attributes {stable_mosaic.version = 11 : i64} {
  func.func @mlp_kernel(%arg0: i32, %arg1: memref<256x784xbf16, #tpu.memory_space<vmem>>, %arg2: memref<784x400xbf16, #tpu.memory_space<vmem>>, %arg3: memref<1x400xf32, #tpu.memory_space<vmem>>, %arg4: memref<400x200xbf16, #tpu.memory_space<vmem>>, %arg5: memref<1x200xf32, #tpu.memory_space<vmem>>, %arg6: memref<200x100xbf16, #tpu.memory_space<vmem>>, %arg7: memref<1x100xf32, #tpu.memory_space<vmem>>, %arg8: memref<100x10xbf16, #tpu.memory_space<vmem>>, %arg9: memref<1x10xf32, #tpu.memory_space<vmem>>, %arg10: memref<256x10xf32, #tpu.memory_space<vmem>>) attributes {dimension_semantics = [#tpu.dimension_semantics<parallel>], iteration_bounds = array<i64: 2>, scalar_prefetch = 0 : i64, scratch_operands = 0 : i64, tpu.core_type = #tpu.core_type<tc>, window_params = [{transform_indices = @transform_0, window_bounds = array<i64: 256, 784>}, {pipeline_mode = #tpu.pipeline_mode<synchronous>, transform_indices = @transform_1, window_bounds = array<i64: 784, 400>}, {pipeline_mode = #tpu.pipeline_mode<synchronous>, transform_indices = @transform_2, window_bounds = array<i64: 1, 400>}, {pipeline_mode = #tpu.pipeline_mode<synchronous>, transform_indices = @transform_3, window_bounds = array<i64: 400, 200>}, {pipeline_mode = #tpu.pipeline_mode<synchronous>, transform_indices = @transform_4, window_bounds = array<i64: 1, 200>}, {pipeline_mode = #tpu.pipeline_mode<synchronous>, transform_indices = @transform_5, window_bounds = array<i64: 200, 100>}, {pipeline_mode = #tpu.pipeline_mode<synchronous>, transform_indices = @transform_6, window_bounds = array<i64: 1, 100>}, {pipeline_mode = #tpu.pipeline_mode<synchronous>, transform_indices = @transform_7, window_bounds = array<i64: 100, 10>}, {pipeline_mode = #tpu.pipeline_mode<synchronous>, transform_indices = @transform_8, window_bounds = array<i64: 1, 10>}, {transform_indices = @transform_9, window_bounds = array<i64: 256, 10>}]} {
    %c0 = arith.constant 0 : index
    %c0_0 = arith.constant 0 : index
    %0 = vector.load %arg1[%c0, %c0_0] : memref<256x784xbf16, #tpu.memory_space<vmem>>, vector<256x784xbf16>
    %c0_1 = arith.constant 0 : index
    %c0_2 = arith.constant 0 : index
    %1 = vector.load %arg2[%c0_1, %c0_2] : memref<784x400xbf16, #tpu.memory_space<vmem>>, vector<784x400xbf16>
    %cst = arith.constant dense<0.000000e+00> : vector<256x400xf32>
    %2 = tpu.matmul %0, %1, %cst {dimension_numbers = #tpu.dot_dimension_numbers<[1], [0], [0], [1], [0, 0, 1, 1], [], []>} : vector<256x784xbf16>, vector<784x400xbf16>, vector<256x400xf32> -> vector<256x400xf32>
    %c0_3 = arith.constant 0 : index
    %c0_4 = arith.constant 0 : index
    %3 = vector.load %arg3[%c0_3, %c0_4] : memref<1x400xf32, #tpu.memory_space<vmem>>, vector<1x400xf32>
    %4 = vector.broadcast %3 : vector<1x400xf32> to vector<256x400xf32>
    %5 = arith.addf %2, %4 : vector<256x400xf32>
    %cst_5 = arith.constant 0.000000e+00 : f32
    %6 = vector.broadcast %cst_5 : f32 to vector<256x400xf32>
    %7 = arith.maximumf %5, %6 : vector<256x400xf32>
    %8 = arith.truncf %7 : vector<256x400xf32> to vector<256x400xbf16>
    %c0_6 = arith.constant 0 : index
    %c0_7 = arith.constant 0 : index
    %9 = vector.load %arg4[%c0_6, %c0_7] : memref<400x200xbf16, #tpu.memory_space<vmem>>, vector<400x200xbf16>
    %cst_8 = arith.constant dense<0.000000e+00> : vector<256x200xf32>
    %10 = tpu.matmul %8, %9, %cst_8 {dimension_numbers = #tpu.dot_dimension_numbers<[1], [0], [0], [1], [0, 0, 1, 1], [], []>} : vector<256x400xbf16>, vector<400x200xbf16>, vector<256x200xf32> -> vector<256x200xf32>
    %c0_9 = arith.constant 0 : index
    %c0_10 = arith.constant 0 : index
    %11 = vector.load %arg5[%c0_9, %c0_10] : memref<1x200xf32, #tpu.memory_space<vmem>>, vector<1x200xf32>
    %12 = vector.broadcast %11 : vector<1x200xf32> to vector<256x200xf32>
    %13 = arith.addf %10, %12 : vector<256x200xf32>
    %cst_11 = arith.constant 0.000000e+00 : f32
    %14 = vector.broadcast %cst_11 : f32 to vector<256x200xf32>
    %15 = arith.maximumf %13, %14 : vector<256x200xf32>
    %16 = arith.truncf %15 : vector<256x200xf32> to vector<256x200xbf16>
    %c0_12 = arith.constant 0 : index
    %c0_13 = arith.constant 0 : index
    %17 = vector.load %arg6[%c0_12, %c0_13] : memref<200x100xbf16, #tpu.memory_space<vmem>>, vector<200x100xbf16>
    %cst_14 = arith.constant dense<0.000000e+00> : vector<256x100xf32>
    %18 = tpu.matmul %16, %17, %cst_14 {dimension_numbers = #tpu.dot_dimension_numbers<[1], [0], [0], [1], [0, 0, 1, 1], [], []>} : vector<256x200xbf16>, vector<200x100xbf16>, vector<256x100xf32> -> vector<256x100xf32>
    %c0_15 = arith.constant 0 : index
    %c0_16 = arith.constant 0 : index
    %19 = vector.load %arg7[%c0_15, %c0_16] : memref<1x100xf32, #tpu.memory_space<vmem>>, vector<1x100xf32>
    %20 = vector.broadcast %19 : vector<1x100xf32> to vector<256x100xf32>
    %21 = arith.addf %18, %20 : vector<256x100xf32>
    %cst_17 = arith.constant 0.000000e+00 : f32
    %22 = vector.broadcast %cst_17 : f32 to vector<256x100xf32>
    %23 = arith.maximumf %21, %22 : vector<256x100xf32>
    %24 = arith.truncf %23 : vector<256x100xf32> to vector<256x100xbf16>
    %c0_18 = arith.constant 0 : index
    %c0_19 = arith.constant 0 : index
    %25 = vector.load %arg8[%c0_18, %c0_19] : memref<100x10xbf16, #tpu.memory_space<vmem>>, vector<100x10xbf16>
    %cst_20 = arith.constant dense<0.000000e+00> : vector<256x10xf32>
    %26 = tpu.matmul %24, %25, %cst_20 {dimension_numbers = #tpu.dot_dimension_numbers<[1], [0], [0], [1], [0, 0, 1, 1], [], []>} : vector<256x100xbf16>, vector<100x10xbf16>, vector<256x10xf32> -> vector<256x10xf32>
    %c0_21 = arith.constant 0 : index
    %c0_22 = arith.constant 0 : index
    %27 = vector.load %arg9[%c0_21, %c0_22] : memref<1x10xf32, #tpu.memory_space<vmem>>, vector<1x10xf32>
    %28 = vector.broadcast %27 : vector<1x10xf32> to vector<256x10xf32>
    %29 = arith.addf %26, %28 : vector<256x10xf32>
    %cst_23 = arith.constant dense<0xFF800000> : vector<256xf32>
    %30 = vector.multi_reduction <maximumf>, %29, %cst_23 [1] : vector<256x10xf32> to vector<256xf32>
    %31 = vector.shape_cast %30 : vector<256xf32> to vector<256x1xf32>
    %32 = vector.broadcast %31 : vector<256x1xf32> to vector<256x10xf32>
    %33 = arith.subf %29, %32 : vector<256x10xf32>
    %34 = math.exp %33 : vector<256x10xf32>
    %cst_24 = arith.constant dense<0.000000e+00> : vector<256xf32>
    %35 = vector.multi_reduction <add>, %34, %cst_24 [1] : vector<256x10xf32> to vector<256xf32>
    %36 = vector.shape_cast %35 : vector<256xf32> to vector<256x1xf32>
    %37 = tpu.reciprocal %36 : vector<256x1xf32> -> vector<256x1xf32>
    %38 = vector.broadcast %37 : vector<256x1xf32> to vector<256x10xf32>
    %39 = arith.mulf %34, %38 : vector<256x10xf32>
    %c0_25 = arith.constant 0 : index
    %c0_26 = arith.constant 0 : index
    %40 = vector.load %arg10[%c0_25, %c0_26] : memref<256x10xf32, #tpu.memory_space<vmem>>, vector<256x10xf32>
    tpu.vector_store %arg10[%c0_25, %c0_26], %39 {strides = array<i32>} : memref<256x10xf32, #tpu.memory_space<vmem>>, vector<256x10xf32>,
    return
  }
  func.func @transform_0(%arg0: i32) -> (i32, i32) {
    %c0_i32 = arith.constant 0 : i32
    %c0_i32_0 = arith.constant 0 : i32
    return %arg0, %c0_i32 : i32, i32
  }
  func.func @transform_1(%arg0: i32) -> (i32, i32) {
    %c0_i32 = arith.constant 0 : i32
    %c0_i32_0 = arith.constant 0 : i32
    %c0_i32_1 = arith.constant 0 : i32
    return %c0_i32, %c0_i32_0 : i32, i32
  }
  func.func @transform_2(%arg0: i32) -> (i32, i32) {
    %c0_i32 = arith.constant 0 : i32
    %c0_i32_0 = arith.constant 0 : i32
    %c0_i32_1 = arith.constant 0 : i32
    return %c0_i32, %c0_i32_0 : i32, i32
  }
  func.func @transform_3(%arg0: i32) -> (i32, i32) {
    %c0_i32 = arith.constant 0 : i32
    %c0_i32_0 = arith.constant 0 : i32
    %c0_i32_1 = arith.constant 0 : i32
    return %c0_i32, %c0_i32_0 : i32, i32
  }
  func.func @transform_4(%arg0: i32) -> (i32, i32) {
    %c0_i32 = arith.constant 0 : i32
    %c0_i32_0 = arith.constant 0 : i32
    %c0_i32_1 = arith.constant 0 : i32
    return %c0_i32, %c0_i32_0 : i32, i32
  }
  func.func @transform_5(%arg0: i32) -> (i32, i32) {
    %c0_i32 = arith.constant 0 : i32
    %c0_i32_0 = arith.constant 0 : i32
    %c0_i32_1 = arith.constant 0 : i32
    return %c0_i32, %c0_i32_0 : i32, i32
  }
  func.func @transform_6(%arg0: i32) -> (i32, i32) {
    %c0_i32 = arith.constant 0 : i32
    %c0_i32_0 = arith.constant 0 : i32
    %c0_i32_1 = arith.constant 0 : i32
    return %c0_i32, %c0_i32_0 : i32, i32
  }
  func.func @transform_7(%arg0: i32) -> (i32, i32) {
    %c0_i32 = arith.constant 0 : i32
    %c0_i32_0 = arith.constant 0 : i32
    %c0_i32_1 = arith.constant 0 : i32
    return %c0_i32, %c0_i32_0 : i32, i32
  }
  func.func @transform_8(%arg0: i32) -> (i32, i32) {
    %c0_i32 = arith.constant 0 : i32
    %c0_i32_0 = arith.constant 0 : i32
    %c0_i32_1 = arith.constant 0 : i32
    return %c0_i32, %c0_i32_0 : i32, i32
  }
  func.func @transform_9(%arg0: i32) -> (i32, i32) {
    %c0_i32 = arith.constant 0 : i32
    %c0_i32_0 = arith.constant 0 : i32
    return %arg0, %c0_i32 : i32, i32
  }
}

</mosaic_0001>

<bundles_post_ra>
// kernel: tpu_custom_call.1
= control target key start
LH: loop header
LB: loop body
LE: loop exit
PB: predicated region body
PF: predicated region fallthrough
CT: control target
= control target key end

     0   :  { %s7875_s30 = smov 0   ;;  %s9871_s0 = inlined_call_operand.vmem [shape: bf16[512,784], index: 0, kind: input, shape index: {}]   ;;  %s9872_s1 = inlined_call_operand.vmem [shape: bf16[784,400], index: 1, kind: input, shape index: {}]   ;;  %s9873_s2 = inlined_call_operand.vmem [shape: f32[1,400], index: 2, kind: input, shape index: {}]   ;;  %s9874_s3 = inlined_call_operand.vmem [shape: bf16[400,200], index: 3, kind: input, shape index: {}]   ;;  %s9875_s4 = inlined_call_operand.vmem [shape: f32[1,200], index: 4, kind: input, shape index: {}]   ;;  %s9876_s5 = inlined_call_operand.vmem [shape: bf16[200,100], index: 5, kind: input, shape index: {}]   ;;  %s9877_s6 = inlined_call_operand.vmem [shape: f32[1,100], index: 6, kind: input, shape index: {}]   ;;  %s9878_s7 = inlined_call_operand.vmem [shape: bf16[100,10], index: 7, kind: input, shape index: {}]   ;;  %s9879_s8 = inlined_call_operand.vmem [shape: f32[1,10], index: 8, kind: input, shape index: {}]   ;;  %s9880_s9 = inlined_call_operand.vmem [shape: f32[512,10], index: 9, kind: output, shape index: {}]  }
   0x1 LB: > { %s5936_s10 = sadd.s32 4294967295, %s7822_s30   ;;  %p5940_p0 = scmp.ge.s32.totalorder %s7822_s30, 1  ;;  %s7822_s30 = sphi %s7875_s30, %s19_s30  }
   0x2   : > { %p289_p1 = scmp.lt.s32.totalorder %s7822_s30, 3 }
   0x4   : > { %p290_p2 = pnand %p5940_p0, %p289_p1 }
   0x5   : > { %v7129_v0 = vld [vmem:[%s9872_s1 + $0x4] ss:$16 sps:$4 sm:$0xff] (!%p290_p2)   ;;  %s5941_s13 = sshll.u32 (!%p290_p2), %s5936_s10, 5  ;;  %v7131_v1 = vld [vmem:[%s9872_s1] ss:$16 sps:$4 sm:$0xff] (!%p290_p2)   ;;  %v7824_v2 = vmov (!%p290_p2), 0  }
   0x6   : > { %293 = sbr.rel (%p290_p2) target bundleno = 1903 (0x76f), region = 56  ;;  %2966 = vmatprep.mubr.bf16.mxu1 (!%p290_p2), %v7824_v2  ;;  %p327_p3 = scmp.lt.s32.totalorder (!%p290_p2), %s5941_s13, 63  ;;  %2275 = vmatprep.subr.bf16.mxu0 (!%p290_p2), %v7129_v0  ;;  %v7132_v3 = vld [vmem:[%s9872_s1 + $0x24] ss:$16 sps:$4 sm:$0xff] (!%p290_p2)   ;;  %v7136_v5 = vld [vmem:[%s9872_s1 + $0x20] ss:$16 sps:$4 sm:$0xff] (!%p290_p2)  }
   0x7   : > { %2276 = vmatpush1.bf16.msra.mxu0 (!%p290_p2), %v7131_v1  ;;  %v7134_v4 = vld [vmem:[%s9872_s1 + $0x604] ss:$16 sps:$4 sm:$0xff] (!%p290_p2)   ;;  %v7137_v6 = vld [vmem:[%s9872_s1 + $0x600] ss:$16 sps:$4 sm:$0xff] (!%p290_p2)   ;;  %v7141_v8 = vld [vmem:[%s9872_s1 + $0x8] ss:$16 sps:$4 sm:$0xff] (!%p290_p2)  }
   0x8   : > { %2277 = vmatprep.subr.bf16.mxu0 (!%p290_p2), %v7132_v3  ;;  %v7138_v7 = vld [vmem:[%s9872_s1 + $0x44] ss:$16 sps:$4 sm:$0xff] (!%p290_p2)   ;;  %6476 = vmatprep.subr.bf16.mxu1 (!%p290_p2), %v7134_v4  ;;  %v7143_v9 = vld [vmem:[%s9872_s1 + $0xc] ss:$16 sps:$4 sm:$0xff] (!%p290_p2)   ;;  %v7144_v10 = vld [vmem:[%s9872_s1 + $0x40] ss:$16 sps:$4 sm:$0xff] (!%p290_p2)  }
   0x9   : > { %6477 = vmatpush1.bf16.msra.mxu1 (!%p290_p2), %v7137_v6  ;;  %vm2226_vm0 = vcmask (!%p290_p2), 130048   ;;  %v7145_v11 = vld [vmem:[%s9872_s1 + $0x64] ss:$16 sps:$4 sm:$0xff] (!%p290_p2)   ;;  %v7149_v12 = vld [vmem:[%s9872_s1 + $0x2c] ss:$16 sps:$4 sm:$0xff] (!%p290_p2)   ;;  %vm5009_vm1 = vcmask (!%p290_p2), 1043456  }
   0xa   : > { %3047 = vmatprep.subr.bf16.mxu1 (!%p290_p2), %v7143_v9  ;;  %v7147_v14 = vld [vmem:[%s9872_s1 + $0x28] ss:$16 sps:$4 sm:$0xff] (!%p290_p2)   ;;  %v7150_v15 = vld [vmem:[%s9872_s1 + $0x60] ss:$16 sps:$4 sm:$0xff] (!%p290_p2)   ;;  %v7151_v16 = vld [vmem:[%s9872_s1 + $0x84] ss:$16 sps:$4 sm:$0xff] (!%p290_p2)  }
   0xb   : > { %2278 = vmatpush1.bf16.msra.mxu0 (!%p290_p2), %v7136_v5  ;;  %v7156_v17 = vld [vmem:[%s9872_s1 + $0x4c] ss:$16 sps:$4 sm:$0xff] (!%p290_p2)   ;;  %v7157_v19 = vld [vmem:[%s9872_s1 + $0x80] ss:$16 sps:$4 sm:$0xff] (!%p290_p2)   ;;  %v7154_v20 = vld [vmem:[%s9872_s1 + $0x48] ss:$16 sps:$4 sm:$0xff] (!%p290_p2)  }
   0xc   : > { %2279 = vmatprep.subr.bf16.mxu0 (!%p290_p2), %v7138_v7  ;;  %v7158_v21 = vld [vmem:[%s9872_s1 + $0xa4] ss:$16 sps:$4 sm:$0xff] (!%p290_p2)   ;;  %v7162_v22 = vld [vmem:[%s9872_s1 + $0x6c] ss:$16 sps:$4 sm:$0xff] (!%p290_p2)   ;;  %v7160_v23 = vld [vmem:[%s9872_s1 + $0x68] ss:$16 sps:$4 sm:$0xff] (!%p290_p2)  }
   0xd   : > { %s9882_s13 = smov (!%p327_p3, %s5941_s13), 63  ;;  %v7163_v24 = vld [vmem:[%s9872_s1 + $0xa0] ss:$16 sps:$4 sm:$0xff]   ;;  %v7164_v25 = vld [vmem:[%s9872_s1 + $0xc4] ss:$16 sps:$4 sm:$0xff]   ;;  %vm4960_vm2 = vcmask 588800  }
   0xe   : > { %s7119_s26 = smul.u32 28, %s9882_s13  ;;  %v7169_v26 = vld [vmem:[%s9872_s1 + $0x8c] ss:$16 sps:$4 sm:$0xff]   ;;  %v7167_v28 = vld [vmem:[%s9872_s1 + $0x88] ss:$16 sps:$4 sm:$0xff]   ;;  %vm5330_vm3 = vcmask 1041408  }
   0xf   : > { %2280 = vmatpush1.bf16.msra.mxu0 %v7144_v10  ;;  %v7170_v29 = vld [vmem:[%s9872_s1 + $0xc0] ss:$16 sps:$4 sm:$0xff]   ;;  %v7171_v30 = vld [vmem:[%s9872_s1 + $0xe4] ss:$16 sps:$4 sm:$0xff]   ;;  %v7175_v31 = vld [vmem:[%s9872_s1 + $0xac] ss:$16 sps:$4 sm:$0xff]  }
  0x10   : > { %s7920_s16 = scalar_lea.vmem %s9871_s0, %s7119_s26  ;;  %2281 = vmatprep.subr.bf16.mxu0 %v7145_v11  ;;  %v7176_v32 = vld [vmem:[%s9872_s1 + $0xe0] ss:$16 sps:$4 sm:$0xff]   ;;  %v7173_v33 = vld [vmem:[%s9872_s1 + $0xa8] ss:$16 sps:$4 sm:$0xff]   ;;  %v7177_v34 = vld [vmem:[%s9872_s1 + $0x104] ss:$16 sps:$4 sm:$0xff]  }
  0x11   : > { %v7140_v13 = vld [vmem:[%s7920_s16 + $0x1d8] ss:$28 sps:$4 sm:$0xff]   ;;  %v7153_v18 = vld [vmem:[%s7920_s16 + $0x210] ss:$28 sps:$4 sm:$0xff]   ;;  %v7166_v27 = vld [vmem:[%s7920_s16 + $0x248] ss:$28 sps:$4 sm:$0xff]  }
  0x12   : > { %6261 = vmatmul.mubr.msk.bf16.vlgmr.msra.gmra.mrb[0].mxu1 %vm2226_vm0, %v7140_v13  ;;  %v7182_v35 = vld [vmem:[%s9872_s1 + $0xcc] ss:$16 sps:$4 sm:$0xff]   ;;  %v7183_v37 = vld [vmem:[%s9872_s1 + $0x100] ss:$16 sps:$4 sm:$0xff]   ;;  %v7180_v38 = vld [vmem:[%s9872_s1 + $0xc8] ss:$16 sps:$4 sm:$0xff]  }
  0x13   : > { %3048 = vmatpush1.bf16.msra.mxu1 %v7141_v8  ;;  %2976 = vmatprep.mubr.bf16.mxu1 %v7824_v2  ;;  %v7179_v36 = vld [vmem:[%s7920_s16 + $0x280] ss:$28 sps:$4 sm:$0xff]   ;;  %v7184_v39 = vld [vmem:[%s9872_s1 + $0x124] ss:$16 sps:$4 sm:$0xff]   ;;  %v7186_v41 = vld [vmem:[%s9872_s1 + $0xe8] ss:$16 sps:$4 sm:$0xff]  }
  0x14   : > { %3049 = vmatprep.subr.bf16.mxu1 %v7149_v12  ;;  %2282 = vmatpush1.bf16.msra.mxu0 %v7150_v15  ;;  %v7188_v40 = vld [vmem:[%s9872_s1 + $0xec] ss:$16 sps:$4 sm:$0xff]   ;;  %v7189_v42 = vld [vmem:[%s9872_s1 + $0x120] ss:$16 sps:$4 sm:$0xff]   ;;  %v7190_v43 = vld [vmem:[%s9872_s1 + $0x144] ss:$16 sps:$4 sm:$0xff]  }
  0x15   : > { %2283 = vmatprep.subr.bf16.mxu0 %v7151_v16  ;;  %v7195_v44 = vld [vmem:[%s9872_s1 + $0x10c] ss:$16 sps:$4 sm:$0xff]   ;;  %v7192_v45 = vld [vmem:[%s7920_s16 + $0x2b8] ss:$28 sps:$4 sm:$0xff]   ;;  %v7196_v47 = vld [vmem:[%s9872_s1 + $0x140] ss:$16 sps:$4 sm:$0xff]  }
  0x16   : > { %v7193_v46 = vld [vmem:[%s9872_s1 + $0x108] ss:$16 sps:$4 sm:$0xff]   ;;  %v7197_v48 = vld [vmem:[%s9872_s1 + $0x164] ss:$16 sps:$4 sm:$0xff]   ;;  %v7201_v49 = vld [vmem:[%s9872_s1 + $0x12c] ss:$16 sps:$4 sm:$0xff]  }
  0x17   : > { %3050 = vmatpush1.bf16.msra.mxu1 %v7147_v14  ;;  %v7199_v50 = vld [vmem:[%s9872_s1 + $0x128] ss:$16 sps:$4 sm:$0xff]   ;;  %v7202_v51 = vld [vmem:[%s9872_s1 + $0x160] ss:$16 sps:$4 sm:$0xff]   ;;  %v7203_v52 = vld [vmem:[%s9872_s1 + $0x184] ss:$16 sps:$4 sm:$0xff]  }
  0x18   : > { %3051 = vmatprep.subr.bf16.mxu1 %v7156_v17  ;;  %2284 = vmatpush1.bf16.msra.mxu0 %v7157_v19  ;;  %v7208_v53 = vld [vmem:[%s9872_s1 + $0x14c] ss:$16 sps:$4 sm:$0xff]   ;;  %v7206_v55 = vld [vmem:[%s9872_s1 + $0x148] ss:$16 sps:$4 sm:$0xff]   ;;  %v7209_v56 = vld [vmem:[%s9872_s1 + $0x180] ss:$16 sps:$4 sm:$0xff]  }
  0x19   : > { %2285 = vmatprep.subr.bf16.mxu0 %v7158_v21  ;;  %v7205_v54 = vld [vmem:[%s7920_s16 + $0x2f0] ss:$28 sps:$4 sm:$0xff]   ;;  %v7210_v57 = vld [vmem:[%s9872_s1 + $0x1a4] ss:$16 sps:$4 sm:$0xff]   ;;  %v7212_v59 = vld [vmem:[%s9872_s1 + $0x168] ss:$16 sps:$4 sm:$0xff]  }
  0x1a   : > { %6262 = vmatmul.mubr.msk.bf16.gmra.mrb[4].mxu1 %vm2226_vm0, %v7153_v18  ;;  %v7214_v58 = vld [vmem:[%s9872_s1 + $0x16c] ss:$16 sps:$4 sm:$0xff]   ;;  %v7231_v60 = vld [vmem:[%s7920_s16 + $0x4] ss:$28 sps:$4 sm:$0xff]   ;;  %v7219_v1 = vld [vmem:[%s9872_s1 + $0x188] ss:$16 sps:$4 sm:$0xff]  }
  0x1b   : > { %3052 = vmatpush1.bf16.msra.mxu1 %v7154_v20  ;;  %2986 = vmatprep.mubr.bf16.mxu1 %v7824_v2  ;;  %v7215_v61 = vld [vmem:[%s9872_s1 + $0x1a0] ss:$16 sps:$4 sm:$0xff]   ;;  %v7216_v62 = vld [vmem:[%s9872_s1 + $0x1c4] ss:$16 sps:$4 sm:$0xff]   ;;  %v7221_v63 = vld [vmem:[%s9872_s1 + $0x18c] ss:$16 sps:$4 sm:$0xff]  }
  0x1c   : > { %3053 = vmatprep.subr.bf16.mxu1 %v7162_v22  ;;  %2286 = vmatpush1.bf16.msra.mxu0 %v7163_v24  ;;  %v7218_v0 = vld [vmem:[%s7920_s16 + $0x328] ss:$28 sps:$4 sm:$0xff]   ;;  %v7222_v3 = vld [vmem:[%s9872_s1 + $0x1c0] ss:$16 sps:$4 sm:$0xff]   ;;  %v7227_v5 = vld [vmem:[%s9872_s1 + $0x1ac] ss:$16 sps:$4 sm:$0xff]  }
  0x1d   : > { %2287 = vmatprep.subr.bf16.mxu0 %v7164_v25  ;;  %2307 = vmatprep.mubr.bf16.mxu0 %v7231_v60  ;;  %v7223_v4 = vld [vmem:[%s9872_s1 + $0x1e4] ss:$16 sps:$4 sm:$0xff]   ;;  %v7225_v6 = vld [vmem:[%s9872_s1 + $0x1a8] ss:$16 sps:$4 sm:$0xff]   ;;  %v7228_v7 = vld [vmem:[%s9872_s1 + $0x1e0] ss:$16 sps:$4 sm:$0xff]  }
  0x1e   : > { %v7234_v8 = vld [vmem:[%s9872_s1 + $0x204] ss:$16 sps:$4 sm:$0xff]   ;;  %v7238_v9 = vld [vmem:[%s9872_s1 + $0x1cc] ss:$16 sps:$4 sm:$0xff]   ;;  %v7232_v11 = vld [vmem:[%s9872_s1 + $0x200] ss:$16 sps:$4 sm:$0xff]  }
  0x1f   : > { %3054 = vmatpush1.bf16.msra.mxu1 %v7160_v23  ;;  %v7229_v10 = vld [vmem:[%s7920_s16] ss:$28 sps:$4 sm:$0xff]   ;;  %v7236_v13 = vld [vmem:[%s9872_s1 + $0x1c8] ss:$16 sps:$4 sm:$0xff]   ;;  %v7247_v16 = vld [vmem:[%s9872_s1 + $0x224] ss:$16 sps:$4 sm:$0xff]  }
  0x20   : > { %3055 = vmatprep.subr.bf16.mxu1 %v7169_v26  ;;  %2288 = vmatpush1.bf16.msra.mxu0 %v7170_v29  ;;  %v7235_v12 = vld [vmem:[%s7920_s16 + $0x360] ss:$28 sps:$4 sm:$0xff]   ;;  %v7239_v17 = vld [vmem:[%s9872_s1 + $0x1e8] ss:$16 sps:$4 sm:$0xff]   ;;  %v7253_v19 = vld [vmem:[%s9872_s1 + $0x244] ss:$16 sps:$4 sm:$0xff]  }
  0x21   : > { %2289 = vmatprep.subr.bf16.mxu0 %v7171_v30  ;;  %v7242_v14 = vld [vmem:[%s7920_s16 + $0x3c] ss:$28 sps:$4 sm:$0xff]   ;;  %v7245_v18 = vld [vmem:[%s9872_s1 + $0x220] ss:$16 sps:$4 sm:$0xff]   ;;  %v7259_v23 = vld [vmem:[%s9872_s1 + $0x264] ss:$16 sps:$4 sm:$0xff]  }
  0x22   : > { %6263 = vmatmul.mubr.msk.bf16.gmra.mrb[8].mxu1 %vm2226_vm0, %v7166_v27  ;;  %v7241_v15 = vld [vmem:[%s9872_s1 + $0x1ec] ss:$16 sps:$4 sm:$0xff]   ;;  %v7244_v20 = vld [vmem:[%s7920_s16 + $0x38] ss:$28 sps:$4 sm:$0xff]   ;;  %v7251_v22 = vld [vmem:[%s9872_s1 + $0x240] ss:$16 sps:$4 sm:$0xff]  }
  0x23   : > { %3056 = vmatpush1.bf16.msra.mxu1 %v7167_v28  ;;  %2996 = vmatprep.mubr.bf16.mxu1 %v7824_v2  ;;  %v7248_v21 = vld [vmem:[%s7920_s16 + $0x74] ss:$28 sps:$4 sm:$0xff]   ;;  %v7254_v27 = vld [vmem:[%s7920_s16 + $0xac] ss:$28 sps:$4 sm:$0xff]   ;;  %vm5281_vm4 = vcmask 818176   ;;  %vm5495_vm5 = vcmask 80896  }
  0x24   : > { %3057 = vmatprep.subr.bf16.mxu1 %v7175_v31  ;;  %2290 = vmatpush1.bf16.msra.mxu0 %v7176_v32  ;;  %v7250_v24 = vld [vmem:[%s7920_s16 + $0x70] ss:$28 sps:$4 sm:$0xff]   ;;  %v7265_v26 = vld [vmem:[%s9872_s1 + $0x284] ss:$16 sps:$4 sm:$0xff]   ;;  %v7296_v29 = vld [vmem:[%s9872_s1 + $0x208] ss:$16 sps:$4 sm:$0xff]  }
  0x25   : > { %2291 = vmatprep.subr.bf16.mxu0 %v7177_v34  ;;  %v7257_v25 = vld [vmem:[%s9872_s1 + $0x260] ss:$16 sps:$4 sm:$0xff]   ;;  %v7298_v30 = vld [vmem:[%s9872_s1 + $0x20c] ss:$16 sps:$4 sm:$0xff]   ;;  %v7271_v31 = vld [vmem:[%s9872_s1 + $0x2a4] ss:$16 sps:$4 sm:$0xff]  }
  0x26   : > { %v7263_v28 = vld [vmem:[%s9872_s1 + $0x280] ss:$16 sps:$4 sm:$0xff]   ;;  %v7301_v32 = vld [vmem:[%s9872_s1 + $0x22c] ss:$16 sps:$4 sm:$0xff]   ;;  %s5944_s12 = sshll.u32 %s9882_s13, 3 }
  0x27   : > { %3058 = vmatpush1.bf16.msra.mxu1 %v7173_v33  ;;  %v7299_v33 = vld [vmem:[%s9872_s1 + $0x228] ss:$16 sps:$4 sm:$0xff]   ;;  %v7269_v34 = vld [vmem:[%s9872_s1 + $0x2a0] ss:$16 sps:$4 sm:$0xff]   ;;  %s9770_s17 = scalar_lea.vmem %s9880_s9, %s5944_s12 }
  0x28   : > { %3059 = vmatprep.subr.bf16.mxu1 %v7182_v35  ;;  %2292 = vmatpush1.bf16.msra.mxu0 %v7183_v37  ;;  %v7277_v35 = vld [vmem:[%s9872_s1 + $0x2c4] ss:$16 sps:$4 sm:$0xff]  }
  0x29   : > { %2293 = vmatprep.subr.bf16.mxu0 %v7184_v39  ;;  %v7256_v37 = vld [vmem:[%s7920_s16 + $0xa8] ss:$28 sps:$4 sm:$0xff]  }
  0x2a   : > { %6264 = vmatmul.mubr.msk.bf16.gmra.mrb[12].mxu1 %vm2226_vm0, %v7179_v36  ;;  %v7310_v36 = vld [vmem:[%s9872_s1 + $0x24c] ss:$16 sps:$4 sm:$0xff]   ;;  %v7260_v39 = vld [vmem:[%s7920_s16 + $0xe4] ss:$28 sps:$4 sm:$0xff]  }
  0x2b   : > { %3060 = vmatpush1.bf16.msra.mxu1 %v7180_v38  ;;  %3006 = vmatprep.mubr.bf16.mxu1 %v7824_v2  ;;  %v7308_v38 = vld [vmem:[%s9872_s1 + $0x248] ss:$16 sps:$4 sm:$0xff]  }
  0x2c   : > { %3061 = vmatprep.subr.bf16.mxu1 %v7188_v40  ;;  %2294 = vmatpush1.bf16.msra.mxu0 %v7189_v42  ;;  %v7275_v40 = vld [vmem:[%s9872_s1 + $0x2c0] ss:$16 sps:$4 sm:$0xff]   ;;  %v7313_v42 = vld [vmem:[%s9872_s1 + $0x26c] ss:$16 sps:$4 sm:$0xff]  }
  0x2d   : > { %2295 = vmatprep.subr.bf16.mxu0 %v7190_v43  ;;  %v7311_v43 = vld [vmem:[%s9872_s1 + $0x268] ss:$16 sps:$4 sm:$0xff]  }
  0x2f   : > { %3062 = vmatpush1.bf16.msra.mxu1 %v7186_v41  ;;  %v7283_v41 = vld [vmem:[%s9872_s1 + $0x2e4] ss:$16 sps:$4 sm:$0xff]  }
  0x30   : > { %3063 = vmatprep.subr.bf16.mxu1 %v7195_v44  ;;  %2296 = vmatpush1.bf16.msra.mxu0 %v7196_v47  ;;  %v7322_v44 = vld [vmem:[%s9872_s1 + $0x28c] ss:$16 sps:$4 sm:$0xff]  }
  0x31   : > { %2297 = vmatprep.subr.bf16.mxu0 %v7197_v48  ;;  %v7262_v47 = vld [vmem:[%s7920_s16 + $0xe0] ss:$28 sps:$4 sm:$0xff]   ;;  %v7320_v48 = vld [vmem:[%s9872_s1 + $0x288] ss:$16 sps:$4 sm:$0xff]  }
  0x32   : > { %6265 = vmatmul.mubr.msk.bf16.gmra.mrb[16].mxu1 %vm2226_vm0, %v7192_v45  ;;  %v7281_v45 = vld [vmem:[%s9872_s1 + $0x2e0] ss:$16 sps:$4 sm:$0xff]  }
  0x33   : > { %3064 = vmatpush1.bf16.msra.mxu1 %v7193_v46  ;;  %3016 = vmatprep.mubr.bf16.mxu1 %v7824_v2  ;;  %v7289_v46 = vld [vmem:[%s9872_s1 + $0x304] ss:$16 sps:$4 sm:$0xff]  }
  0x34   : > { %3065 = vmatprep.subr.bf16.mxu1 %v7201_v49  ;;  %2298 = vmatpush1.bf16.msra.mxu0 %v7202_v51  ;;  %v7266_v49 = vld [vmem:[%s7920_s16 + $0x11c] ss:$28 sps:$4 sm:$0xff]   ;;  %v7295_v51 = vld [vmem:[%s9872_s1 + $0x324] ss:$16 sps:$4 sm:$0xff]  }
  0x35   : > { %2299 = vmatprep.subr.bf16.mxu0 %v7203_v52  ;;  %v7325_v52 = vld [vmem:[%s9872_s1 + $0x2ac] ss:$16 sps:$4 sm:$0xff]  }
  0x37   : > { %3066 = vmatpush1.bf16.msra.mxu1 %v7199_v50  ;;  %v7287_v50 = vld [vmem:[%s9872_s1 + $0x300] ss:$16 sps:$4 sm:$0xff]  }
  0x38   : > { %3067 = vmatprep.subr.bf16.mxu1 %v7208_v53  ;;  %2300 = vmatpush1.bf16.msra.mxu0 %v7209_v56  ;;  %v7323_v53 = vld [vmem:[%s9872_s1 + $0x2a8] ss:$16 sps:$4 sm:$0xff]   ;;  %v7307_v56 = vld [vmem:[%s9872_s1 + $0x344] ss:$16 sps:$4 sm:$0xff]  }
  0x39   : > { %2301 = vmatprep.subr.bf16.mxu0 %v7210_v57  ;;  %v7268_v57 = vld [vmem:[%s7920_s16 + $0x118] ss:$28 sps:$4 sm:$0xff]  }
  0x3a   : > { %6266 = vmatmul.mubr.msk.bf16.gmra.mrb[20].mxu1 %vm2226_vm0, %v7205_v54  ;;  %v7334_v54 = vld [vmem:[%s9872_s1 + $0x2cc] ss:$16 sps:$4 sm:$0xff]  }
  0x3b   : > { %3068 = vmatpush1.bf16.msra.mxu1 %v7206_v55  ;;  %3026 = vmatprep.mubr.bf16.mxu1 %v7824_v2  ;;  %v7293_v55 = vld [vmem:[%s9872_s1 + $0x320] ss:$16 sps:$4 sm:$0xff]  }
  0x3c   : > { %3069 = vmatprep.subr.bf16.mxu1 %v7214_v58  ;;  %2302 = vmatpush1.bf16.msra.mxu0 %v7215_v61  ;;  %v7332_v58 = vld [vmem:[%s9872_s1 + $0x2c8] ss:$16 sps:$4 sm:$0xff]   ;;  %v7319_v61 = vld [vmem:[%s9872_s1 + $0x364] ss:$16 sps:$4 sm:$0xff]  }
  0x3d   : > { %2303 = vmatprep.subr.bf16.mxu0 %v7216_v62  ;;  %v7337_v62 = vld [vmem:[%s9872_s1 + $0x2ec] ss:$16 sps:$4 sm:$0xff]  }
  0x3f   : > { %3070 = vmatpush1.bf16.msra.mxu1 %v7212_v59  ;;  %v7272_v59 = vld [vmem:[%s7920_s16 + $0x154] ss:$28 sps:$4 sm:$0xff]  }
  0x40   : > { %3071 = vmatprep.subr.bf16.mxu1 %v7221_v63  ;;  %2304 = vmatpush1.bf16.msra.mxu0 %v7222_v3  ;;  %v7335_v63 = vld [vmem:[%s9872_s1 + $0x2e8] ss:$16 sps:$4 sm:$0xff]   ;;  %v7331_v3 = vld [vmem:[%s9872_s1 + $0x384] ss:$16 sps:$4 sm:$0xff]  }
  0x41   : > { %2305 = vmatprep.subr.bf16.mxu0 %v7223_v4  ;;  %v7274_v4 = vld [vmem:[%s7920_s16 + $0x150] ss:$28 sps:$4 sm:$0xff]  }
  0x42   : > { %6267 = vmatmul.mubr.msk.bf16.gmra.mrb[24].mxu1 %vm2226_vm0, %v7218_v0  ;;  %v7346_v0 = vld [vmem:[%s9872_s1 + $0x30c] ss:$16 sps:$4 sm:$0xff]  }
  0x43   : > { %3072 = vmatpush1.bf16.msra.mxu1 %v7219_v1  ;;  %3036 = vmatprep.mubr.bf16.mxu1 %v7824_v2  ;;  %v7317_v1 = vld [vmem:[%s9872_s1 + $0x360] ss:$16 sps:$4 sm:$0xff]  }
  0x44   : > { %3073 = vmatprep.subr.bf16.mxu1 %v7227_v5  ;;  %2306 = vmatpush1.bf16.msra.mxu0 %v7228_v7  ;;  %v7344_v5 = vld [vmem:[%s9872_s1 + $0x308] ss:$16 sps:$4 sm:$0xff]   ;;  %v7329_v7 = vld [vmem:[%s9872_s1 + $0x380] ss:$16 sps:$4 sm:$0xff]  }
  0x45   : > { %2468 = vmatprep.subr.bf16.mxu0 %v7234_v8  ;;  %v7343_v8 = vld [vmem:[%s9872_s1 + $0x3a4] ss:$16 sps:$4 sm:$0xff]  }
  0x47   : > { %3074 = vmatpush1.bf16.msra.mxu1 %v7225_v6  ;;  %2308 = vmatmul.mubr.bf16.vlgmr.msra.gmra.mrb[0].mxu0 %v7229_v10  ;;  %v7278_v6 = vld [vmem:[%s7920_s16 + $0x18c] ss:$28 sps:$4 sm:$0xff]  }
  0x48   : > { %3075 = vmatprep.subr.bf16.mxu1 %v7238_v9  ;;  %2469 = vmatpush1.bf16.msra.mxu0 %v7232_v11  ;;  %v7349_v9 = vld [vmem:[%s9872_s1 + $0x32c] ss:$16 sps:$4 sm:$0xff]  }
  0x49   : > { %2317 = vmatprep.mubr.bf16.mxu0 %v7242_v14  ;;  %2470 = vmatprep.subr.bf16.mxu0 %v7247_v16  ;;  %v7358_v11 = vld [vmem:[%s9872_s1 + $0x34c] ss:$16 sps:$4 sm:$0xff]   ;;  %v7284_v16 = vld [vmem:[%s7920_s16 + $0x1c4] ss:$28 sps:$4 sm:$0xff]  }
  0x4a   : > { %6268 = vmatmul.mubr.msk.bf16.gmra.mrb[28].mxu1 %vm2226_vm0, %v7235_v12  ;;  %v7341_v12 = vld [vmem:[%s9872_s1 + $0x3a0] ss:$16 sps:$4 sm:$0xff]  }
  0x4b   : > { %3076 = vmatpush1.bf16.msra.mxu1 %v7236_v13  ;;  %3079 = vmatprep.mubr.bf16.mxu1 %v7231_v60  ;;  %v7305_v60 = vld [vmem:[%s9872_s1 + $0x340] ss:$16 sps:$4 sm:$0xff]   ;;  %v7355_v13 = vld [vmem:[%s9872_s1 + $0x3c4] ss:$16 sps:$4 sm:$0xff]  }
  0x4c   : > { %3077 = vmatprep.subr.bf16.mxu1 %v7241_v15  ;;  %2471 = vmatpush1.bf16.msra.mxu0 %v7245_v18  ;;  %v7356_v15 = vld [vmem:[%s9872_s1 + $0x348] ss:$16 sps:$4 sm:$0xff]   ;;  %v7361_v18 = vld [vmem:[%s9872_s1 + $0x36c] ss:$16 sps:$4 sm:$0xff]  }
  0x4d   : > { %2472 = vmatprep.subr.bf16.mxu0 %v7253_v19  ;;  %v7367_v19 = vld [vmem:[%s9872_s1 + $0x3e4] ss:$16 sps:$4 sm:$0xff]  }
  0x4f   : > { %3078 = vmatpush1.bf16.msra.mxu1 %v7239_v17  ;;  %2318 = vmatmul.mubr.bf16.gmra.mrb[4].mxu0 %v7244_v20  ;;  %v7353_v17 = vld [vmem:[%s9872_s1 + $0x3c0] ss:$16 sps:$4 sm:$0xff]  }
  0x50   : > { %2327 = vmatprep.mubr.bf16.mxu0 %v7248_v21  ;;  %2473 = vmatpush1.bf16.msra.mxu0 %v7251_v22  ;;  %v7365_v22 = vld [vmem:[%s9872_s1 + $0x3e0] ss:$16 sps:$4 sm:$0xff]  }
  0x51   : > { %2474 = vmatprep.subr.bf16.mxu0 %v7259_v23  ;;  %3240 = vmatprep.subr.bf16.mxu1 %v7298_v30  ;;  %v7379_v23 = vld [vmem:[%s9872_s1 + $0x404] ss:$16 sps:$4 sm:$0xff]  }
  0x52   : > { %3080 = vmatmul.mubr.bf16.vlgmr.msra.gmra.mrb[32].mxu1 %v7229_v10  ;;  %v7347_v10 = vld [vmem:[%s9872_s1 + $0x328] ss:$16 sps:$4 sm:$0xff]  }
  0x53   : > { %3089 = vmatprep.mubr.bf16.mxu1 %v7242_v14  ;;  %3241 = vmatpush1.bf16.msra.mxu1 %v7296_v29  ;;  %v7280_v14 = vld [vmem:[%s7920_s16 + $0x188] ss:$28 sps:$4 sm:$0xff]   ;;  %v7382_v29 = vld [vmem:[%s9872_s1 + $0x3cc] ss:$16 sps:$4 sm:$0xff]   ;;  %v7292_v30 = vld [vmem:[%s7920_s16 + $0x1f8] ss:$28 sps:$4 sm:$0xff]  }
  0x54   : > { %2475 = vmatpush1.bf16.msra.mxu0 %v7257_v25  ;;  %3242 = vmatprep.subr.bf16.mxu1 %v7301_v32  ;;  %v7368_v25 = vld [vmem:[%s9872_s1 + $0x388] ss:$16 sps:$4 sm:$0xff]   ;;  %v7302_v32 = vld [vmem:[%s7920_s16 + $0x234] ss:$28 sps:$4 sm:$0xff]  }
  0x55   : > { %2476 = vmatprep.subr.bf16.mxu0 %v7265_v26  ;;  %v7290_v26 = vld [vmem:[%s7920_s16 + $0x1fc] ss:$28 sps:$4 sm:$0xff]  }
  0x57   : > { %2328 = vmatmul.mubr.bf16.gmra.mrb[8].mxu0 %v7250_v24  ;;  %3243 = vmatpush1.bf16.msra.mxu1 %v7299_v33  ;;  %v7385_v33 = vld [vmem:[%s9872_s1 + $0x3ec] ss:$16 sps:$4 sm:$0xff]  }
  0x58   : > { %2337 = vmatprep.mubr.bf16.mxu0 %v7254_v27  ;;  %2477 = vmatpush1.bf16.msra.mxu0 %v7263_v28  ;;  %v7371_v28 = vld [vmem:[%s9872_s1 + $0x3a8] ss:$16 sps:$4 sm:$0xff]  }
  0x59   : > { %2478 = vmatprep.subr.bf16.mxu0 %v7271_v31  ;;  %3244 = vmatprep.subr.bf16.mxu1 %v7310_v36  ;;  %v7380_v31 = vld [vmem:[%s9872_s1 + $0x3c8] ss:$16 sps:$4 sm:$0xff]  }
  0x5a   : > { %3090 = vmatmul.mubr.bf16.gmra.mrb[36].mxu1 %v7244_v20  ;;  %v7359_v20 = vld [vmem:[%s9872_s1 + $0x368] ss:$16 sps:$4 sm:$0xff]  }
  0x5b   : > { %3099 = vmatprep.mubr.bf16.mxu1 %v7248_v21  ;;  %3245 = vmatpush1.bf16.msra.mxu1 %v7308_v38  ;;  %v7370_v21 = vld [vmem:[%s9872_s1 + $0x38c] ss:$16 sps:$4 sm:$0xff]   ;;  %v7316_v38 = vld [vmem:[%s7920_s16 + $0x268] ss:$28 sps:$4 sm:$0xff]  }
  0x5c   : > { %2479 = vmatpush1.bf16.msra.mxu0 %v7269_v34  ;;  %3246 = vmatprep.subr.bf16.mxu1 %v7313_v42  ;;  %v7383_v34 = vld [vmem:[%s9872_s1 + $0x3e8] ss:$16 sps:$4 sm:$0xff]  }
  0x5d   : > { %2480 = vmatprep.subr.bf16.mxu0 %v7277_v35  ;;  %v7304_v35 = vld [vmem:[%s7920_s16 + $0x230] ss:$28 sps:$4 sm:$0xff]   ;;  %v7340_v42 = vld [vmem:[%s7920_s16 + $0x2d8] ss:$28 sps:$4 sm:$0xff]  }
  0x5e   : > { %v7314_v36 = vld [vmem:[%s7920_s16 + $0x26c] ss:$28 sps:$4 sm:$0xff]  }
  0x5f   : > { %2338 = vmatmul.mubr.bf16.gmra.mrb[12].mxu0 %v7256_v37  ;;  %3247 = vmatpush1.bf16.msra.mxu1 %v7311_v43  ;;  %v7350_v43 = vld [vmem:[%s7920_s16 + $0x314] ss:$28 sps:$4 sm:$0xff]  }
  0x60   : > { %2347 = vmatprep.mubr.bf16.mxu0 %v7260_v39  ;;  %2481 = vmatpush1.bf16.msra.mxu0 %v7275_v40  ;;  %v7328_v40 = vld [vmem:[%s7920_s16 + $0x2a0] ss:$28 sps:$4 sm:$0xff]  }
  0x61   : > { %2482 = vmatprep.subr.bf16.mxu0 %v7283_v41  ;;  %3248 = vmatprep.subr.bf16.mxu1 %v7322_v44  ;;  %v7338_v41 = vld [vmem:[%s7920_s16 + $0x2dc] ss:$28 sps:$4 sm:$0xff]   ;;  %v7352_v44 = vld [vmem:[%s7920_s16 + $0x310] ss:$28 sps:$4 sm:$0xff]  }
  0x62   : > { %3100 = vmatmul.mubr.bf16.gmra.mrb[40].mxu1 %v7250_v24  ;;  %v7286_v24 = vld [vmem:[%s7920_s16 + $0x1c0] ss:$28 sps:$4 sm:$0xff]  }
  0x63   : > { %3109 = vmatprep.mubr.bf16.mxu1 %v7254_v27  ;;  %3249 = vmatpush1.bf16.msra.mxu1 %v7320_v48  ;;  %v7373_v27 = vld [vmem:[%s9872_s1 + $0x3ac] ss:$16 sps:$4 sm:$0xff]   ;;  %v7374_v48 = vld [vmem:[%s7920_s16 + $0x8] ss:$28 sps:$4 sm:$0xff]  }
  0x64   : > { %2483 = vmatpush1.bf16.msra.mxu0 %v7281_v45  ;;  %3250 = vmatprep.subr.bf16.mxu1 %v7325_v52  ;;  %v7362_v45 = vld [vmem:[%s7920_s16 + $0x34c] ss:$28 sps:$4 sm:$0xff]   ;;  %v7389_v52 = vld [vmem:[%s9872_s1 + $0x420] ss:$16 sps:$4 sm:$0xff]  }
  0x65   : > { %2484 = vmatprep.subr.bf16.mxu0 %v7289_v46  ;;  %v7364_v46 = vld [vmem:[%s7920_s16 + $0x348] ss:$28 sps:$4 sm:$0xff]  }
  0x67   : > { %2348 = vmatmul.mubr.bf16.gmra.mrb[16].mxu0 %v7262_v47  ;;  %3251 = vmatpush1.bf16.msra.mxu1 %v7323_v53  ;;  %v7388_v53 = vld [vmem:[%s7920_s16 + $0x40] ss:$28 sps:$4 sm:$0xff]  }
  0x68   : > { %2357 = vmatprep.mubr.bf16.mxu0 %v7266_v49  ;;  %2485 = vmatpush1.bf16.msra.mxu0 %v7287_v50  ;;  %v7386_v50 = vld [vmem:[%s7920_s16 + $0x44] ss:$28 sps:$4 sm:$0xff]  }
  0x69   : > { %2486 = vmatprep.subr.bf16.mxu0 %v7295_v51  ;;  %3252 = vmatprep.subr.bf16.mxu1 %v7334_v54  ;;  %v7391_v51 = vld [vmem:[%s9872_s1 + $0x424] ss:$16 sps:$4 sm:$0xff]  }
  0x6a   : > { %3110 = vmatmul.mubr.bf16.gmra.mrb[44].mxu1 %v7256_v37  ;;  %v7442_v37 = vld [vmem:[%s9872_s1 + $0x40c] ss:$16 sps:$4 sm:$0xff]   ;;  %v7397_v54 = vld [vmem:[%s9872_s1 + $0x444] ss:$16 sps:$4 sm:$0xff]  }
  0x6b   : > { %3119 = vmatprep.mubr.bf16.mxu1 %v7260_v39  ;;  %3253 = vmatpush1.bf16.msra.mxu1 %v7332_v58  ;;  %v7326_v39 = vld [vmem:[%s7920_s16 + $0x2a4] ss:$28 sps:$4 sm:$0xff]   ;;  %v7440_v58 = vld [vmem:[%s9872_s1 + $0x408] ss:$16 sps:$4 sm:$0xff]  }
  0x6c   : > { %2487 = vmatpush1.bf16.msra.mxu0 %v7293_v55  ;;  %3254 = vmatprep.subr.bf16.mxu1 %v7337_v62  ;;  %v7392_v55 = vld [vmem:[%s7920_s16 + $0x7c] ss:$28 sps:$4 sm:$0xff]  }
  0x6d   : > { %2488 = vmatprep.subr.bf16.mxu0 %v7307_v56  ;;  %v7395_v56 = vld [vmem:[%s9872_s1 + $0x440] ss:$16 sps:$4 sm:$0xff]   ;;  %v7443_v62 = vld [vmem:[%s9872_s1 + $0x428] ss:$16 sps:$4 sm:$0xff]  }
  0x6f   : > { %2358 = vmatmul.mubr.bf16.gmra.mrb[20].mxu0 %v7268_v57  ;;  %3255 = vmatpush1.bf16.msra.mxu1 %v7335_v63  ;;  %v7394_v63 = vld [vmem:[%s7920_s16 + $0x78] ss:$28 sps:$4 sm:$0xff]  }
  0x70   : > { %2367 = vmatprep.mubr.bf16.mxu0 %v7272_v59  ;;  %2489 = vmatpush1.bf16.msra.mxu0 %v7305_v60  ;;  %v7401_v60 = vld [vmem:[%s9872_s1 + $0x460] ss:$16 sps:$4 sm:$0xff]  }
  0x71   : > { %2490 = vmatprep.subr.bf16.mxu0 %v7319_v61  ;;  %3256 = vmatprep.subr.bf16.mxu1 %v7346_v0  ;;  %v7409_v61 = vld [vmem:[%s9872_s1 + $0x484] ss:$16 sps:$4 sm:$0xff]   ;;  %v7454_v0 = vld [vmem:[%s9872_s1 + $0x44c] ss:$16 sps:$4 sm:$0xff]  }
  0x72   : > { %3120 = vmatmul.mubr.bf16.gmra.mrb[48].mxu1 %v7262_v47  ;;  %v7376_v47 = vld [vmem:[%s7920_s16 + $0xc] ss:$28 sps:$4 sm:$0xff]  }
  0x73   : > { %3129 = vmatprep.mubr.bf16.mxu1 %v7266_v49  ;;  %3257 = vmatpush1.bf16.msra.mxu1 %v7344_v5  ;;  %v7377_v49 = vld [vmem:[%s9872_s1 + $0x400] ss:$16 sps:$4 sm:$0xff]   ;;  %v7452_v5 = vld [vmem:[%s9872_s1 + $0x448] ss:$16 sps:$4 sm:$0xff]  }
  0x74   : > { %2491 = vmatpush1.bf16.msra.mxu0 %v7317_v1  ;;  %3258 = vmatprep.subr.bf16.mxu1 %v7349_v9  ;;  %v7398_v1 = vld [vmem:[%s7920_s16 + $0xb4] ss:$28 sps:$4 sm:$0xff]   ;;  %v7455_v9 = vld [vmem:[%s9872_s1 + $0x468] ss:$16 sps:$4 sm:$0xff]  }
  0x75   : > { %2492 = vmatprep.subr.bf16.mxu0 %v7331_v3  ;;  %v7407_v3 = vld [vmem:[%s9872_s1 + $0x480] ss:$16 sps:$4 sm:$0xff]  }
  0x77   : > { %2368 = vmatmul.mubr.bf16.gmra.mrb[24].mxu0 %v7274_v4  ;;  %3259 = vmatpush1.bf16.msra.mxu1 %v7347_v10  ;;  %v7400_v10 = vld [vmem:[%s7920_s16 + $0xb0] ss:$28 sps:$4 sm:$0xff]  }
  0x78   : > { %2377 = vmatprep.mubr.bf16.mxu0 %v7278_v6  ;;  %2493 = vmatpush1.bf16.msra.mxu0 %v7329_v7  ;;  %v7413_v7 = vld [vmem:[%s9872_s1 + $0x4a0] ss:$16 sps:$4 sm:$0xff]  }
  0x79   : > { %2494 = vmatprep.subr.bf16.mxu0 %v7343_v8  ;;  %3260 = vmatprep.subr.bf16.mxu1 %v7358_v11  ;;  %v7421_v8 = vld [vmem:[%s9872_s1 + $0x4c4] ss:$16 sps:$4 sm:$0xff]   ;;  %v7466_v11 = vld [vmem:[%s9872_s1 + $0x48c] ss:$16 sps:$4 sm:$0xff]  }
  0x7a   : > { %3130 = vmatmul.mubr.bf16.gmra.mrb[52].mxu1 %v7268_v57  ;;  %v7403_v57 = vld [vmem:[%s9872_s1 + $0x464] ss:$16 sps:$4 sm:$0xff]  }
  0x7b   : > { %3139 = vmatprep.mubr.bf16.mxu1 %v7272_v59  ;;  %3261 = vmatpush1.bf16.msra.mxu1 %v7356_v15  ;;  %v7445_v59 = vld [vmem:[%s9872_s1 + $0x42c] ss:$16 sps:$4 sm:$0xff]   ;;  %v7464_v15 = vld [vmem:[%s9872_s1 + $0x488] ss:$16 sps:$4 sm:$0xff]  }
  0x7c   : > { %2495 = vmatpush1.bf16.msra.mxu0 %v7341_v12  ;;  %3262 = vmatprep.subr.bf16.mxu1 %v7361_v18  ;;  %v7404_v12 = vld [vmem:[%s7920_s16 + $0xec] ss:$28 sps:$4 sm:$0xff]   ;;  %v7433_v18 = vld [vmem:[%s9872_s1 + $0x504] ss:$16 sps:$4 sm:$0xff]  }
  0x7d   : > { %2496 = vmatprep.subr.bf16.mxu0 %v7355_v13  ;;  %v7419_v13 = vld [vmem:[%s9872_s1 + $0x4c0] ss:$16 sps:$4 sm:$0xff]  }
  0x7f   : > { %2378 = vmatmul.mubr.bf16.gmra.mrb[28].mxu0 %v7280_v14  ;;  %3263 = vmatpush1.bf16.msra.mxu1 %v7359_v20  ;;  %v7406_v20 = vld [vmem:[%s7920_s16 + $0xe8] ss:$28 sps:$4 sm:$0xff]  }
  0x80   : > { %2387 = vmatprep.mubr.bf16.mxu0 %v7284_v16  ;;  %2497 = vmatpush1.bf16.msra.mxu0 %v7353_v17  ;;  %v7425_v17 = vld [vmem:[%s9872_s1 + $0x4e0] ss:$16 sps:$4 sm:$0xff]  }
  0x81   : > { %2498 = vmatprep.subr.bf16.mxu0 %v7367_v19  ;;  %3264 = vmatprep.subr.bf16.mxu1 %v7370_v21  ;;  %v7467_v19 = vld [vmem:[%s9872_s1 + $0x4a8] ss:$16 sps:$4 sm:$0xff]   ;;  %v7478_v21 = vld [vmem:[%s9872_s1 + $0x4cc] ss:$16 sps:$4 sm:$0xff]  }
  0x82   : > { %3140 = vmatmul.mubr.bf16.gmra.mrb[56].mxu1 %v7274_v4  ;;  %v7415_v4 = vld [vmem:[%s9872_s1 + $0x4a4] ss:$16 sps:$4 sm:$0xff]  }
  0x83   : > { %3149 = vmatprep.mubr.bf16.mxu1 %v7278_v6  ;;  %3265 = vmatpush1.bf16.msra.mxu1 %v7368_v25  ;;  %v7457_v6 = vld [vmem:[%s9872_s1 + $0x46c] ss:$16 sps:$4 sm:$0xff]   ;;  %v7439_v25 = vld [vmem:[%s9872_s1 + $0x524] ss:$16 sps:$4 sm:$0xff]  }
  0x84   : > { %2499 = vmatpush1.bf16.msra.mxu0 %v7365_v22  ;;  %3266 = vmatprep.subr.bf16.mxu1 %v7373_v27  ;;  %v7410_v22 = vld [vmem:[%s7920_s16 + $0x124] ss:$28 sps:$4 sm:$0xff]  }
  0x85   : > { %2661 = vmatprep.subr.bf16.mxu0 %v7379_v23  ;;  %v7431_v23 = vld [vmem:[%s9872_s1 + $0x500] ss:$16 sps:$4 sm:$0xff]  }
  0x87   : > { %2388 = vmatmul.mubr.bf16.gmra.mrb[32].mxu0 %v7286_v24  ;;  %3267 = vmatpush1.bf16.msra.mxu1 %v7371_v28  ;;  %v7481_v28 = vld [vmem:[%s9872_s1 + $0x4ec] ss:$16 sps:$4 sm:$0xff]  }
  0x88   : > { %2397 = vmatprep.mubr.bf16.mxu0 %v7290_v26  ;;  %3268 = vmatprep.subr.bf16.mxu1 %v7382_v29 }
  0x8a   : > { %3150 = vmatmul.mubr.bf16.gmra.mrb[60].mxu1 %v7280_v14  ;;  %v7427_v14 = vld [vmem:[%s9872_s1 + $0x4e4] ss:$16 sps:$4 sm:$0xff]  }
  0x8b   : > { %3159 = vmatprep.mubr.bf16.mxu1 %v7284_v16  ;;  %3269 = vmatpush1.bf16.msra.mxu1 %v7380_v31  ;;  %v7469_v16 = vld [vmem:[%s9872_s1 + $0x4ac] ss:$16 sps:$4 sm:$0xff]   ;;  %v7437_v31 = vld [vmem:[%s9872_s1 + $0x520] ss:$16 sps:$4 sm:$0xff]  }
  0x8c   : > { %3270 = vmatprep.subr.bf16.mxu1 %v7385_v33  ;;  %v7479_v33 = vld [vmem:[%s9872_s1 + $0x4e8] ss:$16 sps:$4 sm:$0xff]  }
  0x8f   : > { %2398 = vmatmul.mubr.bf16.gmra.mrb[36].mxu0 %v7292_v30  ;;  %3271 = vmatpush1.bf16.msra.mxu1 %v7383_v34  ;;  %v7412_v34 = vld [vmem:[%s7920_s16 + $0x120] ss:$28 sps:$4 sm:$0xff]  }
  0x90   : > { %2407 = vmatprep.mubr.bf16.mxu0 %v7302_v32  ;;  %3433 = vmatprep.subr.bf16.mxu1 %v7442_v37 }
  0x92   : > { %3160 = vmatmul.mubr.bf16.gmra.mrb[64].mxu1 %v7286_v24 }
  0x93   : > { %3169 = vmatprep.mubr.bf16.mxu1 %v7290_v26  ;;  %v7476_v26 = vld [vmem:[%s9872_s1 + $0x4c8] ss:$16 sps:$4 sm:$0xff]  }
  0x97   : > { %2408 = vmatmul.mubr.bf16.gmra.mrb[40].mxu0 %v7304_v35 }
  0x98   : > { %2417 = vmatprep.mubr.bf16.mxu0 %v7314_v36 }
  0x9a   : > { %3170 = vmatmul.mubr.bf16.gmra.mrb[68].mxu1 %v7292_v30 }
  0x9b   : > { %3179 = vmatprep.mubr.bf16.mxu1 %v7302_v32  ;;  %v7451_v32 = vld [vmem:[%s9872_s1 + $0x544] ss:$16 sps:$4 sm:$0xff]  }
  0x9f   : > { %2418 = vmatmul.mubr.bf16.gmra.mrb[44].mxu0 %v7316_v38 }
  0xa0   : > { %2427 = vmatprep.mubr.bf16.mxu0 %v7326_v39 }
  0xa2   : > { %3180 = vmatmul.mubr.bf16.gmra.mrb[72].mxu1 %v7304_v35  ;;  %v7490_v35 = vld [vmem:[%s9872_s1 + $0x50c] ss:$16 sps:$4 sm:$0xff]  }
  0xa3   : > { %3189 = vmatprep.mubr.bf16.mxu1 %v7314_v36  ;;  %v7416_v36 = vld [vmem:[%s7920_s16 + $0x15c] ss:$28 sps:$4 sm:$0xff]  }
  0xa7   : > { %2428 = vmatmul.mubr.bf16.gmra.mrb[48].mxu0 %v7328_v40 }
  0xa8   : > { %2437 = vmatprep.mubr.bf16.mxu0 %v7338_v41 }
  0xaa   : > { %3190 = vmatmul.mubr.bf16.gmra.mrb[76].mxu1 %v7316_v38 }
  0xab   : > { %3199 = vmatprep.mubr.bf16.mxu1 %v7326_v39  ;;  %v7449_v39 = vld [vmem:[%s9872_s1 + $0x540] ss:$16 sps:$4 sm:$0xff]  }
  0xaf   : > { %2438 = vmatmul.mubr.bf16.gmra.mrb[52].mxu0 %v7340_v42 }
  0xb0   : > { %2447 = vmatprep.mubr.bf16.mxu0 %v7350_v43 }
  0xb2   : > { %3200 = vmatmul.mubr.bf16.gmra.mrb[80].mxu1 %v7328_v40 }
  0xb3   : > { %3209 = vmatprep.mubr.bf16.mxu1 %v7338_v41  ;;  %v7463_v41 = vld [vmem:[%s9872_s1 + $0x564] ss:$16 sps:$4 sm:$0xff]  }
  0xb7   : > { %2448 = vmatmul.mubr.bf16.gmra.mrb[56].mxu0 %v7352_v44 }
  0xb8   : > { %2457 = vmatprep.mubr.bf16.mxu0 %v7362_v45 }
  0xba   : > { %3210 = vmatmul.mubr.bf16.gmra.mrb[84].mxu1 %v7340_v42  ;;  %v7488_v42 = vld [vmem:[%s9872_s1 + $0x508] ss:$16 sps:$4 sm:$0xff]  }
  0xbb   : > { %3219 = vmatprep.mubr.bf16.mxu1 %v7350_v43 }
  0xbf   : > { %2458 = vmatmul.mubr.bf16.gmra.mrb[60].mxu0 %v7364_v46 }
  0xc0   : > { %2500 = vmatprep.mubr.bf16.mxu0 %v7376_v47 }
  0xc2   : > { %3220 = vmatmul.mubr.bf16.gmra.mrb[88].mxu1 %v7352_v44  ;;  %v7493_v44 = vld [vmem:[%s9872_s1 + $0x52c] ss:$16 sps:$4 sm:$0xff]  }
  0xc3   : > { %3229 = vmatprep.mubr.bf16.mxu1 %v7362_v45  ;;  %v7461_v45 = vld [vmem:[%s9872_s1 + $0x560] ss:$16 sps:$4 sm:$0xff]  }
  0xc7   : > { %2501 = vmatmul.mubr.bf16.vlgmr.msra.gmra.mrb[0].mxu0 %v7374_v48 }
  0xc8   : > { %2662 = vmatpush1.bf16.msra.mxu0 %v7377_v49  ;;  %2510 = vmatprep.mubr.bf16.mxu0 %v7386_v50  ;;  %v7502_v49 = vld [vmem:[%s9872_s1 + $0x54c] ss:$16 sps:$4 sm:$0xff]  }
  0xc9   : > { %2663 = vmatprep.subr.bf16.mxu0 %v7391_v51  ;;  %v7422_v51 = vld [vmem:[%s7920_s16 + $0x194] ss:$28 sps:$4 sm:$0xff]  }
  0xca   : > { %3230 = vmatmul.mubr.bf16.gmra.mrb[92].mxu1 %v7364_v46  ;;  %v7475_v46 = vld [vmem:[%s9872_s1 + $0x584] ss:$16 sps:$4 sm:$0xff]  }
  0xcb   : > { %3272 = vmatprep.mubr.bf16.mxu1 %v7376_v47  ;;  %v7491_v47 = vld [vmem:[%s9872_s1 + $0x528] ss:$16 sps:$4 sm:$0xff]  }
  0xcc   : > { %2664 = vmatpush1.bf16.msra.mxu0 %v7389_v52 }
  0xcd   : > { %2665 = vmatprep.subr.bf16.mxu0 %v7397_v54 }
  0xcf   : > { %2511 = vmatmul.mubr.bf16.gmra.mrb[4].mxu0 %v7388_v53 }
  0xd0   : > { %2520 = vmatprep.mubr.bf16.mxu0 %v7392_v55  ;;  %2666 = vmatpush1.bf16.msra.mxu0 %v7395_v56  ;;  %v7500_v56 = vld [vmem:[%s9872_s1 + $0x548] ss:$16 sps:$4 sm:$0xff]  }
  0xd1   : > { %2667 = vmatprep.subr.bf16.mxu0 %v7403_v57 }
  0xd2   : > { %3273 = vmatmul.mubr.bf16.vlgmr.msra.gmra.mrb[32].mxu1 %v7374_v48  ;;  %v7418_v48 = vld [vmem:[%s7920_s16 + $0x158] ss:$28 sps:$4 sm:$0xff]  }
  0xd3   : > { %3282 = vmatprep.mubr.bf16.mxu1 %v7386_v50  ;;  %3434 = vmatpush1.bf16.msra.mxu1 %v7440_v58  ;;  %v7505_v58 = vld [vmem:[%s9872_s1 + $0x56c] ss:$16 sps:$4 sm:$0xff]  }
  0xd4   : > { %3435 = vmatprep.subr.bf16.mxu1 %v7445_v59  ;;  %2668 = vmatpush1.bf16.msra.mxu0 %v7401_v60  ;;  %v7485_v59 = vld [vmem:[%s9872_s1 + $0x5a0] ss:$16 sps:$4 sm:$0xff]   ;;  %v7499_v60 = vld [vmem:[%s9872_s1 + $0x5c4] ss:$16 sps:$4 sm:$0xff]  }
  0xd5   : > { %2669 = vmatprep.subr.bf16.mxu0 %v7409_v61  ;;  %v7503_v61 = vld [vmem:[%s9872_s1 + $0x568] ss:$16 sps:$4 sm:$0xff]  }
  0xd7   : > { %3436 = vmatpush1.bf16.msra.mxu1 %v7443_v62  ;;  %2521 = vmatmul.mubr.bf16.gmra.mrb[8].mxu0 %v7394_v63  ;;  %v7424_v62 = vld [vmem:[%s7920_s16 + $0x190] ss:$28 sps:$4 sm:$0xff]  }
  0xd8   : > { %3437 = vmatprep.subr.bf16.mxu1 %v7454_v0  ;;  %2530 = vmatprep.mubr.bf16.mxu0 %v7398_v1 }
  0xd9   : > { %2670 = vmatpush1.bf16.msra.mxu0 %v7407_v3 }
  0xda   : > { %3283 = vmatmul.mubr.bf16.gmra.mrb[36].mxu1 %v7388_v53  ;;  %2671 = vmatprep.subr.bf16.mxu0 %v7415_v4  ;;  %v7473_v53 = vld [vmem:[%s9872_s1 + $0x580] ss:$16 sps:$4 sm:$0xff]  }
  0xdb   : > { %3292 = vmatprep.mubr.bf16.mxu1 %v7392_v55  ;;  %3438 = vmatpush1.bf16.msra.mxu1 %v7452_v5  ;;  %v7487_v55 = vld [vmem:[%s9872_s1 + $0x5a4] ss:$16 sps:$4 sm:$0xff]   ;;  %v7497_v4 = vld [vmem:[%s9872_s1 + $0x5c0] ss:$16 sps:$4 sm:$0xff]  }
  0xdc   : > { %3439 = vmatprep.subr.bf16.mxu1 %v7457_v6  ;;  %v7511_v6 = vld [vmem:[%s9872_s1 + $0x5e4] ss:$16 sps:$4 sm:$0xff]  }
  0xdd   : > { %2672 = vmatpush1.bf16.msra.mxu0 %v7413_v7  ;;  %v7512_v7 = vld [vmem:[%s9872_s1 + $0x588] ss:$16 sps:$4 sm:$0xff]  }
  0xde   : > { %2673 = vmatprep.subr.bf16.mxu0 %v7421_v8 }
  0xdf   : > { %3440 = vmatpush1.bf16.msra.mxu1 %v7455_v9  ;;  %2531 = vmatmul.mubr.bf16.gmra.mrb[12].mxu0 %v7400_v10  ;;  %v7517_v9 = vld [vmem:[%s9872_s1 + $0x5ac] ss:$16 sps:$4 sm:$0xff]  }
  0xe0   : > { %3441 = vmatprep.subr.bf16.mxu1 %v7466_v11  ;;  %2540 = vmatprep.mubr.bf16.mxu0 %v7404_v12  ;;  %v7515_v11 = vld [vmem:[%s9872_s1 + $0x5a8] ss:$16 sps:$4 sm:$0xff]  }
  0xe1   : > { %2674 = vmatpush1.bf16.msra.mxu0 %v7419_v13  ;;  %v7523_v13 = vld [vmem:[%s9872_s1 + $0x5cc] ss:$16 sps:$4 sm:$0xff]  }
  0xe2   : > { %3293 = vmatmul.mubr.bf16.gmra.mrb[40].mxu1 %v7394_v63  ;;  %2675 = vmatprep.subr.bf16.mxu0 %v7427_v14  ;;  %v7514_v63 = vld [vmem:[%s9872_s1 + $0x58c] ss:$16 sps:$4 sm:$0xff]  }
  0xe3   : > { %3302 = vmatprep.mubr.bf16.mxu1 %v7398_v1  ;;  %3442 = vmatpush1.bf16.msra.mxu1 %v7464_v15  ;;  %v7428_v1 = vld [vmem:[%s7920_s16 + $0x1cc] ss:$28 sps:$4 sm:$0xff]   ;;  %v7434_v15 = vld [vmem:[%s7920_s16 + $0x204] ss:$28 sps:$4 sm:$0xff]  }
  0xe4   : > { %3443 = vmatprep.subr.bf16.mxu1 %v7469_v16 }
  0xe5   : > { %v8441_v24 = vpop.f32.mrb[0].mxu1  ;;  %2676 = vmatpush1.bf16.msra.mxu0 %v7425_v17 }
  0xe6   : > { %v8449_v27 = vpop.f32.mrb[1].mxu1  ;;  %2677 = vmatprep.subr.bf16.mxu0 %v7433_v18  ;;  %v7806_v18 = vld [vmem:[%s9872_s1 + $0x604] ss:$16 sps:$4 sm:$0xff]  }
  0xe7   : > { %v8454_v29 = vpop.f32.mrb[2].mxu1  ;;  %3444 = vmatpush1.bf16.msra.mxu1 %v7467_v19  ;;  %2541 = vmatmul.mubr.bf16.gmra.mrb[16].mxu0 %v7406_v20  ;;  %v7521_v19 = vld [vmem:[%s9872_s1 + $0x5c8] ss:$16 sps:$4 sm:$0xff]  }
  0xe8   : > { %v8456_v30 = vpop.f32.mrb[3].mxu1  ;;  %3445 = vmatprep.subr.bf16.mxu1 %v7478_v21  ;;  %2550 = vmatprep.mubr.bf16.mxu0 %v7410_v22  ;;  %v7526_v21 = vld [vmem:[%s9872_s1 + $0x5ec] ss:$16 sps:$4 sm:$0xff]  }
  0xe9   : > { %2678 = vmatpush1.bf16.msra.mxu0 %v7431_v23  ;;  %v7436_v23 = vld [vmem:[%s7920_s16 + $0x200] ss:$28 sps:$4 sm:$0xff]  }
  0xea   : > { %3303 = vmatmul.mubr.bf16.gmra.mrb[44].mxu1 %v7400_v10  ;;  %2679 = vmatprep.subr.bf16.mxu0 %v7439_v25  ;;  %v7509_v10 = vld [vmem:[%s9872_s1 + $0x5e0] ss:$16 sps:$4 sm:$0xff]  }
  0xeb   : > { %3312 = vmatprep.mubr.bf16.mxu1 %v7404_v12  ;;  %3446 = vmatpush1.bf16.msra.mxu1 %v7476_v26  ;;  %v7430_v12 = vld [vmem:[%s7920_s16 + $0x1c8] ss:$28 sps:$4 sm:$0xff]   ;;  %v7446_v26 = vld [vmem:[%s7920_s16 + $0x23c] ss:$28 sps:$4 sm:$0xff]  }
  0xec   : > { %3447 = vmatprep.subr.bf16.mxu1 %v7481_v28 }
  0xed   : > { %v8472_v37 = vpop.f32.mrb[4].mxu1  ;;  %2680 = vmatpush1.bf16.msra.mxu0 %v7437_v31 }
  0xee   : > { %v8474_v38 = vpop.f32.mrb[5].mxu1  ;;  %2681 = vmatprep.subr.bf16.mxu0 %v7451_v32 }
  0xef   : > { %v8479_v40 = vpop.f32.mrb[6].mxu1  ;;  %3448 = vmatpush1.bf16.msra.mxu1 %v7479_v33  ;;  %2551 = vmatmul.mubr.bf16.gmra.mrb[20].mxu0 %v7412_v34  ;;  %v7448_v33 = vld [vmem:[%s7920_s16 + $0x238] ss:$28 sps:$4 sm:$0xff]  }
  0xf0   : > { %v8487_v43 = vpop.f32.mrb[7].mxu1  ;;  %3449 = vmatprep.subr.bf16.mxu1 %v7490_v35  ;;  %2560 = vmatprep.mubr.bf16.mxu0 %v7416_v36  ;;  %v7458_v35 = vld [vmem:[%s7920_s16 + $0x274] ss:$28 sps:$4 sm:$0xff]  }
  0xf1   : > { %2682 = vmatpush1.bf16.msra.mxu0 %v7449_v39 }
  0xf2   : > { %3313 = vmatmul.mubr.bf16.gmra.mrb[48].mxu1 %v7406_v20  ;;  %2683 = vmatprep.subr.bf16.mxu0 %v7463_v41 }
  0xf3   : > { %3322 = vmatprep.mubr.bf16.mxu1 %v7410_v22  ;;  %3450 = vmatpush1.bf16.msra.mxu1 %v7488_v42  ;;  %v7524_v22 = vld [vmem:[%s9872_s1 + $0x5e8] ss:$16 sps:$4 sm:$0xff]   ;;  %v7460_v42 = vld [vmem:[%s7920_s16 + $0x270] ss:$28 sps:$4 sm:$0xff]  }
  0xf4   : > { %3451 = vmatprep.subr.bf16.mxu1 %v7493_v44 }
  0xf5   : > { %v8505_v50 = vpop.f32.mrb[8].mxu1  ;;  %2684 = vmatpush1.bf16.msra.mxu0 %v7461_v45  ;;  %v7470_v45 = vld [vmem:[%s7920_s16 + $0x2ac] ss:$28 sps:$4 sm:$0xff]  }
  0xf6   : > { %v8508_v52 = vpop.f32.mrb[9].mxu1  ;;  %2685 = vmatprep.subr.bf16.mxu0 %v7475_v46 }
  0xf7   : > { %v8513_v54 = vpop.f32.mrb[10].mxu1  ;;  %3452 = vmatpush1.bf16.msra.mxu1 %v7491_v47  ;;  %2561 = vmatmul.mubr.bf16.gmra.mrb[24].mxu0 %v7418_v48 }
  0xf8   : > { %v8521_v57 = vpop.f32.mrb[11].mxu1  ;;  %3453 = vmatprep.subr.bf16.mxu1 %v7502_v49  ;;  %2570 = vmatprep.mubr.bf16.mxu0 %v7422_v51  ;;  %v7472_v49 = vld [vmem:[%s7920_s16 + $0x2a8] ss:$28 sps:$4 sm:$0xff]  }
  0xf9   : > { %2686 = vmatpush1.bf16.msra.mxu0 %v7473_v53  ;;  %v7484_v53 = vld [vmem:[%s7920_s16 + $0x2e0] ss:$28 sps:$4 sm:$0xff]  }
  0xfa   : > { %3323 = vmatmul.mubr.bf16.gmra.mrb[52].mxu1 %v7412_v34  ;;  %2687 = vmatprep.subr.bf16.mxu0 %v7487_v55  ;;  %v7494_v55 = vld [vmem:[%s7920_s16 + $0x31c] ss:$28 sps:$4 sm:$0xff]  }
  0xfb   : > { %3332 = vmatprep.mubr.bf16.mxu1 %v7416_v36  ;;  %3454 = vmatpush1.bf16.msra.mxu1 %v7500_v56  ;;  %v7496_v56 = vld [vmem:[%s7920_s16 + $0x318] ss:$28 sps:$4 sm:$0xff]  }
  0xfc   : > { %3455 = vmatprep.subr.bf16.mxu1 %v7505_v58  ;;  %v7506_v58 = vld [vmem:[%s7920_s16 + $0x354] ss:$28 sps:$4 sm:$0xff]  }
  0xfd   : > { %v8539_v0 = vpop.f32.mrb[12].mxu1  ;;  %2688 = vmatpush1.bf16.msra.mxu0 %v7485_v59  ;;  %v7508_v59 = vld [vmem:[%s7920_s16 + $0x350] ss:$28 sps:$4 sm:$0xff]  }
  0xfe   : > { %v8542_v3 = vpop.f32.mrb[13].mxu1  ;;  %2689 = vmatprep.subr.bf16.mxu0 %v7499_v60  ;;  %v7520_v60 = vld [vmem:[%s7920_s16 + $0x14] ss:$28 sps:$4 sm:$0xff]  }
  0xff   : > { %v8547_v5 = vpop.f32.mrb[14].mxu1  ;;  %3456 = vmatpush1.bf16.msra.mxu1 %v7503_v61  ;;  %2571 = vmatmul.mubr.bf16.gmra.mrb[28].mxu0 %v7424_v62  ;;  %v7518_v61 = vld [vmem:[%s7920_s16 + $0x10] ss:$28 sps:$4 sm:$0xff]  }
 0x100   : > { %v8555_v8 = vpop.f32.mrb[15].mxu1  ;;  %3457 = vmatprep.subr.bf16.mxu1 %v7514_v63  ;;  %2580 = vmatprep.mubr.bf16.mxu0 %v7428_v1  ;;  %v7807_v63 = vld [vmem:[%s9872_s1 + $0x600] ss:$16 sps:$4 sm:$0xff]  }
 0x101   : > { %2690 = vmatpush1.bf16.msra.mxu0 %v7497_v4  ;;  %v7529_v4 = vld [vmem:[%s7920_s16 + $0x48] ss:$28 sps:$4 sm:$0xff]  }
 0x102   : > { %3333 = vmatmul.mubr.bf16.gmra.mrb[56].mxu1 %v7418_v48  ;;  %2691 = vmatprep.subr.bf16.mxu0 %v7511_v6  ;;  %v7530_v6 = vld [vmem:[%s7920_s16 + $0x84] ss:$28 sps:$4 sm:$0xff]  }
 0x103   : > { %3342 = vmatprep.mubr.bf16.mxu1 %v7422_v51  ;;  %3458 = vmatpush1.bf16.msra.mxu1 %v7512_v7  ;;  %v7482_v51 = vld [vmem:[%s7920_s16 + $0x2e4] ss:$28 sps:$4 sm:$0xff]   ;;  %v7573_v7 = vld [vmem:[%s9872_s1 + $0x608] ss:$16 sps:$4 sm:$0xff]  }
 0x104   : > { %3459 = vmatprep.subr.bf16.mxu1 %v7517_v9  ;;  %v7532_v9 = vld [vmem:[%s7920_s16 + $0x80] ss:$28 sps:$4 sm:$0xff]  }
 0x105   : > { %v8570_v14 = vpop.f32.mrb[16].mxu1  ;;  %2692 = vmatpush1.bf16.msra.mxu0 %v7509_v10  ;;  %v7533_v10 = vld [vmem:[%s7920_s16 + $0xbc] ss:$28 sps:$4 sm:$0xff]  }
 0x106   : > { %v8573_v16 = vpop.f32.mrb[17].mxu1  ;;  %2854 = vmatprep.subr.bf16.mxu0 %v7806_v18  ;;  %v7541_v18 = vld [vmem:[%s7920_s16 + $0x128] ss:$28 sps:$4 sm:$0xff]  }
 0x107   : > { %v8575_v17 = vpop.f32.mrb[18].mxu1  ;;  %3460 = vmatpush1.bf16.msra.mxu1 %v7515_v11  ;;  %2581 = vmatmul.mubr.bf16.gmra.mrb[32].mxu0 %v7430_v12  ;;  %v7535_v11 = vld [vmem:[%s7920_s16 + $0xb8] ss:$28 sps:$4 sm:$0xff]  }
 0x108   : > { %v8583_v20 = vpop.f32.mrb[19].mxu1  ;;  %3461 = vmatprep.subr.bf16.mxu1 %v7523_v13  ;;  %2590 = vmatprep.mubr.bf16.mxu0 %v7434_v15  ;;  %v7538_v13 = vld [vmem:[%s7920_s16 + $0xf0] ss:$28 sps:$4 sm:$0xff]  }
 0x10a   : > { %3343 = vmatmul.mubr.bf16.gmra.mrb[60].mxu1 %v7424_v62  ;;  %v7527_v62 = vld [vmem:[%s7920_s16 + $0x4c] ss:$28 sps:$4 sm:$0xff]  }
 0x10b   : > { %3352 = vmatprep.mubr.bf16.mxu1 %v7428_v1  ;;  %3462 = vmatpush1.bf16.msra.mxu1 %v7521_v19  ;;  %v7575_v1 = vld [vmem:[%s9872_s1 + $0x60c] ss:$16 sps:$4 sm:$0xff]   ;;  %v7542_v19 = vld [vmem:[%s7920_s16 + $0x164] ss:$28 sps:$4 sm:$0xff]  }
 0x10c   : > { %3463 = vmatprep.subr.bf16.mxu1 %v7526_v21  ;;  %v7544_v21 = vld [vmem:[%s7920_s16 + $0x160] ss:$28 sps:$4 sm:$0xff]  }
 0x10d   : > { %v8592_v25 = vpop.f32.mrb[20].mxu1 }
 0x10e   : > { %v8595_v28 = vpop.f32.mrb[21].mxu1 }
 0x10f   : > { %v8597_v31 = vpop.f32.mrb[22].mxu1  ;;  %3464 = vmatpush1.bf16.msra.mxu1 %v7524_v22  ;;  %2591 = vmatmul.mubr.bf16.gmra.mrb[36].mxu0 %v7436_v23  ;;  %v7545_v22 = vld [vmem:[%s7920_s16 + $0x19c] ss:$28 sps:$4 sm:$0xff]  }
 0x110   : > { %v8599_v32 = vpop.f32.mrb[23].mxu1  ;;  %2600 = vmatprep.mubr.bf16.mxu0 %v7446_v26  ;;  %3626 = vmatprep.subr.bf16.mxu1 %v7575_v1  ;;  %v7572_v1 = vld [vmem:[%s7920_s16 + $0x18] ss:$28 sps:$4 sm:$0xff]  }
 0x112   : > { %3353 = vmatmul.mubr.bf16.gmra.mrb[64].mxu1 %v7430_v12  ;;  %v7536_v12 = vld [vmem:[%s7920_s16 + $0xf4] ss:$28 sps:$4 sm:$0xff]  }
 0x113   : > { %3362 = vmatprep.mubr.bf16.mxu1 %v7434_v15  ;;  %v7539_v15 = vld [vmem:[%s7920_s16 + $0x12c] ss:$28 sps:$4 sm:$0xff]  }
 0x115   : > { %v8602_v34 = vpop.f32.mrb[24].mxu1 }
 0x116   : > { %v8605_v36 = vpop.f32.mrb[25].mxu1 }
 0x117   : > { %v8607_v39 = vpop.f32.mrb[26].mxu1  ;;  %2601 = vmatmul.mubr.bf16.gmra.mrb[40].mxu0 %v7448_v33 }
 0x118   : > { %v8609_v41 = vpop.f32.mrb[27].mxu1  ;;  %2610 = vmatprep.mubr.bf16.mxu0 %v7458_v35 }
 0x11a   : > { %3363 = vmatmul.mubr.bf16.gmra.mrb[68].mxu1 %v7436_v23  ;;  %v7547_v23 = vld [vmem:[%s7920_s16 + $0x198] ss:$28 sps:$4 sm:$0xff]  }
 0x11b   : > { %3372 = vmatprep.mubr.bf16.mxu1 %v7446_v26  ;;  %v7548_v26 = vld [vmem:[%s7920_s16 + $0x1d4] ss:$28 sps:$4 sm:$0xff]  }
 0x11d   : > { %v8612_v44 = vpop.f32.mrb[28].mxu1 }
 0x11e   : > { %v8615_v46 = vpop.f32.mrb[29].mxu1 }
 0x11f   : > { %v8617_v47 = vpop.f32.mrb[30].mxu1  ;;  %2611 = vmatmul.mubr.bf16.gmra.mrb[44].mxu0 %v7460_v42 }
 0x120   : > { %v8619_v48 = vpop.f32.mrb[31].mxu1  ;;  %2620 = vmatprep.mubr.bf16.mxu0 %v7470_v45 }
 0x122   : > { %3373 = vmatmul.mubr.bf16.gmra.mrb[72].mxu1 %v7448_v33  ;;  %v7550_v33 = vld [vmem:[%s7920_s16 + $0x1d0] ss:$28 sps:$4 sm:$0xff]  }
 0x123   : > { %3382 = vmatprep.mubr.bf16.mxu1 %v7458_v35  ;;  %v7551_v35 = vld [vmem:[%s7920_s16 + $0x20c] ss:$28 sps:$4 sm:$0xff]  }
 0x127   : > { %2621 = vmatmul.mubr.bf16.gmra.mrb[48].mxu0 %v7472_v49 }
 0x128   : > { %2630 = vmatprep.mubr.bf16.mxu0 %v7482_v51 }
 0x12a   : > { %3383 = vmatmul.mubr.bf16.gmra.mrb[76].mxu1 %v7460_v42  ;;  %v7553_v42 = vld [vmem:[%s7920_s16 + $0x208] ss:$28 sps:$4 sm:$0xff]  }
 0x12b   : > { %3392 = vmatprep.mubr.bf16.mxu1 %v7470_v45  ;;  %v7554_v45 = vld [vmem:[%s7920_s16 + $0x244] ss:$28 sps:$4 sm:$0xff]  }
 0x12f   : > { %2631 = vmatmul.mubr.bf16.gmra.mrb[52].mxu0 %v7484_v53 }
 0x130   : > { %2640 = vmatprep.mubr.bf16.mxu0 %v7494_v55 }
 0x132   : > { %3393 = vmatmul.mubr.bf16.gmra.mrb[80].mxu1 %v7472_v49  ;;  %v7556_v49 = vld [vmem:[%s7920_s16 + $0x240] ss:$28 sps:$4 sm:$0xff]  }
 0x133   : > { %3402 = vmatprep.mubr.bf16.mxu1 %v7482_v51  ;;  %v7557_v51 = vld [vmem:[%s7920_s16 + $0x27c] ss:$28 sps:$4 sm:$0xff]  }
 0x137   : > { %2641 = vmatmul.mubr.bf16.gmra.mrb[56].mxu0 %v7496_v56 }
 0x138   : > { %2650 = vmatprep.mubr.bf16.mxu0 %v7506_v58 }
 0x13a   : > { %3403 = vmatmul.mubr.bf16.gmra.mrb[84].mxu1 %v7484_v53  ;;  %v7559_v53 = vld [vmem:[%s7920_s16 + $0x278] ss:$28 sps:$4 sm:$0xff]  }
 0x13b   : > { %3412 = vmatprep.mubr.bf16.mxu1 %v7494_v55  ;;  %v7560_v55 = vld [vmem:[%s7920_s16 + $0x2b4] ss:$28 sps:$4 sm:$0xff]  }
 0x13f   : > { %2651 = vmatmul.mubr.bf16.gmra.mrb[60].mxu0 %v7508_v59 }
 0x140   : > { %2693 = vmatprep.mubr.bf16.mxu0 %v7520_v60 }
 0x142   : > { %3413 = vmatmul.mubr.bf16.gmra.mrb[88].mxu1 %v7496_v56  ;;  %v7562_v56 = vld [vmem:[%s7920_s16 + $0x2b0] ss:$28 sps:$4 sm:$0xff]  }
 0x143   : > { %3422 = vmatprep.mubr.bf16.mxu1 %v7506_v58  ;;  %v7563_v58 = vld [vmem:[%s7920_s16 + $0x2ec] ss:$28 sps:$4 sm:$0xff]  }
 0x147   : > { %2694 = vmatmul.mubr.bf16.vlgmr.msra.gmra.mrb[0].mxu0 %v7518_v61 }
 0x148   : > { %2855 = vmatpush1.bf16.msra.mxu0 %v7807_v63  ;;  %2703 = vmatprep.mubr.bf16.mxu0 %v7527_v62  ;;  %v7571_v63 = vld [vmem:[%s7920_s16 + $0x358] ss:$28 sps:$4 sm:$0xff]  }
 0x14a   : > { %3423 = vmatmul.mubr.bf16.gmra.mrb[92].mxu1 %v7508_v59  ;;  %v7565_v59 = vld [vmem:[%s7920_s16 + $0x2e8] ss:$28 sps:$4 sm:$0xff]  }
 0x14b   : > { %3465 = vmatprep.mubr.bf16.mxu1 %v7520_v60  ;;  %v7566_v60 = vld [vmem:[%s7920_s16 + $0x324] ss:$28 sps:$4 sm:$0xff]  }
 0x14f   : > { %2704 = vmatmul.mubr.bf16.gmra.mrb[4].mxu0 %v7529_v4 }
 0x150   : > { %2713 = vmatprep.mubr.bf16.mxu0 %v7530_v6 }
 0x152   : > { %3466 = vmatmul.mubr.bf16.vlgmr.msra.gmra.mrb[32].mxu1 %v7518_v61  ;;  %v7568_v61 = vld [vmem:[%s7920_s16 + $0x320] ss:$28 sps:$4 sm:$0xff]  }
 0x153   : > { %3475 = vmatprep.mubr.bf16.mxu1 %v7527_v62  ;;  %3627 = vmatpush1.bf16.msra.mxu1 %v7573_v7  ;;  %v7569_v62 = vld [vmem:[%s7920_s16 + $0x35c] ss:$28 sps:$4 sm:$0xff]  }
 0x154   : > { %5013 = vmatprep.subr.bf16.mxu1 %v7824_v2  ;;  %v7578_v7 = vld [vmem:[%s7920_s16 + $0xc0] ss:$28 sps:$4 sm:$0xff]  }
 0x157   : > { %2714 = vmatmul.mubr.bf16.gmra.mrb[8].mxu0 %v7532_v9 }
 0x158   : > { %2723 = vmatprep.mubr.bf16.mxu0 %v7533_v10 }
 0x15a   : > { %3476 = vmatmul.mubr.bf16.gmra.mrb[36].mxu1 %v7529_v4  ;;  %v7576_v4 = vld [vmem:[%s7920_s16 + $0x50] ss:$28 sps:$4 sm:$0xff]  }
 0x15b   : > { %3485 = vmatprep.mubr.bf16.mxu1 %v7530_v6  ;;  %v7577_v6 = vld [vmem:[%s7920_s16 + $0x88] ss:$28 sps:$4 sm:$0xff]  }
 0x15f   : > { %2724 = vmatmul.mubr.bf16.gmra.mrb[12].mxu0 %v7535_v11 }
 0x160   : > { %2733 = vmatprep.mubr.bf16.mxu0 %v7536_v12 }
 0x162   : > { %3486 = vmatmul.mubr.bf16.gmra.mrb[40].mxu1 %v7532_v9  ;;  %v7579_v9 = vld [vmem:[%s7920_s16 + $0xf8] ss:$28 sps:$4 sm:$0xff]  }
 0x163   : > { %3495 = vmatprep.mubr.bf16.mxu1 %v7533_v10  ;;  %v7585_v10 = vld [vmem:[%s9874_s3 + $0x4] ss:$8 sps:$4 sm:$0xff]  }
 0x164   : > { %4371 = vmatprep.subr.bf16.mxu0 %v7585_v10  ;;  %v7624_v10 = vld [vmem:[%s9874_s3 + $0xd4] ss:$8 sps:$4 sm:$0xff]  }
 0x167   : > { %2734 = vmatmul.mubr.bf16.gmra.mrb[16].mxu0 %v7538_v13 }
 0x168   : > { %2743 = vmatprep.mubr.bf16.mxu0 %v7539_v15 }
 0x16a   : > { %3496 = vmatmul.mubr.bf16.gmra.mrb[44].mxu1 %v7535_v11  ;;  %v7583_v11 = vld [vmem:[%s9874_s3] ss:$8 sps:$4 sm:$0xff]  }
 0x16b   : > { %3505 = vmatprep.mubr.bf16.mxu1 %v7536_v12  ;;  %v7588_v12 = vld [vmem:[%s9874_s3 + $0x14] ss:$8 sps:$4 sm:$0xff]  }
 0x16f   : > { %2744 = vmatmul.mubr.bf16.gmra.mrb[20].mxu0 %v7541_v18 }
 0x170   : > { %2753 = vmatprep.mubr.bf16.mxu0 %v7542_v19 }
 0x172   : > { %3506 = vmatmul.mubr.bf16.gmra.mrb[48].mxu1 %v7538_v13  ;;  %v7586_v13 = vld [vmem:[%s9874_s3 + $0x10] ss:$8 sps:$4 sm:$0xff]  }
 0x173   : > { %3515 = vmatprep.mubr.bf16.mxu1 %v7539_v15  ;;  %v7580_v15 = vld [vmem:[%s7920_s16 + $0x130] ss:$28 sps:$4 sm:$0xff]  }
 0x177   : > { %2754 = vmatmul.mubr.bf16.gmra.mrb[24].mxu0 %v7544_v21 }
 0x178   : > { %2763 = vmatprep.mubr.bf16.mxu0 %v7545_v22 }
 0x17a   : > { %3516 = vmatmul.mubr.bf16.gmra.mrb[52].mxu1 %v7541_v18  ;;  %v7591_v18 = vld [vmem:[%s9874_s3 + $0x24] ss:$8 sps:$4 sm:$0xff]  }
 0x17b   : > { %3525 = vmatprep.mubr.bf16.mxu1 %v7542_v19  ;;  %v7589_v19 = vld [vmem:[%s9874_s3 + $0x20] ss:$8 sps:$4 sm:$0xff]  }
 0x17f   : > { %2764 = vmatmul.mubr.bf16.gmra.mrb[28].mxu0 %v7547_v23 }
 0x180   : > { %2773 = vmatprep.mubr.bf16.mxu0 %v7548_v26 }
 0x182   : > { %3526 = vmatmul.mubr.bf16.gmra.mrb[56].mxu1 %v7544_v21  ;;  %v7594_v21 = vld [vmem:[%s9874_s3 + $0x34] ss:$8 sps:$4 sm:$0xff]  }
 0x183   : > { %3535 = vmatprep.mubr.bf16.mxu1 %v7545_v22  ;;  %v7592_v22 = vld [vmem:[%s9874_s3 + $0x30] ss:$8 sps:$4 sm:$0xff]  }
 0x187   : > { %2774 = vmatmul.mubr.bf16.gmra.mrb[32].mxu0 %v7550_v33 }
 0x188   : > { %2783 = vmatprep.mubr.bf16.mxu0 %v7551_v35 }
 0x18a   : > { %3536 = vmatmul.mubr.bf16.gmra.mrb[60].mxu1 %v7547_v23  ;;  %v7581_v23 = vld [vmem:[%s7920_s16 + $0x168] ss:$28 sps:$4 sm:$0xff]  }
 0x18b   : > { %3545 = vmatprep.mubr.bf16.mxu1 %v7548_v26  ;;  %v7597_v26 = vld [vmem:[%s9874_s3 + $0x44] ss:$8 sps:$4 sm:$0xff]  }
 0x18f   : > { %2784 = vmatmul.mubr.bf16.gmra.mrb[36].mxu0 %v7553_v42 }
 0x190   : > { %2793 = vmatprep.mubr.bf16.mxu0 %v7554_v45 }
 0x192   : > { %3546 = vmatmul.mubr.bf16.gmra.mrb[64].mxu1 %v7550_v33  ;;  %v7595_v33 = vld [vmem:[%s9874_s3 + $0x40] ss:$8 sps:$4 sm:$0xff]  }
 0x193   : > { %3555 = vmatprep.mubr.bf16.mxu1 %v7551_v35  ;;  %v7600_v35 = vld [vmem:[%s9874_s3 + $0x54] ss:$8 sps:$4 sm:$0xff]  }
 0x197   : > { %2794 = vmatmul.mubr.bf16.gmra.mrb[40].mxu0 %v7556_v49 }
 0x198   : > { %2803 = vmatprep.mubr.bf16.mxu0 %v7557_v51 }
 0x19a   : > { %3556 = vmatmul.mubr.bf16.gmra.mrb[68].mxu1 %v7553_v42  ;;  %v7598_v42 = vld [vmem:[%s9874_s3 + $0x50] ss:$8 sps:$4 sm:$0xff]  }
 0x19b   : > { %3565 = vmatprep.mubr.bf16.mxu1 %v7554_v45  ;;  %v7582_v45 = vld [vmem:[%s7920_s16 + $0x1a0] ss:$28 sps:$4 sm:$0xff]  }
 0x19f   : > { %2804 = vmatmul.mubr.bf16.gmra.mrb[44].mxu0 %v7559_v53 }
 0x1a0   : > { %2813 = vmatprep.mubr.bf16.mxu0 %v7560_v55 }
 0x1a2   : > { %3566 = vmatmul.mubr.bf16.gmra.mrb[72].mxu1 %v7556_v49  ;;  %v7603_v49 = vld [vmem:[%s9874_s3 + $0x64] ss:$8 sps:$4 sm:$0xff]  }
 0x1a3   : > { %3575 = vmatprep.mubr.bf16.mxu1 %v7557_v51  ;;  %v7601_v51 = vld [vmem:[%s9874_s3 + $0x60] ss:$8 sps:$4 sm:$0xff]  }
 0x1a7   : > { %2814 = vmatmul.mubr.bf16.gmra.mrb[48].mxu0 %v7562_v56 }
 0x1a8   : > { %2823 = vmatprep.mubr.bf16.mxu0 %v7563_v58 }
 0x1aa   : > { %3576 = vmatmul.mubr.bf16.gmra.mrb[76].mxu1 %v7559_v53  ;;  %v7606_v53 = vld [vmem:[%s9874_s3 + $0x74] ss:$8 sps:$4 sm:$0xff]  }
 0x1ab   : > { %3585 = vmatprep.mubr.bf16.mxu1 %v7560_v55  ;;  %v7604_v55 = vld [vmem:[%s9874_s3 + $0x70] ss:$8 sps:$4 sm:$0xff]  }
 0x1af   : > { %2824 = vmatmul.mubr.bf16.gmra.mrb[52].mxu0 %v7565_v59 }
 0x1b0   : > { %2833 = vmatprep.mubr.bf16.mxu0 %v7566_v60 }
 0x1b2   : > { %3586 = vmatmul.mubr.bf16.gmra.mrb[80].mxu1 %v7562_v56  ;;  %v7609_v56 = vld [vmem:[%s9874_s3 + $0x84] ss:$8 sps:$4 sm:$0xff]  }
 0x1b3   : > { %3595 = vmatprep.mubr.bf16.mxu1 %v7563_v58  ;;  %v7607_v58 = vld [vmem:[%s9874_s3 + $0x80] ss:$8 sps:$4 sm:$0xff]  }
 0x1b7   : > { %2834 = vmatmul.mubr.bf16.gmra.mrb[56].mxu0 %v7568_v61 }
 0x1b8   : > { %2843 = vmatprep.mubr.bf16.mxu0 %v7569_v62 }
 0x1ba   : > { %3596 = vmatmul.mubr.bf16.gmra.mrb[84].mxu1 %v7565_v59  ;;  %v7612_v59 = vld [vmem:[%s9874_s3 + $0x94] ss:$8 sps:$4 sm:$0xff]  }
 0x1bb   : > { %3605 = vmatprep.mubr.bf16.mxu1 %v7566_v60  ;;  %v7610_v60 = vld [vmem:[%s9874_s3 + $0x90] ss:$8 sps:$4 sm:$0xff]  }
 0x1bf   : > { %2844 = vmatmul.mubr.bf16.gmra.mrb[60].mxu0 %v7571_v63 }
 0x1c0   : > { %2886 = vmatprep.mubr.bf16.mxu0 %v7824_v2 }
 0x1c2   : > { %3606 = vmatmul.mubr.bf16.gmra.mrb[88].mxu1 %v7568_v61  ;;  %v7615_v61 = vld [vmem:[%s9874_s3 + $0xa4] ss:$8 sps:$4 sm:$0xff]  }
 0x1c3   : > { %3615 = vmatprep.mubr.bf16.mxu1 %v7569_v62  ;;  %v7613_v62 = vld [vmem:[%s9874_s3 + $0xa0] ss:$8 sps:$4 sm:$0xff]  }
 0x1c7   : > { %6253 = vmatmul.mubr.msk.bf16.vlgmr.msra.gmra.mrb[0].mxu0 %vm2226_vm0, %v7572_v1 }
 0x1c8   : > { %2896 = vmatprep.mubr.bf16.mxu0 %v7824_v2  ;;  %4372 = vmatpush1.bf16.msra.mxu0 %v7583_v11  ;;  %v7622_v11 = vld [vmem:[%s9874_s3 + $0xd0] ss:$8 sps:$4 sm:$0xff]  }
 0x1c9   : > { %4373 = vmatprep.subr.bf16.mxu0 %v7588_v12  ;;  %v7627_v12 = vld [vmem:[%s9874_s3 + $0xe4] ss:$8 sps:$4 sm:$0xff]  }
 0x1ca   : > { %3616 = vmatmul.mubr.bf16.gmra.mrb[92].mxu1 %v7571_v63  ;;  %v7808_v63 = vld [vmem:[%s7920_s16 + $0x1d8] ss:$28 sps:$4 sm:$0xff]  }
 0x1cb   : > { %3658 = vmatprep.mubr.bf16.mxu1 %v7824_v2 }
 0x1cc   : > { %4374 = vmatpush1.bf16.msra.mxu0 %v7586_v13  ;;  %v7625_v13 = vld [vmem:[%s9874_s3 + $0xe0] ss:$8 sps:$4 sm:$0xff]  }
 0x1cd   : > { %4375 = vmatprep.subr.bf16.mxu0 %v7591_v18  ;;  %v7630_v18 = vld [vmem:[%s9874_s3 + $0xf4] ss:$8 sps:$4 sm:$0xff]  }
 0x1cf   : > { %6254 = vmatmul.mubr.msk.bf16.gmra.mrb[4].mxu0 %vm2226_vm0, %v7576_v4 }
 0x1d0   : > { %2906 = vmatprep.mubr.bf16.mxu0 %v7824_v2  ;;  %4376 = vmatpush1.bf16.msra.mxu0 %v7589_v19  ;;  %v7628_v19 = vld [vmem:[%s9874_s3 + $0xf0] ss:$8 sps:$4 sm:$0xff]  }
 0x1d1   : > { %4377 = vmatprep.subr.bf16.mxu0 %v7594_v21  ;;  %v7811_v21 = vld [vmem:[%s7920_s16 + $0x280] ss:$28 sps:$4 sm:$0xff]  }
 0x1d2   : > { %6269 = vmatmul.mubr.msk.bf16.vlgmr.msra.gmra.mrb[32].mxu1 %vm2226_vm0, %v7572_v1  ;;  %v7618_v1 = vld [vmem:[%s9874_s3 + $0xb4] ss:$8 sps:$4 sm:$0xff]  }
 0x1d3   : > { %3668 = vmatprep.mubr.bf16.mxu1 %v7824_v2 }
 0x1d4   : > { %4378 = vmatpush1.bf16.msra.mxu0 %v7592_v22  ;;  %v7633_v22 = vld [vmem:[%s9874_s3 + $0x104] ss:$8 sps:$4 sm:$0xff]  }
 0x1d5   : > { %4379 = vmatprep.subr.bf16.mxu0 %v7597_v26  ;;  %v7813_v26 = vld [vmem:[%s7920_s16 + $0x2f0] ss:$28 sps:$4 sm:$0xff]  }
 0x1d7   : > { %6255 = vmatmul.mubr.msk.bf16.gmra.mrb[8].mxu0 %vm2226_vm0, %v7577_v6 }
 0x1d8   : > { %2916 = vmatprep.mubr.bf16.mxu0 %v7824_v2  ;;  %4380 = vmatpush1.bf16.msra.mxu0 %v7595_v33  ;;  %v7814_v33 = vld [vmem:[%s7920_s16 + $0x328] ss:$28 sps:$4 sm:$0xff]  }
 0x1d9   : > { %4381 = vmatprep.subr.bf16.mxu0 %v7600_v35  ;;  %v7815_v35 = vld [vmem:[%s7920_s16 + $0x360] ss:$28 sps:$4 sm:$0xff]  }
 0x1da   : > { %6270 = vmatmul.mubr.msk.bf16.gmra.mrb[36].mxu1 %vm2226_vm0, %v7576_v4  ;;  %v7616_v4 = vld [vmem:[%s9874_s3 + $0xb0] ss:$8 sps:$4 sm:$0xff]  }
 0x1db   : > { %3678 = vmatprep.mubr.bf16.mxu1 %v7824_v2 }
 0x1dc   : > { %4382 = vmatpush1.bf16.msra.mxu0 %v7598_v42  ;;  %v666_v42 = vlaneseq }
 0x1dd   : > { %4383 = vmatprep.subr.bf16.mxu0 %v7603_v49 }
 0x1df   : > { %6256 = vmatmul.mubr.msk.bf16.gmra.mrb[12].mxu0 %vm2226_vm0, %v7578_v7 }
 0x1e0   : > { %2926 = vmatprep.mubr.bf16.mxu0 %v7824_v2  ;;  %4384 = vmatpush1.bf16.msra.mxu0 %v7601_v51  ;;  %v8839_v51 = vld [vmem:[%s9873_s2] sm:$0xf] }
 0x1e1   : > { %4385 = vmatprep.subr.bf16.mxu0 %v7606_v53 }
 0x1e2   : > { %6271 = vmatmul.mubr.msk.bf16.gmra.mrb[40].mxu1 %vm2226_vm0, %v7577_v6  ;;  %v7621_v6 = vld [vmem:[%s9874_s3 + $0xc4] ss:$8 sps:$4 sm:$0xff]  }
 0x1e3   : > { %3688 = vmatprep.mubr.bf16.mxu1 %v7824_v2 }
 0x1e4   : > { %4386 = vmatpush1.bf16.msra.mxu0 %v7604_v55 }
 0x1e5   : > { %4387 = vmatprep.subr.bf16.mxu0 %v7609_v56 }
 0x1e7   : > { %6257 = vmatmul.mubr.msk.bf16.gmra.mrb[16].mxu0 %vm2226_vm0, %v7579_v9 }
 0x1e8   : > { %2936 = vmatprep.mubr.bf16.mxu0 %v7824_v2  ;;  %4388 = vmatpush1.bf16.msra.mxu0 %v7607_v58 }
 0x1e9   : > { %4389 = vmatprep.subr.bf16.mxu0 %v7612_v59 }
 0x1ea   : > { %6272 = vmatmul.mubr.msk.bf16.gmra.mrb[44].mxu1 %vm2226_vm0, %v7578_v7  ;;  %v7619_v7 = vld [vmem:[%s9874_s3 + $0xc0] ss:$8 sps:$4 sm:$0xff]  }
 0x1eb   : > { %3698 = vmatprep.mubr.bf16.mxu1 %v7824_v2 }
 0x1ec   : > { %4390 = vmatpush1.bf16.msra.mxu0 %v7610_v60 }
 0x1ed   : > { %4391 = vmatprep.subr.bf16.mxu0 %v7615_v61 }
 0x1ef   : > { %6258 = vmatmul.mubr.msk.bf16.gmra.mrb[20].mxu0 %vm2226_vm0, %v7580_v15 }
 0x1f0   : > { %2946 = vmatprep.mubr.bf16.mxu0 %v7824_v2  ;;  %4392 = vmatpush1.bf16.msra.mxu0 %v7613_v62 }
 0x1f1   : > { %4393 = vmatprep.subr.bf16.mxu0 %v7618_v1 }
 0x1f2   : > { %6273 = vmatmul.mubr.msk.bf16.gmra.mrb[48].mxu1 %vm2226_vm0, %v7579_v9  ;;  %v7809_v9 = vld [vmem:[%s7920_s16 + $0x210] ss:$28 sps:$4 sm:$0xff]  }
 0x1f3   : > { %3708 = vmatprep.mubr.bf16.mxu1 %v7824_v2 }
 0x1f4   : > { %4394 = vmatpush1.bf16.msra.mxu0 %v7616_v4 }
 0x1f5   : > { %4395 = vmatprep.subr.bf16.mxu0 %v7621_v6 }
 0x1f7   : > { %6259 = vmatmul.mubr.msk.bf16.gmra.mrb[24].mxu0 %vm2226_vm0, %v7581_v23 }
 0x1f8   : > { %2956 = vmatprep.mubr.bf16.mxu0 %v7824_v2  ;;  %4396 = vmatpush1.bf16.msra.mxu0 %v7619_v7 }
 0x1f9   : > { %4397 = vmatprep.subr.bf16.mxu0 %v7624_v10 }
 0x1fa   : > { %6274 = vmatmul.mubr.msk.bf16.gmra.mrb[52].mxu1 %vm2226_vm0, %v7580_v15  ;;  %v7810_v15 = vld [vmem:[%s7920_s16 + $0x248] ss:$28 sps:$4 sm:$0xff]  }
 0x1fb   : > { %3718 = vmatprep.mubr.bf16.mxu1 %v7824_v2 }
 0x1fc   : > { %4398 = vmatpush1.bf16.msra.mxu0 %v7622_v11 }
 0x1fd   : > { %4399 = vmatprep.subr.bf16.mxu0 %v7627_v12 }
 0x1ff   : > { %6260 = vmatmul.mubr.msk.bf16.gmra.mrb[28].mxu0 %vm2226_vm0, %v7582_v45 }
 0x200   : > { %4400 = vmatpush1.bf16.msra.mxu0 %v7625_v13 }
 0x201   : > { %4401 = vmatprep.subr.bf16.mxu0 %v7630_v18 }
 0x202   : > { %6275 = vmatmul.mubr.msk.bf16.gmra.mrb[56].mxu1 %vm2226_vm0, %v7581_v23  ;;  %v7812_v23 = vld [vmem:[%s7920_s16 + $0x2b8] ss:$28 sps:$4 sm:$0xff]  }
 0x203   : > { %3728 = vmatprep.mubr.bf16.mxu1 %v7824_v2 }
 0x204   : > { %4402 = vmatpush1.bf16.msra.mxu0 %v7628_v19 }
 0x205   : > { %4564 = vmatprep.subr.bf16.mxu0 %v7633_v22 }
 0x20a   : > { %6276 = vmatmul.mubr.msk.bf16.gmra.mrb[60].mxu1 %vm2226_vm0, %v7582_v45  ;;  %v8833_v45 = vshrl.u32 %v666_v42, 7 }
 0x20b   : > { %3738 = vmatprep.mubr.bf16.mxu1 %v7824_v2 }
 0x20c   : > { %v668_v49 = vsub.s32 0, %v8833_v45  ;;  %v672_v53 = vsub.s32 1, %v8833_v45 }
 0x20e   : > { %v8845_v55 = vrot.slane %v8839_v51, %v668_v49  ;;  %v8850_v56 = vrot.slane %v8839_v51, %v672_v53 }
 0x212   : > { %6277 = vmatmul.mubr.msk.bf16.gmra.mrb[64].mxu1 %vm2226_vm0, %v7808_v63 }
 0x213   : > { %3748 = vmatprep.mubr.bf16.mxu1 %v7824_v2 }
 0x21a   : > { %6278 = vmatmul.mubr.msk.bf16.gmra.mrb[68].mxu1 %vm2226_vm0, %v7809_v9 }
 0x21b   : > { %3758 = vmatprep.mubr.bf16.mxu1 %v7824_v2 }
 0x222   : > { %6279 = vmatmul.mubr.msk.bf16.gmra.mrb[72].mxu1 %vm2226_vm0, %v7810_v15 }
 0x223   : > { %3768 = vmatprep.mubr.bf16.mxu1 %v7824_v2 }
 0x22a   : > { %6280 = vmatmul.mubr.msk.bf16.gmra.mrb[76].mxu1 %vm2226_vm0, %v7811_v21 }
 0x22b   : > { %3778 = vmatprep.mubr.bf16.mxu1 %v7824_v2 }
 0x232   : > { %6281 = vmatmul.mubr.msk.bf16.gmra.mrb[80].mxu1 %vm2226_vm0, %v7812_v23 }
 0x233   : > { %3788 = vmatprep.mubr.bf16.mxu1 %v7824_v2 }
 0x23a   : > { %6282 = vmatmul.mubr.msk.bf16.gmra.mrb[84].mxu1 %vm2226_vm0, %v7813_v26 }
 0x23b   : > { %3798 = vmatprep.mubr.bf16.mxu1 %v7824_v2 }
 0x242   : > { %6283 = vmatmul.mubr.msk.bf16.gmra.mrb[88].mxu1 %vm2226_vm0, %v7814_v33 }
 0x243   : > { %3808 = vmatprep.mubr.bf16.mxu1 %v7824_v2 }
 0x24a   : > { %6284 = vmatmul.mubr.msk.bf16.gmra.mrb[92].mxu1 %vm2226_vm0, %v7815_v35 }
 0x25a   : > { %v2775_v58 = vpop.f32.mrb[32].mxu0 }
 0x25b   : > { %v6510_v59 = vadd.f32 %v2775_v58, %v8845_v55  ;;  %v2777_v60 = vpop.f32.mrb[33].mxu0 }
 0x25c   : > { %v6512_v61 = vadd.f32 %v2777_v60, %v8850_v56  ;;  %v2779_v62 = vpop.f32.mrb[34].mxu0 }
 0x25d   : > { %v6511_v63 = vadd.f32 %v6510_v59, %v8441_v24  ;;  %v6514_v1 = vadd.f32 %v2779_v62, %v8845_v55  ;;  %v2781_v4 = vpop.f32.mrb[35].mxu0 }
 0x25e   : > { %v6513_v6 = vadd.f32 %v6512_v61, %v8449_v27  ;;  %v6516_v7 = vadd.f32 %v2781_v4, %v8850_v56 }
 0x25f   : > { %v6515_v9 = vadd.f32 %v6514_v1, %v8454_v29  ;;  %v3883_v11 = vmax.f32 %v6511_v63, 0.0 }
 0x260   : > { %v6517_v10 = vadd.f32 %v6516_v7, %v8456_v30  ;;  %v3884_v13 = vmax.f32 %v6513_v6, 0.0 }
 0x261   : > { %v3887_v12 = vmax.f32 %v6515_v9, 0.0 }
 0x262   : > { %v3888_v15 = vmax.f32 %v6517_v10, 0.0  ;;  %v2785_v18 = vpop.f32.mrb[36].mxu0 }
 0x263   : > { %v6518_v19 = vadd.f32 %v2785_v18, %v8845_v55  ;;  %v2787_v21 = vpop.f32.mrb[37].mxu0  ;;  %v8861_v24 = vpack.c.bf16 %v3887_v12, %v3883_v11 }
 0x264   : > { %v6520_v22 = vadd.f32 %v2787_v21, %v8850_v56  ;;  %v2789_v23 = vpop.f32.mrb[38].mxu0  ;;  %v8864_v27 = vpack.c.bf16 %v3888_v15, %v3884_v13 }
 0x265   : > { %v6519_v26 = vadd.f32 %v6518_v19, %v8472_v37  ;;  %v6522_v29 = vadd.f32 %v2789_v23, %v8845_v55  ;;  %v2791_v30 = vpop.f32.mrb[39].mxu0 }
 0x266   : > { %v6521_v33 = vadd.f32 %v6520_v22, %v8474_v38  ;;  %v6524_v35 = vadd.f32 %v2791_v30, %v8850_v56 }
 0x267   : > { %v6523_v42 = vadd.f32 %v6522_v29, %v8479_v40  ;;  %v3891_v59 = vmax.f32 %v6519_v26, 0.0 }
 0x268   : > { %v6525_v58 = vadd.f32 %v6524_v35, %v8487_v43  ;;  %v3892_v61 = vmax.f32 %v6521_v33, 0.0 }
 0x269   : > { %v3895_v60 = vmax.f32 %v6523_v42, 0.0 }
 0x26a   : > { %v3896_v62 = vmax.f32 %v6525_v58, 0.0  ;;  %v2795_v63 = vpop.f32.mrb[40].mxu0 }
 0x26b   : > { %v6526_v1 = vadd.f32 %v2795_v63, %v8845_v55  ;;  %v2797_v4 = vpop.f32.mrb[41].mxu0  ;;  %v8873_v37 = vpack.c.bf16 %v3895_v60, %v3891_v59 }
 0x26c   : > { %v6528_v6 = vadd.f32 %v2797_v4, %v8850_v56  ;;  %v2799_v7 = vpop.f32.mrb[42].mxu0  ;;  %v8876_v38 = vpack.c.bf16 %v3896_v62, %v3892_v61 }
 0x26d   : > { %v6527_v9 = vadd.f32 %v6526_v1, %v8505_v50  ;;  %v6530_v40 = vadd.f32 %v2799_v7, %v8845_v55  ;;  %v2801_v43 = vpop.f32.mrb[43].mxu0 }
 0x26e   : > { %v6529_v10 = vadd.f32 %v6528_v6, %v8508_v52  ;;  %v6532_v11 = vadd.f32 %v2801_v43, %v8850_v56 }
 0x26f   : > { %v6531_v12 = vadd.f32 %v6530_v40, %v8513_v54  ;;  %v3899_v15 = vmax.f32 %v6527_v9, 0.0 }
 0x270   : > { %v6533_v13 = vadd.f32 %v6532_v11, %v8521_v57  ;;  %v3900_v19 = vmax.f32 %v6529_v10, 0.0 }
 0x271   : > { %v3903_v18 = vmax.f32 %v6531_v12, 0.0 }
 0x272   : > { %v3904_v21 = vmax.f32 %v6533_v13, 0.0  ;;  %v2805_v22 = vpop.f32.mrb[44].mxu0 }
 0x273   : > { %v6534_v23 = vadd.f32 %v2805_v22, %v8845_v55  ;;  %v2807_v26 = vpop.f32.mrb[45].mxu0  ;;  %v8885_v50 = vpack.c.bf16 %v3903_v18, %v3899_v15 }
 0x274   : > { %v6536_v29 = vadd.f32 %v2807_v26, %v8850_v56  ;;  %v2809_v30 = vpop.f32.mrb[46].mxu0  ;;  %v8888_v52 = vpack.c.bf16 %v3904_v21, %v3900_v19 }
 0x275   : > { %v6535_v33 = vadd.f32 %v6534_v23, %v8539_v0  ;;  %v6538_v54 = vadd.f32 %v2809_v30, %v8845_v55  ;;  %v2811_v57 = vpop.f32.mrb[47].mxu0 }
 0x276   : > { %v6537_v35 = vadd.f32 %v6536_v29, %v8542_v3  ;;  %v6540_v42 = vadd.f32 %v2811_v57, %v8850_v56 }
 0x277   : > { %v6539_v58 = vadd.f32 %v6538_v54, %v8547_v5  ;;  %v3907_v60 = vmax.f32 %v6535_v33, 0.0 }
 0x278   : > { %v6541_v59 = vadd.f32 %v6540_v42, %v8555_v8  ;;  %v3908_v62 = vmax.f32 %v6537_v35, 0.0 }
 0x279   : > { %v3911_v61 = vmax.f32 %v6539_v58, 0.0 }
 0x27a   : > { %v3912_v63 = vmax.f32 %v6541_v59, 0.0  ;;  %v2815_v1 = vpop.f32.mrb[48].mxu0 }
 0x27b   : > { %v6542_v4 = vadd.f32 %v2815_v1, %v8845_v55  ;;  %v2817_v6 = vpop.f32.mrb[49].mxu0  ;;  %v8897_v0 = vpack.c.bf16 %v3911_v61, %v3907_v60 }
 0x27c   : > { %v6544_v7 = vadd.f32 %v2817_v6, %v8850_v56  ;;  %v2819_v9 = vpop.f32.mrb[50].mxu0  ;;  %v8900_v3 = vpack.c.bf16 %v3912_v63, %v3908_v62 }
 0x27d   : > { %v6543_v40 = vadd.f32 %v6542_v4, %v8570_v14  ;;  %v6546_v5 = vadd.f32 %v2819_v9, %v8845_v55  ;;  %v2821_v8 = vpop.f32.mrb[51].mxu0 }
 0x27e   : > { %v6545_v43 = vadd.f32 %v6544_v7, %v8573_v16  ;;  %v6548_v10 = vadd.f32 %v2821_v8, %v8850_v56 }
 0x27f   : > { %v6547_v11 = vadd.f32 %v6546_v5, %v8575_v17  ;;  %v3915_v13 = vmax.f32 %v6543_v40, 0.0 }
 0x280   : > { %v6549_v12 = vadd.f32 %v6548_v10, %v8583_v20  ;;  %v3916_v18 = vmax.f32 %v6545_v43, 0.0 }
 0x281   : > { %v3919_v15 = vmax.f32 %v6547_v11, 0.0 }
 0x282   : > { %v3920_v19 = vmax.f32 %v6549_v12, 0.0  ;;  %v2825_v21 = vpop.f32.mrb[52].mxu0 }
 0x283   : > { %v6550_v22 = vadd.f32 %v2825_v21, %v8845_v55  ;;  %v2827_v23 = vpop.f32.mrb[53].mxu0  ;;  %v8909_v14 = vpack.c.bf16 %v3919_v15, %v3915_v13 }
 0x284   : > { %v6552_v26 = vadd.f32 %v2827_v23, %v8850_v56  ;;  %v2829_v29 = vpop.f32.mrb[54].mxu0  ;;  %v8912_v16 = vpack.c.bf16 %v3920_v19, %v3916_v18 }
 0x285   : > { %v6551_v30 = vadd.f32 %v6550_v22, %v8592_v25  ;;  %v6554_v17 = vadd.f32 %v2829_v29, %v8845_v55  ;;  %v2831_v20 = vpop.f32.mrb[55].mxu0 }
 0x286   : > { %v6553_v33 = vadd.f32 %v6552_v26, %v8595_v28  ;;  %v6556_v54 = vadd.f32 %v2831_v20, %v8850_v56 }
 0x287   : > { %v6555_v57 = vadd.f32 %v6554_v17, %v8597_v31  ;;  %v3923_v42 = vmax.f32 %v6551_v30, 0.0 }
 0x288   : > { %v6557_v35 = vadd.f32 %v6556_v54, %v8599_v32  ;;  %v3924_v59 = vmax.f32 %v6553_v33, 0.0 }
 0x289   : > { %v3927_v58 = vmax.f32 %v6555_v57, 0.0 }
 0x28a   : > { %v3928_v60 = vmax.f32 %v6557_v35, 0.0  ;;  %v2835_v61 = vpop.f32.mrb[56].mxu0 }
 0x28b   : > { %v6558_v62 = vadd.f32 %v2835_v61, %v8845_v55  ;;  %v2837_v63 = vpop.f32.mrb[57].mxu0  ;;  %v8921_v25 = vpack.c.bf16 %v3927_v58, %v3923_v42 }
 0x28c   : > { %v6560_v1 = vadd.f32 %v2837_v63, %v8850_v56  ;;  %v2839_v4 = vpop.f32.mrb[58].mxu0  ;;  %v8924_v28 = vpack.c.bf16 %v3928_v60, %v3924_v59  ;;  %v680_v60 = vsub.s32 3, %v8833_v45 }
 0x28d   : > { %v6559_v6 = vadd.f32 %v6558_v62, %v8602_v34  ;;  %v6562_v31 = vadd.f32 %v2839_v4, %v8845_v55  ;;  %v2841_v32 = vpop.f32.mrb[59].mxu0 }
 0x28e   : > { %v6561_v7 = vadd.f32 %v6560_v1, %v8605_v36  ;;  %v6564_v9 = vadd.f32 %v2841_v32, %v8850_v56  ;;  %v8958_v32 = vrot.slane %v8839_v51, %v680_v60  ;;  %v7637_v60 = vld [vmem:[%s9874_s3 + $0x120] ss:$8 sps:$4 sm:$0xff]  }
 0x28f   : > { %v6563_v40 = vadd.f32 %v6562_v31, %v8607_v39  ;;  %v3931_v8 = vmax.f32 %v6559_v6, 0.0 }
 0x290   : > { %v6565_v5 = vadd.f32 %v6564_v9, %v8609_v41  ;;  %v3932_v10 = vmax.f32 %v6561_v7, 0.0 }
 0x291   : > { %v3935_v43 = vmax.f32 %v6563_v40, 0.0  ;;  %v7631_v40 = vld [vmem:[%s9874_s3 + $0x100] ss:$8 sps:$4 sm:$0xff]  }
 0x292   : > { %v3936_v11 = vmax.f32 %v6565_v5, 0.0  ;;  %v2845_v12 = vpop.f32.mrb[60].mxu0 }
 0x293   : > { %v6566_v13 = vadd.f32 %v2845_v12, %v8845_v55  ;;  %v2847_v15 = vpop.f32.mrb[61].mxu0  ;;  %v8933_v34 = vpack.c.bf16 %v3935_v43, %v3931_v8 }
 0x294   : > { %v6568_v18 = vadd.f32 %v2847_v15, %v8850_v56  ;;  %v2849_v19 = vpop.f32.mrb[62].mxu0  ;;  %v8936_v36 = vpack.c.bf16 %v3936_v11, %v3932_v10  ;;  %v7636_v10 = vld [vmem:[%s9874_s3 + $0x114] ss:$8 sps:$4 sm:$0xff]  }
 0x295   : > { %v6567_v21 = vadd.f32 %v6566_v13, %v8612_v44  ;;  %v6570_v39 = vadd.f32 %v2849_v19, %v8845_v55  ;;  %v2851_v41 = vpop.f32.mrb[63].mxu0 }
 0x296   : > { %v6569_v22 = vadd.f32 %v6568_v18, %v8615_v46  ;;  %v6572_v23 = vadd.f32 %v2851_v41, %v8850_v56  ;;  %v676_v46 = vsub.s32 2, %v8833_v45 }
 0x297   : > { %v6571_v26 = vadd.f32 %v6570_v39, %v8617_v47  ;;  %v3939_v30 = vmax.f32 %v6567_v21, 0.0 }
 0x298   : > { %v6573_v29 = vadd.f32 %v6572_v23, %v8619_v48  ;;  %v3940_v20 = vmax.f32 %v6569_v22, 0.0  ;;  %v8955_v6 = vrot.slane %v8839_v51, %v676_v46  ;;  %v7634_v23 = vld [vmem:[%s9874_s3 + $0x110] ss:$8 sps:$4 sm:$0xff]  }
 0x299   : > { %v3943_v17 = vmax.f32 %v6571_v26, 0.0 }
 0x29a   : > { %v3944_v33 = vmax.f32 %v6573_v29, 0.0  ;;  %v2888_v54 = vpop.f32.mrb[0].mxu0 }
 0x29b   : > { %v6478_v57 = vadd.f32 %v2888_v54, %v8845_v55  ;;  %v2890_v35 = vpop.f32.mrb[1].mxu0  ;;  %v8945_v44 = vpack.c.bf16 %v3943_v17, %v3939_v30  ;;  %v7639_v17 = vld [vmem:[%s9874_s3 + $0x124] ss:$8 sps:$4 sm:$0xff]  }
 0x29c   : > { %v6479_v42 = vadd.f32 %v2890_v35, %v8850_v56  ;;  %v2892_v58 = vpop.f32.mrb[2].mxu0  ;;  %v8949_v59 = vpack.c.bf16 %v3944_v33, %v3940_v20 }
 0x29d   : > { %v6480_v47 = vadd.f32 %v2892_v58, %v8845_v55  ;;  %v2894_v48 = vpop.f32.mrb[3].mxu0  ;;  %v3819_v62 = vmax.f32 %v6478_v57, 0.0 }
 0x29e   : > { %v6481_v61 = vadd.f32 %v2894_v48, %v8850_v56  ;;  %v3820_v1 = vmax.f32 %v6479_v42, 0.0 }
 0x29f   : > { %v3823_v63 = vmax.f32 %v6480_v47, 0.0 }
 0x2a0   : > { %v3824_v4 = vmax.f32 %v6481_v61, 0.0 }
 0x2a1   : > { %v3947_v31 = vpack.c.bf16 %v3823_v63, %v3819_v62 }
 0x2a2   : > { %v3948_v7 = vpack.c.bf16 %v3824_v4, %v3820_v1  ;;  %v2898_v9 = vpop.f32.mrb[4].mxu0  ;;  %v7642_v4 = vld [vmem:[%s9874_s3 + $0x134] ss:$8 sps:$4 sm:$0xff]  }
 0x2a3   : > { %v6482_v5 = vadd.f32 %v2898_v9, %v8845_v55  ;;  %v2900_v43 = vpop.f32.mrb[5].mxu0 }
 0x2a4   : > { %v6483_v12 = vadd.f32 %v2900_v43, %v8850_v56  ;;  %v2902_v13 = vpop.f32.mrb[6].mxu0  ;;  %4403 = vmatprep.mubr.bf16.mxu0 %v3948_v7 }
 0x2a5   : > { %v3660_v8 = vpop.f32.mrb[32].mxu1  ;;  %v6484_v18 = vadd.f32 %v2902_v13, %v8845_v55  ;;  %v2904_v21 = vpop.f32.mrb[7].mxu0  ;;  %4404 = vmatmul.mubr.bf16.vlgmr.msra.gmra.mrb[64].mxu0 %v3947_v31  ;;  %v3827_v26 = vmax.f32 %v6482_v5, 0.0  ;;  %v7640_v13 = vld [vmem:[%s9874_s3 + $0x130] ss:$8 sps:$4 sm:$0xff]  }
 0x2a6   : > { %v6574_v11 = vadd.f32 %v3660_v8, %v8955_v6  ;;  %v3662_v51 = vpop.f32.mrb[33].mxu1  ;;  %v6485_v41 = vadd.f32 %v2904_v21, %v8850_v56  ;;  %4565 = vmatpush1.bf16.msra.mxu0 %v7631_v40  ;;  %v3828_v33 = vmax.f32 %v6483_v12, 0.0  ;;  %v7645_v21 = vld [vmem:[%s9874_s3 + $0x144] ss:$8 sps:$4 sm:$0xff]  }
 0x2a7   : > { %v6575_v15 = vadd.f32 %v3662_v51, %v8958_v32  ;;  %v3664_v19 = vpop.f32.mrb[34].mxu1  ;;  %v3831_v29 = vmax.f32 %v6484_v18, 0.0  ;;  %4566 = vmatprep.subr.bf16.mxu0 %v7636_v10 }
 0x2a8   : > { %v6576_v39 = vadd.f32 %v3664_v19, %v8955_v6  ;;  %v3666_v22 = vpop.f32.mrb[35].mxu1  ;;  %v3821_v20 = vmax.f32 %v6574_v11, 0.0  ;;  %v3832_v57 = vmax.f32 %v6485_v41, 0.0 }
 0x2a9   : > { %v6577_v30 = vadd.f32 %v3666_v22, %v8958_v32  ;;  %v3822_v35 = vmax.f32 %v6575_v15, 0.0  ;;  %v3951_v42 = vpack.c.bf16 %v3831_v29, %v3827_v26 }
 0x2aa   : > { %v3825_v54 = vmax.f32 %v6576_v39, 0.0  ;;  %v3952_v47 = vpack.c.bf16 %v3832_v57, %v3828_v33  ;;  %v2908_v48 = vpop.f32.mrb[8].mxu0  ;;  %4567 = vmatpush1.bf16.msra.mxu0 %v7634_v23 }
 0x2ab   : > { %v3826_v58 = vmax.f32 %v6577_v30, 0.0  ;;  %v6486_v62 = vadd.f32 %v2908_v48, %v8845_v55  ;;  %v2910_v1 = vpop.f32.mrb[9].mxu0  ;;  %4568 = vmatprep.subr.bf16.mxu0 %v7639_v17 }
 0x2ac   : > { %v8980_v46 = vpack.c.bf16 %v3825_v54, %v3821_v20  ;;  %v6487_v7 = vadd.f32 %v2910_v1, %v8850_v56  ;;  %v2912_v40 = vpop.f32.mrb[10].mxu0  ;;  %4413 = vmatprep.mubr.bf16.mxu0 %v3952_v47  ;;  %v7643_v54 = vld [vmem:[%s9874_s3 + $0x140] ss:$8 sps:$4 sm:$0xff]   ;;  %v7648_v47 = vld [vmem:[%s9874_s3 + $0x154] ss:$8 sps:$4 sm:$0xff]  }
 0x2ad   : > { %v8985_v61 = vpack.c.bf16 %v3826_v58, %v3822_v35  ;;  %v3670_v63 = vpop.f32.mrb[36].mxu1  ;;  %v6488_v8 = vadd.f32 %v2912_v40, %v8845_v55  ;;  %v2914_v10 = vpop.f32.mrb[11].mxu0  ;;  %4414 = vmatmul.mubr.bf16.gmra.mrb[68].mxu0 %v3951_v42  ;;  %v3835_v15 = vmax.f32 %v6486_v62, 0.0 }
 0x2ae   : > { %v6578_v31 = vadd.f32 %v3670_v63, %v8955_v6  ;;  %v3672_v9 = vpop.f32.mrb[37].mxu1  ;;  %v6489_v12 = vadd.f32 %v2914_v10, %v8850_v56  ;;  %4569 = vmatpush1.bf16.msra.mxu0 %v7637_v60  ;;  %v3836_v41 = vmax.f32 %v6487_v7, 0.0 }
 0x2af   : > { %v6579_v5 = vadd.f32 %v3672_v9, %v8958_v32  ;;  %v3674_v43 = vpop.f32.mrb[38].mxu1  ;;  %v3839_v18 = vmax.f32 %v6488_v8, 0.0  ;;  %4570 = vmatprep.subr.bf16.mxu0 %v7642_v4  ;;  %v7646_v8 = vld [vmem:[%s9874_s3 + $0x150] ss:$8 sps:$4 sm:$0xff]  }
 0x2b0   : > { %v6580_v11 = vadd.f32 %v3674_v43, %v8955_v6  ;;  %v3676_v51 = vpop.f32.mrb[39].mxu1  ;;  %v3829_v39 = vmax.f32 %v6578_v31, 0.0  ;;  %v3840_v23 = vmax.f32 %v6489_v12, 0.0  ;;  %v7651_v12 = vld [vmem:[%s9874_s3 + $0x164] ss:$8 sps:$4 sm:$0xff]  }
 0x2b1   : > { %v6581_v19 = vadd.f32 %v3676_v51, %v8958_v32  ;;  %v3830_v26 = vmax.f32 %v6579_v5, 0.0  ;;  %v3955_v29 = vpack.c.bf16 %v3839_v18, %v3835_v15 }
 0x2b2   : > { %v3833_v22 = vmax.f32 %v6580_v11, 0.0  ;;  %v3956_v20 = vpack.c.bf16 %v3840_v23, %v3836_v41  ;;  %v2918_v33 = vpop.f32.mrb[12].mxu0  ;;  %4571 = vmatpush1.bf16.msra.mxu0 %v7640_v13 }
 0x2b3   : > { %v3834_v30 = vmax.f32 %v6581_v19, 0.0  ;;  %v6490_v35 = vadd.f32 %v2918_v33, %v8845_v55  ;;  %v2920_v58 = vpop.f32.mrb[13].mxu0  ;;  %4572 = vmatprep.subr.bf16.mxu0 %v7645_v21 }
 0x2b4   : > { %v9004_v17 = vpack.c.bf16 %v3833_v22, %v3829_v39  ;;  %v6491_v60 = vadd.f32 %v2920_v58, %v8850_v56  ;;  %v2922_v63 = vpop.f32.mrb[14].mxu0  ;;  %4423 = vmatprep.mubr.bf16.mxu0 %v3956_v20 }
 0x2b5   : > { %v9009_v57 = vpack.c.bf16 %v3834_v30, %v3830_v26  ;;  %v3680_v42 = vpop.f32.mrb[40].mxu1  ;;  %v6492_v4 = vadd.f32 %v2922_v63, %v8845_v55  ;;  %v2924_v7 = vpop.f32.mrb[15].mxu0  ;;  %4424 = vmatmul.mubr.bf16.gmra.mrb[72].mxu0 %v3955_v29  ;;  %v3843_v43 = vmax.f32 %v6490_v35, 0.0  ;;  %v7649_v26 = vld [vmem:[%s9874_s3 + $0x160] ss:$8 sps:$4 sm:$0xff]  }
 0x2b6   : > { %v6582_v48 = vadd.f32 %v3680_v42, %v8955_v6  ;;  %v3682_v62 = vpop.f32.mrb[41].mxu1  ;;  %v6493_v40 = vadd.f32 %v2924_v7, %v8850_v56  ;;  %4573 = vmatpush1.bf16.msra.mxu0 %v7643_v54  ;;  %v3844_v13 = vmax.f32 %v6491_v60, 0.0  ;;  %v7654_v54 = vld [vmem:[%s9874_s3 + $0x174] ss:$8 sps:$4 sm:$0xff]   ;;  %v7652_v7 = vld [vmem:[%s9874_s3 + $0x170] ss:$8 sps:$4 sm:$0xff]  }
 0x2b7   : > { %v6583_v1 = vadd.f32 %v3682_v62, %v8958_v32  ;;  %v3684_v31 = vpop.f32.mrb[42].mxu1  ;;  %v3847_v10 = vmax.f32 %v6492_v4, 0.0  ;;  %4574 = vmatprep.subr.bf16.mxu0 %v7648_v47 }
 0x2b8   : > { %v6584_v9 = vadd.f32 %v3684_v31, %v8955_v6  ;;  %v3686_v5 = vpop.f32.mrb[43].mxu1  ;;  %v3837_v51 = vmax.f32 %v6582_v48, 0.0  ;;  %v3848_v18 = vmax.f32 %v6493_v40, 0.0 }
 0x2b9   : > { %v6585_v11 = vadd.f32 %v3686_v5, %v8958_v32  ;;  %v3838_v19 = vmax.f32 %v6583_v1, 0.0  ;;  %v3959_v21 = vpack.c.bf16 %v3847_v10, %v3843_v43 }
 0x2ba   : > { %v3841_v15 = vmax.f32 %v6584_v9, 0.0  ;;  %v3960_v22 = vpack.c.bf16 %v3848_v18, %v3844_v13  ;;  %v2928_v23 = vpop.f32.mrb[16].mxu0  ;;  %4575 = vmatpush1.bf16.msra.mxu0 %v7646_v8  ;;  %v7657_v8 = vld [vmem:[%s9874_s3 + $0x184] ss:$8 sps:$4 sm:$0xff]  }
 0x2bb   : > { %v3842_v39 = vmax.f32 %v6585_v11, 0.0  ;;  %v6494_v30 = vadd.f32 %v2928_v23, %v8845_v55  ;;  %v2930_v33 = vpop.f32.mrb[17].mxu0  ;;  %4576 = vmatprep.subr.bf16.mxu0 %v7651_v12 }
 0x2bc   : > { %v9028_v41 = vpack.c.bf16 %v3841_v15, %v3837_v51  ;;  %v6495_v42 = vadd.f32 %v2930_v33, %v8850_v56  ;;  %v2932_v47 = vpop.f32.mrb[18].mxu0  ;;  %4433 = vmatprep.mubr.bf16.mxu0 %v3960_v22 }
 0x2bd   : > { %v9033_v29 = vpack.c.bf16 %v3842_v39, %v3838_v19  ;;  %v3690_v20 = vpop.f32.mrb[44].mxu1  ;;  %v6496_v60 = vadd.f32 %v2932_v47, %v8845_v55  ;;  %v2934_v63 = vpop.f32.mrb[19].mxu0  ;;  %4434 = vmatmul.mubr.bf16.gmra.mrb[76].mxu0 %v3959_v21  ;;  %v3851_v9 = vmax.f32 %v6494_v30, 0.0  ;;  %v7655_v39 = vld [vmem:[%s9874_s3 + $0x180] ss:$8 sps:$4 sm:$0xff]  }
 0x2be   : > { %v6586_v35 = vadd.f32 %v3690_v20, %v8955_v6  ;;  %v3692_v58 = vpop.f32.mrb[45].mxu1  ;;  %v6497_v4 = vadd.f32 %v2934_v63, %v8850_v56  ;;  %4577 = vmatpush1.bf16.msra.mxu0 %v7649_v26  ;;  %v3852_v10 = vmax.f32 %v6495_v42, 0.0 }
 0x2bf   : > { %v6587_v48 = vadd.f32 %v3692_v58, %v8958_v32  ;;  %v3694_v62 = vpop.f32.mrb[46].mxu1  ;;  %v3855_v40 = vmax.f32 %v6496_v60, 0.0  ;;  %4578 = vmatprep.subr.bf16.mxu0 %v7654_v54 }
 0x2c0   : > { %v6588_v1 = vadd.f32 %v3694_v62, %v8955_v6  ;;  %v3696_v31 = vpop.f32.mrb[47].mxu1  ;;  %v3845_v43 = vmax.f32 %v6586_v35, 0.0  ;;  %v3856_v12 = vmax.f32 %v6497_v4, 0.0 }
 0x2c1   : > { %v6589_v5 = vadd.f32 %v3696_v31, %v8958_v32  ;;  %v3846_v51 = vmax.f32 %v6587_v48, 0.0  ;;  %v3963_v13 = vpack.c.bf16 %v3855_v40, %v3851_v9 }
 0x2c2   : > { %v3849_v11 = vmax.f32 %v6588_v1, 0.0  ;;  %v3964_v19 = vpack.c.bf16 %v3856_v12, %v3852_v10  ;;  %v2938_v21 = vpop.f32.mrb[20].mxu0  ;;  %4579 = vmatpush1.bf16.msra.mxu0 %v7652_v7 }
 0x2c3   : > { %v3850_v15 = vmax.f32 %v6589_v5, 0.0  ;;  %v6498_v23 = vadd.f32 %v2938_v21, %v8845_v55  ;;  %v2940_v30 = vpop.f32.mrb[21].mxu0  ;;  %4580 = vmatprep.subr.bf16.mxu0 %v7657_v8 }
 0x2c4   : > { %v9052_v18 = vpack.c.bf16 %v3849_v11, %v3845_v43  ;;  %v6499_v33 = vadd.f32 %v2940_v30, %v8850_v56  ;;  %v2942_v35 = vpop.f32.mrb[22].mxu0  ;;  %4443 = vmatprep.mubr.bf16.mxu0 %v3964_v19 }
 0x2c5   : > { %v9057_v22 = vpack.c.bf16 %v3850_v15, %v3846_v51  ;;  %v3700_v26 = vpop.f32.mrb[48].mxu1  ;;  %v6500_v58 = vadd.f32 %v2942_v35, %v8845_v55  ;;  %v2944_v48 = vpop.f32.mrb[23].mxu0  ;;  %4444 = vmatmul.mubr.bf16.gmra.mrb[80].mxu0 %v3963_v13  ;;  %v3859_v1 = vmax.f32 %v6498_v23, 0.0 }
 0x2c6   : > { %v6590_v20 = vadd.f32 %v3700_v26, %v8955_v6  ;;  %v3702_v54 = vpop.f32.mrb[49].mxu1  ;;  %v6501_v62 = vadd.f32 %v2944_v48, %v8850_v56  ;;  %4581 = vmatpush1.bf16.msra.mxu0 %v7655_v39  ;;  %v3860_v9 = vmax.f32 %v6499_v33, 0.0 }
 0x2c7   : > { %v6591_v42 = vadd.f32 %v3702_v54, %v8958_v32  ;;  %v3704_v47 = vpop.f32.mrb[50].mxu1  ;;  %v3863_v4 = vmax.f32 %v6500_v58, 0.0 }
 0x2c8   : > { %v6592_v60 = vadd.f32 %v3704_v47, %v8955_v6  ;;  %v3706_v63 = vpop.f32.mrb[51].mxu1  ;;  %v3853_v7 = vmax.f32 %v6590_v20, 0.0  ;;  %v3864_v5 = vmax.f32 %v6501_v62, 0.0 }
 0x2c9   : > { %v6593_v31 = vadd.f32 %v3706_v63, %v8958_v32  ;;  %v3854_v8 = vmax.f32 %v6591_v42, 0.0  ;;  %v3967_v43 = vpack.c.bf16 %v3863_v4, %v3859_v1 }
 0x2ca   : > { %v3857_v40 = vmax.f32 %v6592_v60, 0.0  ;;  %v3968_v12 = vpack.c.bf16 %v3864_v5, %v3860_v9  ;;  %v2948_v51 = vpop.f32.mrb[24].mxu0 }
 0x2cb   : > { %v3858_v10 = vmax.f32 %v6593_v31, 0.0  ;;  %v6502_v15 = vadd.f32 %v2948_v51, %v8845_v55  ;;  %v2950_v21 = vpop.f32.mrb[25].mxu0 }
 0x2cc   : > { %v9067_v11 = vpack.c.bf16 %v3857_v40, %v3853_v7  ;;  %v6503_v23 = vadd.f32 %v2950_v21, %v8850_v56  ;;  %v2952_v30 = vpop.f32.mrb[26].mxu0  ;;  %4453 = vmatprep.mubr.bf16.mxu0 %v3968_v12 }
 0x2cd   : > { %v9069_v13 = vpack.c.bf16 %v3858_v10, %v3854_v8  ;;  %v3710_v19 = vpop.f32.mrb[52].mxu1  ;;  %v6504_v33 = vadd.f32 %v2952_v30, %v8845_v55  ;;  %v2954_v35 = vpop.f32.mrb[27].mxu0  ;;  %4454 = vmatmul.mubr.bf16.gmra.mrb[84].mxu0 %v3967_v43  ;;  %v3867_v48 = vmax.f32 %v6502_v15, 0.0 }
 0x2ce   : > { %v6594_v39 = vadd.f32 %v3710_v19, %v8955_v6  ;;  %v3712_v26 = vpop.f32.mrb[53].mxu1  ;;  %v6505_v58 = vadd.f32 %v2954_v35, %v8850_v56  ;;  %v3868_v1 = vmax.f32 %v6503_v23, 0.0 }
 0x2cf   : > { %v6595_v20 = vadd.f32 %v3712_v26, %v8958_v32  ;;  %v3714_v54 = vpop.f32.mrb[54].mxu1  ;;  %v3871_v60 = vmax.f32 %v6504_v33, 0.0 }
 0x2d0   : > { %v6596_v42 = vadd.f32 %v3714_v54, %v8955_v6  ;;  %v3716_v47 = vpop.f32.mrb[55].mxu1  ;;  %v3861_v63 = vmax.f32 %v6594_v39, 0.0  ;;  %v3872_v31 = vmax.f32 %v6505_v58, 0.0 }
 0x2d1   : > { %v6597_v62 = vadd.f32 %v3716_v47, %v8958_v32  ;;  %v3862_v7 = vmax.f32 %v6595_v20, 0.0  ;;  %v3971_v9 = vpack.c.bf16 %v3871_v60, %v3867_v48 }
 0x2d2   : > { %v3865_v4 = vmax.f32 %v6596_v42, 0.0  ;;  %v3972_v8 = vpack.c.bf16 %v3872_v31, %v3868_v1  ;;  %v2958_v43 = vpop.f32.mrb[28].mxu0 }
 0x2d3   : > { %v3866_v40 = vmax.f32 %v6597_v62, 0.0  ;;  %v6506_v12 = vadd.f32 %v2958_v43, %v8845_v55  ;;  %v2960_v15 = vpop.f32.mrb[29].mxu0 }
 0x2d4   : > { %v9079_v5 = vpack.c.bf16 %v3865_v4, %v3861_v63  ;;  %v6507_v21 = vadd.f32 %v2960_v15, %v8850_v56  ;;  %v2962_v23 = vpop.f32.mrb[30].mxu0  ;;  %4463 = vmatprep.mubr.bf16.mxu0 %v3972_v8 }
 0x2d5   : > { %v9081_v10 = vpack.c.bf16 %v3866_v40, %v3862_v7  ;;  %v3720_v51 = vpop.f32.mrb[56].mxu1  ;;  %v6508_v30 = vadd.f32 %v2962_v23, %v8845_v55  ;;  %v2964_v33 = vpop.f32.mrb[31].mxu0  ;;  %4464 = vmatmul.mubr.bf16.gmra.mrb[88].mxu0 %v3971_v9  ;;  %v3875_v58 = vmax.f32 %v6506_v12, 0.0 }
 0x2d6   : > { %v6598_v19 = vadd.f32 %v3720_v51, %v8955_v6  ;;  %v3722_v39 = vpop.f32.mrb[57].mxu1  ;;  %v6509_v35 = vadd.f32 %v2964_v33, %v8850_v56  ;;  %v3876_v62 = vmax.f32 %v6507_v21, 0.0 }
 0x2d7   : > { %v6599_v26 = vadd.f32 %v3722_v39, %v8958_v32  ;;  %v3724_v20 = vpop.f32.mrb[58].mxu1  ;;  %v3879_v47 = vmax.f32 %v6508_v30, 0.0 }
 0x2d8   : > { %v6600_v54 = vadd.f32 %v3724_v20, %v8955_v6  ;;  %v3726_v42 = vpop.f32.mrb[59].mxu1  ;;  %v3869_v60 = vmax.f32 %v6598_v19, 0.0  ;;  %v3880_v1 = vmax.f32 %v6509_v35, 0.0 }
 0x2d9   : > { %v6601_v48 = vadd.f32 %v3726_v42, %v8958_v32  ;;  %v3870_v4 = vmax.f32 %v6599_v26, 0.0  ;;  %v3975_v31 = vpack.c.bf16 %v3879_v47, %v3875_v58 }
 0x2da   : > { %v3873_v63 = vmax.f32 %v6600_v54, 0.0  ;;  %v3976_v40 = vpack.c.bf16 %v3880_v1, %v3876_v62 }
 0x2db   : > { %v3874_v7 = vmax.f32 %v6601_v48, 0.0 }
 0x2dc   : > { %v9091_v55 = vpack.c.bf16 %v3873_v63, %v3869_v60  ;;  %4473 = vmatprep.mubr.bf16.mxu0 %v3976_v40 }
 0x2dd   : > { %v9093_v9 = vpack.c.bf16 %v3874_v7, %v3870_v4  ;;  %v3730_v8 = vpop.f32.mrb[60].mxu1  ;;  %4474 = vmatmul.mubr.bf16.gmra.mrb[92].mxu0 %v3975_v31 }
 0x2de   : > { %v6602_v56 = vadd.f32 %v3730_v8, %v8955_v6  ;;  %v3732_v43 = vpop.f32.mrb[61].mxu1  ;;  %4483 = vmatprep.mubr.bf16.mxu0 %v8864_v27 }
 0x2df   : > { %v6603_v12 = vadd.f32 %v3732_v43, %v8958_v32  ;;  %v3734_v51 = vpop.f32.mrb[62].mxu1 }
 0x2e0   : > { %v6604_v15 = vadd.f32 %v3734_v51, %v8955_v6  ;;  %v3736_v19 = vpop.f32.mrb[63].mxu1  ;;  %v3877_v39 = vmax.f32 %v6602_v56, 0.0 }
 0x2e1   : > { %v6605_v21 = vadd.f32 %v3736_v19, %v8958_v32  ;;  %v3878_v26 = vmax.f32 %v6603_v12, 0.0 }
 0x2e2   : > { %v3881_v23 = vmax.f32 %v6604_v15, 0.0 }
 0x2e3   : > { %v3882_v30 = vmax.f32 %v6605_v21, 0.0 }
 0x2e4   : > { %v9100_v20 = vpack.c.bf16 %v3881_v23, %v3877_v39 }
 0x2e5   : > { %v9102_v33 = vpack.c.bf16 %v3882_v30, %v3878_v26  ;;  %v3740_v54 = vpop.f32.mrb[64].mxu1  ;;  %4484 = vmatmul.mubr.bf16.gmra.mrb[96].mxu0 %v8861_v24 }
 0x2e6   : > { %v6606_v35 = vadd.f32 %v3740_v54, %v8955_v6  ;;  %v3742_v42 = vpop.f32.mrb[65].mxu1  ;;  %4493 = vmatprep.mubr.bf16.mxu0 %v8876_v38 }
 0x2e7   : > { %v6607_v58 = vadd.f32 %v3742_v42, %v8958_v32  ;;  %v3744_v47 = vpop.f32.mrb[66].mxu1 }
 0x2e8   : > { %v6608_v27 = vadd.f32 %v3744_v47, %v8955_v6  ;;  %v3746_v48 = vpop.f32.mrb[67].mxu1  ;;  %v3885_v62 = vmax.f32 %v6606_v35, 0.0 }
 0x2e9   : > { %v6609_v60 = vadd.f32 %v3746_v48, %v8958_v32  ;;  %v3886_v1 = vmax.f32 %v6607_v58, 0.0 }
 0x2ea   : > { %v3889_v63 = vmax.f32 %v6608_v27, 0.0 }
 0x2eb   : > { %v3890_v4 = vmax.f32 %v6609_v60, 0.0 }
 0x2ec   : > { %v9110_v31 = vpack.c.bf16 %v3889_v63, %v3885_v62 }
 0x2ed   : > { %v9112_v7 = vpack.c.bf16 %v3890_v4, %v3886_v1  ;;  %v3750_v40 = vpop.f32.mrb[68].mxu1  ;;  %4494 = vmatmul.mubr.bf16.gmra.mrb[100].mxu0 %v8873_v37 }
 0x2ee   : > { %v6610_v8 = vadd.f32 %v3750_v40, %v8955_v6  ;;  %v3752_v56 = vpop.f32.mrb[69].mxu1  ;;  %4503 = vmatprep.mubr.bf16.mxu0 %v8888_v52 }
 0x2ef   : > { %v6611_v24 = vadd.f32 %v3752_v56, %v8958_v32  ;;  %v3754_v43 = vpop.f32.mrb[70].mxu1 }
 0x2f0   : > { %v6612_v38 = vadd.f32 %v3754_v43, %v8955_v6  ;;  %v3756_v12 = vpop.f32.mrb[71].mxu1  ;;  %v3893_v15 = vmax.f32 %v6610_v8, 0.0  ;;  %v7658_v43 = vld [vmem:[%s9876_s5] sm:$0xff]  }
 0x2f1   : > { %v6613_v51 = vadd.f32 %v3756_v12, %v8958_v32  ;;  %v3894_v21 = vmax.f32 %v6611_v24, 0.0  ;;  %5014 = vmatpush1.bf16.msra.mxu1 %v7658_v43 }
 0x2f2   : > { %v3897_v19 = vmax.f32 %v6612_v38, 0.0  ;;  %5015 = vmatprep.subr.bf16.mxu1 %v7824_v2 }
 0x2f3   : > { %v3898_v39 = vmax.f32 %v6613_v51, 0.0 }
 0x2f4   : > { %v9120_v23 = vpack.c.bf16 %v3897_v19, %v3893_v15 }
 0x2f5   : > { %v9122_v26 = vpack.c.bf16 %v3898_v39, %v3894_v21  ;;  %v3760_v30 = vpop.f32.mrb[72].mxu1  ;;  %4504 = vmatmul.mubr.bf16.gmra.mrb[104].mxu0 %v8885_v50 }
 0x2f6   : > { %v6614_v54 = vadd.f32 %v3760_v30, %v8955_v6  ;;  %v3762_v35 = vpop.f32.mrb[73].mxu1  ;;  %4513 = vmatprep.mubr.bf16.mxu0 %v8900_v3 }
 0x2f7   : > { %v6615_v37 = vadd.f32 %v3762_v35, %v8958_v32  ;;  %v3764_v42 = vpop.f32.mrb[74].mxu1 }
 0x2f8   : > { %v6616_v52 = vadd.f32 %v3764_v42, %v8955_v6  ;;  %v3766_v58 = vpop.f32.mrb[75].mxu1  ;;  %v3901_v27 = vmax.f32 %v6614_v54, 0.0 }
 0x2f9   : > { %v6617_v47 = vadd.f32 %v3766_v58, %v8958_v32  ;;  %v3902_v60 = vmax.f32 %v6615_v37, 0.0 }
 0x2fa   : > { %v3905_v48 = vmax.f32 %v6616_v52, 0.0 }
 0x2fb   : > { %v3906_v62 = vmax.f32 %v6617_v47, 0.0 }
 0x2fc   : > { %v9130_v63 = vpack.c.bf16 %v3905_v48, %v3901_v27 }
 0x2fd   : > { %v9132_v1 = vpack.c.bf16 %v3906_v62, %v3902_v60  ;;  %v3770_v4 = vpop.f32.mrb[76].mxu1  ;;  %4514 = vmatmul.mubr.bf16.gmra.mrb[108].mxu0 %v8897_v0 }
 0x2fe   : > { %v6618_v40 = vadd.f32 %v3770_v4, %v8955_v6  ;;  %v3772_v8 = vpop.f32.mrb[77].mxu1  ;;  %4523 = vmatprep.mubr.bf16.mxu0 %v8912_v16 }
 0x2ff   : > { %v6619_v50 = vadd.f32 %v3772_v8, %v8958_v32  ;;  %v3774_v56 = vpop.f32.mrb[78].mxu1 }
 0x300   : > { %v6620_v3 = vadd.f32 %v3774_v56, %v8955_v6  ;;  %v3776_v24 = vpop.f32.mrb[79].mxu1  ;;  %v3909_v12 = vmax.f32 %v6618_v40, 0.0 }
 0x301   : > { %v6621_v38 = vadd.f32 %v3776_v24, %v8958_v32  ;;  %v3910_v15 = vmax.f32 %v6619_v50, 0.0 }
 0x302   : > { %v3913_v51 = vmax.f32 %v6620_v3, 0.0  ;;  %v7659_v3 = vld [vmem:[%s9876_s5 + $0x8] sm:$0xff]  }
 0x303   : > { %v3914_v19 = vmax.f32 %v6621_v38, 0.0  ;;  %5016 = vmatpush1.bf16.msra.mxu1 %v7659_v3 }
 0x304   : > { %v9144_v21 = vpack.c.bf16 %v3913_v51, %v3909_v12  ;;  %5017 = vmatprep.subr.bf16.mxu1 %v7824_v2 }
 0x305   : > { %v9146_v0 = vpack.c.bf16 %v3914_v19, %v3910_v15  ;;  %v3780_v39 = vpop.f32.mrb[80].mxu1  ;;  %4524 = vmatmul.mubr.bf16.gmra.mrb[112].mxu0 %v8909_v14 }
 0x306   : > { %v6622_v16 = vadd.f32 %v3780_v39, %v8955_v6  ;;  %v3782_v30 = vpop.f32.mrb[81].mxu1  ;;  %4533 = vmatprep.mubr.bf16.mxu0 %v8924_v28 }
 0x307   : > { %v6623_v54 = vadd.f32 %v3782_v30, %v8958_v32  ;;  %v3784_v35 = vpop.f32.mrb[82].mxu1 }
 0x308   : > { %v6624_v37 = vadd.f32 %v3784_v35, %v8955_v6  ;;  %v3786_v42 = vpop.f32.mrb[83].mxu1  ;;  %v3917_v58 = vmax.f32 %v6622_v16, 0.0 }
 0x309   : > { %v6625_v52 = vadd.f32 %v3786_v42, %v8958_v32  ;;  %v3918_v27 = vmax.f32 %v6623_v54, 0.0 }
 0x30a   : > { %v3921_v47 = vmax.f32 %v6624_v37, 0.0  ;;  %v7660_v37 = vld [vmem:[%s9876_s5 + $0x10] sm:$0xff]  }
 0x30b   : > { %v3922_v48 = vmax.f32 %v6625_v52, 0.0  ;;  %5018 = vmatpush1.bf16.msra.mxu1 %v7660_v37 }
 0x30c   : > { %v9154_v60 = vpack.c.bf16 %v3921_v47, %v3917_v58  ;;  %5019 = vmatprep.subr.bf16.mxu1 %v7824_v2 }
 0x30d   : > { %v9156_v62 = vpack.c.bf16 %v3922_v48, %v3918_v27  ;;  %v3790_v4 = vpop.f32.mrb[84].mxu1  ;;  %4534 = vmatmul.mubr.bf16.gmra.mrb[116].mxu0 %v8921_v25 }
 0x30e   : > { %v6626_v40 = vadd.f32 %v3790_v4, %v8955_v6  ;;  %v3792_v8 = vpop.f32.mrb[85].mxu1  ;;  %4543 = vmatprep.mubr.bf16.mxu0 %v8936_v36 }
 0x30f   : > { %v6627_v14 = vadd.f32 %v3792_v8, %v8958_v32  ;;  %v3794_v50 = vpop.f32.mrb[86].mxu1 }
 0x310   : > { %v6628_v28 = vadd.f32 %v3794_v50, %v8955_v6  ;;  %v3796_v56 = vpop.f32.mrb[87].mxu1  ;;  %v3925_v43 = vmax.f32 %v6626_v40, 0.0  ;;  %v7661_v50 = vld [vmem:[%s9876_s5 + $0x18] sm:$0xff]  }
 0x311   : > { %v6629_v24 = vadd.f32 %v3796_v56, %v8958_v32  ;;  %v3926_v12 = vmax.f32 %v6627_v14, 0.0  ;;  %5020 = vmatpush1.bf16.msra.mxu1 %v7661_v50 }
 0x312   : > { %v3929_v38 = vmax.f32 %v6628_v28, 0.0  ;;  %5021 = vmatprep.subr.bf16.mxu1 %v7824_v2 }
 0x313   : > { %v3930_v51 = vmax.f32 %v6629_v24, 0.0  ;;  %v7662_v24 = vld [vmem:[%s9876_s5 + $0x20] sm:$0xff]  }
 0x314   : > { %v9168_v15 = vpack.c.bf16 %v3929_v38, %v3925_v43 }
 0x315   : > { %v9170_v25 = vpack.c.bf16 %v3930_v51, %v3926_v12  ;;  %v3800_v19 = vpop.f32.mrb[88].mxu1  ;;  %4544 = vmatmul.mubr.bf16.gmra.mrb[120].mxu0 %v8933_v34  ;;  %5022 = vmatpush1.bf16.msra.mxu1 %v7662_v24 }
 0x316   : > { %v6630_v36 = vadd.f32 %v3800_v19, %v8955_v6  ;;  %v3802_v39 = vpop.f32.mrb[89].mxu1  ;;  %4553 = vmatprep.mubr.bf16.mxu0 %v8949_v59  ;;  %5023 = vmatprep.subr.bf16.mxu1 %v7824_v2 }
 0x317   : > { %v6631_v16 = vadd.f32 %v3802_v39, %v8958_v32  ;;  %v3804_v30 = vpop.f32.mrb[90].mxu1 }
 0x318   : > { %v6632_v54 = vadd.f32 %v3804_v30, %v8955_v6  ;;  %v3806_v35 = vpop.f32.mrb[91].mxu1  ;;  %v3933_v52 = vmax.f32 %v6630_v36, 0.0 }
 0x319   : > { %v6633_v42 = vadd.f32 %v3806_v35, %v8958_v32  ;;  %v3934_v47 = vmax.f32 %v6631_v16, 0.0 }
 0x31a   : > { %v3937_v58 = vmax.f32 %v6632_v54, 0.0  ;;  %v7673_v54 = vld [vmem:[%s9878_s7 + $0x10] sm:$0xff]  }
 0x31b   : > { %v3938_v27 = vmax.f32 %v6633_v42, 0.0 }
 0x31c   : > { %v9182_v48 = vpack.c.bf16 %v3937_v58, %v3933_v52 }
 0x31d   : > { %v9184_v34 = vpack.c.bf16 %v3938_v27, %v3934_v47  ;;  %v3810_v4 = vpop.f32.mrb[92].mxu1  ;;  %4554 = vmatmul.mubr.bf16.gmra.mrb[124].mxu0 %v8945_v44 }
 0x31e   : > { %v6634_v59 = vadd.f32 %v3810_v4, %v8955_v6  ;;  %v3812_v40 = vpop.f32.mrb[93].mxu1  ;;  %6335 = vmatprep.mubr.msk.bf16.mxu0 %vm2226_vm0, %v8985_v61  ;;  %v7665_v61 = vld [vmem:[%s9876_s5 + $0x38] sm:$0xff]  }
 0x31f   : > { %v6635_v8 = vadd.f32 %v3812_v40, %v8958_v32  ;;  %v3814_v14 = vpop.f32.mrb[94].mxu1 }
 0x320   : > { %v6636_v28 = vadd.f32 %v3814_v14, %v8955_v6  ;;  %v3816_v56 = vpop.f32.mrb[95].mxu1  ;;  %v3941_v43 = vmax.f32 %v6634_v59, 0.0  ;;  %v7663_v6 = vld [vmem:[%s9876_s5 + $0x28] sm:$0xff]  }
 0x321   : > { %v6637_v3 = vadd.f32 %v3816_v56, %v8958_v32  ;;  %v3942_v44 = vmax.f32 %v6635_v8, 0.0  ;;  %5024 = vmatpush1.bf16.msra.mxu1 %v7663_v6  ;;  %v7664_v32 = vld [vmem:[%s9876_s5 + $0x30] sm:$0xff]  }
 0x322   : > { %v3945_v38 = vmax.f32 %v6636_v28, 0.0  ;;  %5025 = vmatprep.subr.bf16.mxu1 %v7824_v2 }
 0x323   : > { %v3946_v12 = vmax.f32 %v6637_v3, 0.0 }
 0x324   : > { %v4009_v51 = vpack.c.bf16 %v3945_v38, %v3941_v43 }
 0x325   : > { %v4010_v19 = vpack.c.bf16 %v3946_v12, %v3942_v44  ;;  %4597 = vmatmul.mubr.bf16.vlgmr.msra.gmra.mrb[64].mxu0 %v8980_v46  ;;  %5026 = vmatpush1.bf16.msra.mxu1 %v7664_v32  ;;  %v7666_v46 = vld [vmem:[%s9876_s5 + $0x40] sm:$0xff]  }
 0x326   : > { %6336 = vmatprep.mubr.msk.bf16.mxu0 %vm2226_vm0, %v9009_v57  ;;  %5027 = vmatprep.subr.bf16.mxu1 %v7824_v2  ;;  %v7667_v57 = vld [vmem:[%s9876_s5 + $0x48] sm:$0xff]  }
 0x329   : > { %5028 = vmatpush1.bf16.msra.mxu1 %v7665_v61 }
 0x32a   : > { %5029 = vmatprep.subr.bf16.mxu1 %v7824_v2 }
 0x32d   : > { %4607 = vmatmul.mubr.bf16.gmra.mrb[68].mxu0 %v9004_v17  ;;  %5030 = vmatpush1.bf16.msra.mxu1 %v7666_v46  ;;  %v7668_v17 = vld [vmem:[%s9876_s5 + $0x50] sm:$0xff]  }
 0x32e   : > { %6337 = vmatprep.mubr.msk.bf16.mxu0 %vm2226_vm0, %v9033_v29  ;;  %5031 = vmatprep.subr.bf16.mxu1 %v7824_v2  ;;  %v7669_v29 = vld [vmem:[%s9876_s5 + $0x58] sm:$0xff]  }
 0x331   : > { %5032 = vmatpush1.bf16.msra.mxu1 %v7667_v57 }
 0x332   : > { %5033 = vmatprep.subr.bf16.mxu1 %v7824_v2 }
 0x335   : > { %4617 = vmatmul.mubr.bf16.gmra.mrb[72].mxu0 %v9028_v41  ;;  %5034 = vmatpush1.bf16.msra.mxu1 %v7668_v17 }
 0x336   : > { %6338 = vmatprep.mubr.msk.bf16.mxu0 %vm2226_vm0, %v9057_v22  ;;  %5035 = vmatprep.subr.bf16.mxu1 %v7824_v2 }
 0x339   : > { %5036 = vmatpush1.bf16.msra.mxu1 %v7669_v29 }
 0x33a   : > { %5037 = vmatprep.subr.bf16.mxu1 %v7824_v2  ;;  %v7670_v2 = vld [vmem:[%s9876_s5 + $0x60] ss:$0 sps:$4 sm:$0xff]  }
 0x33b   : > { %v5011_v41 = vsel %vm5009_vm1, %v7670_v2, 0 }
 0x33d   : > { %4627 = vmatmul.mubr.bf16.gmra.mrb[76].mxu0 %v9052_v18  ;;  %5038 = vmatpush1.bf16.msra.mxu1 %v5011_v41  ;;  %v4061_v18 = vld [vmem:[%s9875_s4] sm:$0x3] }
 0x33e   : > { %6339 = vmatprep.mubr.msk.bf16.mxu0 %vm2226_vm0, %v9069_v13  ;;  %v9281_v22 = vrot.slane %v4061_v18, %v668_v49 }
 0x345   : > { %4637 = vmatmul.mubr.bf16.gmra.mrb[80].mxu0 %v9067_v11  ;;  %v9285_v11 = vrot.slane %v4061_v18, %v672_v53 }
 0x346   : > { %6340 = vmatprep.mubr.msk.bf16.mxu0 %vm2226_vm0, %v9081_v10 }
 0x34d   : > { %4647 = vmatmul.mubr.bf16.gmra.mrb[84].mxu0 %v9079_v5 }
 0x34e   : > { %6341 = vmatprep.mubr.msk.bf16.mxu0 %vm2226_vm0, %v9093_v9 }
 0x355   : > { %4657 = vmatmul.mubr.bf16.gmra.mrb[88].mxu0 %v9091_v55 }
 0x356   : > { %6342 = vmatprep.mubr.msk.bf16.mxu0 %vm2226_vm0, %v9102_v33 }
 0x35d   : > { %4667 = vmatmul.mubr.bf16.gmra.mrb[92].mxu0 %v9100_v20 }
 0x35e   : > { %6343 = vmatprep.mubr.msk.bf16.mxu0 %vm2226_vm0, %v9112_v7 }
 0x365   : > { %4677 = vmatmul.mubr.bf16.gmra.mrb[96].mxu0 %v9110_v31  ;;  %v7671_v31 = vld [vmem:[%s9878_s7] sm:$0xff]  }
 0x366   : > { %6344 = vmatprep.mubr.msk.bf16.mxu0 %vm2226_vm0, %v9122_v26  ;;  %6430 = vmatprep.subr.bf16.mxu1 %v7671_v31 }
 0x36d   : > { %4687 = vmatmul.mubr.bf16.gmra.mrb[100].mxu0 %v9120_v23 }
 0x36e   : > { %6345 = vmatprep.mubr.msk.bf16.mxu0 %vm2226_vm0, %v9132_v1 }
 0x375   : > { %4697 = vmatmul.mubr.bf16.gmra.mrb[104].mxu0 %v9130_v63 }
 0x376   : > { %6346 = vmatprep.mubr.msk.bf16.mxu0 %vm2226_vm0, %v9146_v0 }
 0x37d   : > { %4707 = vmatmul.mubr.bf16.gmra.mrb[108].mxu0 %v9144_v21 }
 0x37e   : > { %6347 = vmatprep.mubr.msk.bf16.mxu0 %vm2226_vm0, %v9156_v62 }
 0x385   : > { %4717 = vmatmul.mubr.bf16.gmra.mrb[112].mxu0 %v9154_v60  ;;  %v7672_v60 = vld [vmem:[%s9878_s7 + $0x8] sm:$0xff]  }
 0x386   : > { %6348 = vmatprep.mubr.msk.bf16.mxu0 %vm2226_vm0, %v9170_v25 }
 0x38d   : > { %4727 = vmatmul.mubr.bf16.gmra.mrb[116].mxu0 %v9168_v15 }
 0x38e   : > { %6349 = vmatprep.mubr.msk.bf16.mxu0 %vm2226_vm0, %v9184_v34 }
 0x395   : > { %4737 = vmatmul.mubr.bf16.gmra.mrb[120].mxu0 %v9182_v48  ;;  %v7674_v48 = vld [vmem:[%s9878_s7 + $0x18] sm:$0xff]  }
 0x396   : > { %6350 = vmatprep.mubr.msk.bf16.mxu0 %vm2226_vm0, %v4010_v19 }
 0x39d   : > { %4747 = vmatmul.mubr.bf16.gmra.mrb[124].mxu0 %v4009_v51 }
 0x3f8   : > { %v4598_v13 = vpop.f32.mrb[64].mxu0 }
 0x3f9   : > { %v6638_v5 = vadd.f32 %v4598_v13, %v9281_v22  ;;  %v4600_v10 = vpop.f32.mrb[65].mxu0 }
 0x3fa   : > { %v6639_v55 = vadd.f32 %v4600_v10, %v9285_v11  ;;  %v4602_v9 = vpop.f32.mrb[66].mxu0 }
 0x3fb   : > { %v6640_v20 = vadd.f32 %v4602_v9, %v9281_v22  ;;  %v4604_v33 = vpop.f32.mrb[67].mxu0  ;;  %v4757_v7 = vmax.f32 %v6638_v5, 0.0 }
 0x3fc   : > { %v6641_v49 = vadd.f32 %v4604_v33, %v9285_v11  ;;  %v4758_v53 = vmax.f32 %v6639_v55, 0.0 }
 0x3fd   : > { %v4759_v45 = vmax.f32 %v6640_v20, 0.0 }
 0x3fe   : > { %v4760_v23 = vmax.f32 %v6641_v49, 0.0 }
 0x3ff   : > { %v4821_v26 = vpack.c.bf16 %v4759_v45, %v4757_v7 }
 0x400   : > { %v4822_v63 = vpack.c.bf16 %v4760_v23, %v4758_v53  ;;  %v4608_v1 = vpop.f32.mrb[68].mxu0 }
 0x401   : > { %v6642_v21 = vadd.f32 %v4608_v1, %v9281_v22  ;;  %v4610_v0 = vpop.f32.mrb[69].mxu0 }
 0x402   : > { %v6643_v62 = vadd.f32 %v4610_v0, %v9285_v11  ;;  %v4612_v15 = vpop.f32.mrb[70].mxu0  ;;  %6365 = vmatprep.mubr.msk.bf16.mxu1 %vm4960_vm2, %v4822_v63 }
 0x403   : > { %v6644_v25 = vadd.f32 %v4612_v15, %v9281_v22  ;;  %v4614_v36 = vpop.f32.mrb[71].mxu0  ;;  %5046 = vmatmul.mubr.bf16.vlgmr.msra.gmra.mrb[96].mxu1 %v4821_v26  ;;  %v4761_v16 = vmax.f32 %v6642_v21, 0.0 }
 0x404   : > { %v6645_v39 = vadd.f32 %v4614_v36, %v9285_v11  ;;  %6431 = vmatpush3.bf16.msra.mxu1 %v7671_v31  ;;  %v4762_v35 = vmax.f32 %v6643_v62, 0.0 }
 0x405   : > { %v4763_v30 = vmax.f32 %v6644_v25, 0.0  ;;  %6432 = vmatprep.subr.bf16.mxu1 %v7672_v60 }
 0x406   : > { %v4764_v37 = vmax.f32 %v6645_v39, 0.0 }
 0x407   : > { %v4823_v42 = vpack.c.bf16 %v4763_v30, %v4761_v16 }
 0x408   : > { %v4824_v52 = vpack.c.bf16 %v4764_v37, %v4762_v35  ;;  %v4618_v58 = vpop.f32.mrb[72].mxu0  ;;  %6433 = vmatpush3.bf16.msra.mxu1 %v7672_v60 }
 0x409   : > { %v6646_v47 = vadd.f32 %v4618_v58, %v9281_v22  ;;  %v4620_v27 = vpop.f32.mrb[73].mxu0  ;;  %6434 = vmatprep.subr.bf16.mxu1 %v7673_v54 }
 0x40a   : > { %v6647_v34 = vadd.f32 %v4620_v27, %v9285_v11  ;;  %v4622_v4 = vpop.f32.mrb[74].mxu0  ;;  %6366 = vmatprep.mubr.msk.bf16.mxu1 %vm4960_vm2, %v4824_v52 }
 0x40b   : > { %v6648_v59 = vadd.f32 %v4622_v4, %v9281_v22  ;;  %v4624_v40 = vpop.f32.mrb[75].mxu0  ;;  %5054 = vmatmul.mubr.bf16.gmra.mrb[100].mxu1 %v4823_v42  ;;  %v4765_v14 = vmax.f32 %v6646_v47, 0.0 }
 0x40c   : > { %v6649_v8 = vadd.f32 %v4624_v40, %v9285_v11  ;;  %6435 = vmatpush3.bf16.msra.mxu1 %v7673_v54  ;;  %v4766_v28 = vmax.f32 %v6647_v34, 0.0 }
 0x40d   : > { %v4767_v50 = vmax.f32 %v6648_v59, 0.0  ;;  %6436 = vmatprep.subr.bf16.mxu1 %v7674_v48 }
 0x40e   : > { %v4768_v56 = vmax.f32 %v6649_v8, 0.0 }
 0x40f   : > { %v4825_v3 = vpack.c.bf16 %v4767_v50, %v4765_v14 }
 0x410   : > { %v4826_v24 = vpack.c.bf16 %v4768_v56, %v4766_v28  ;;  %v4628_v43 = vpop.f32.mrb[76].mxu0  ;;  %6437 = vmatpush3.bf16.msra.mxu1 %v7674_v48 }
 0x411   : > { %v6650_v38 = vadd.f32 %v4628_v43, %v9281_v22  ;;  %v4630_v44 = vpop.f32.mrb[77].mxu0 }
 0x412   : > { %v6651_v12 = vadd.f32 %v4630_v44, %v9285_v11  ;;  %v4632_v51 = vpop.f32.mrb[78].mxu0  ;;  %6367 = vmatprep.mubr.msk.bf16.mxu1 %vm4960_vm2, %v4826_v24 }
 0x413   : > { %v6652_v19 = vadd.f32 %v4632_v51, %v9281_v22  ;;  %v4634_v6 = vpop.f32.mrb[79].mxu0  ;;  %5062 = vmatmul.mubr.bf16.gmra.mrb[104].mxu1 %v4825_v3  ;;  %v4769_v61 = vmax.f32 %v6650_v38, 0.0 }
 0x414   : > { %v6653_v32 = vadd.f32 %v4634_v6, %v9285_v11  ;;  %v4770_v57 = vmax.f32 %v6651_v12, 0.0 }
 0x415   : > { %v4771_v46 = vmax.f32 %v6652_v19, 0.0 }
 0x416   : > { %v4772_v17 = vmax.f32 %v6653_v32, 0.0 }
 0x417   : > { %v4827_v29 = vpack.c.bf16 %v4771_v46, %v4769_v61 }
 0x418   : > { %v4828_v2 = vpack.c.bf16 %v4772_v17, %v4770_v57  ;;  %v4638_v41 = vpop.f32.mrb[80].mxu0 }
 0x419   : > { %v6654_v18 = vadd.f32 %v4638_v41, %v9281_v22  ;;  %v4640_v13 = vpop.f32.mrb[81].mxu0 }
 0x41a   : > { %v6655_v5 = vadd.f32 %v4640_v13, %v9285_v11  ;;  %v4642_v10 = vpop.f32.mrb[82].mxu0  ;;  %6368 = vmatprep.mubr.msk.bf16.mxu1 %vm4960_vm2, %v4828_v2 }
 0x41b   : > { %v6656_v55 = vadd.f32 %v4642_v10, %v9281_v22  ;;  %v4644_v9 = vpop.f32.mrb[83].mxu0  ;;  %5070 = vmatmul.mubr.bf16.gmra.mrb[108].mxu1 %v4827_v29  ;;  %v4773_v33 = vmax.f32 %v6654_v18, 0.0 }
 0x41c   : > { %v6657_v20 = vadd.f32 %v4644_v9, %v9285_v11  ;;  %v4774_v49 = vmax.f32 %v6655_v5, 0.0 }
 0x41d   : > { %v4775_v31 = vmax.f32 %v6656_v55, 0.0 }
 0x41e   : > { %v4776_v7 = vmax.f32 %v6657_v20, 0.0 }
 0x41f   : > { %v4829_v45 = vpack.c.bf16 %v4775_v31, %v4773_v33 }
 0x420   : > { %v4830_v53 = vpack.c.bf16 %v4776_v7, %v4774_v49  ;;  %v4648_v23 = vpop.f32.mrb[84].mxu0 }
 0x421   : > { %v6658_v26 = vadd.f32 %v4648_v23, %v9281_v22  ;;  %v4650_v63 = vpop.f32.mrb[85].mxu0 }
 0x422   : > { %v6659_v1 = vadd.f32 %v4650_v63, %v9285_v11  ;;  %v4652_v21 = vpop.f32.mrb[86].mxu0  ;;  %6369 = vmatprep.mubr.msk.bf16.mxu1 %vm4960_vm2, %v4830_v53 }
 0x423   : > { %v6660_v0 = vadd.f32 %v4652_v21, %v9281_v22  ;;  %v4654_v60 = vpop.f32.mrb[87].mxu0  ;;  %5078 = vmatmul.mubr.bf16.gmra.mrb[112].mxu1 %v4829_v45  ;;  %v4777_v15 = vmax.f32 %v6658_v26, 0.0 }
 0x424   : > { %v6661_v62 = vadd.f32 %v4654_v60, %v9285_v11  ;;  %v4778_v36 = vmax.f32 %v6659_v1, 0.0 }
 0x425   : > { %v4779_v25 = vmax.f32 %v6660_v0, 0.0 }
 0x426   : > { %v4780_v39 = vmax.f32 %v6661_v62, 0.0 }
 0x427   : > { %v4831_v16 = vpack.c.bf16 %v4779_v25, %v4777_v15 }
 0x428   : > { %v4832_v30 = vpack.c.bf16 %v4780_v39, %v4778_v36  ;;  %v4658_v54 = vpop.f32.mrb[88].mxu0 }
 0x429   : > { %v6662_v35 = vadd.f32 %v4658_v54, %v9281_v22  ;;  %v4660_v37 = vpop.f32.mrb[89].mxu0 }
 0x42a   : > { %v6663_v42 = vadd.f32 %v4660_v37, %v9285_v11  ;;  %v4662_v52 = vpop.f32.mrb[90].mxu0  ;;  %6370 = vmatprep.mubr.msk.bf16.mxu1 %vm4960_vm2, %v4832_v30 }
 0x42b   : > { %v6664_v58 = vadd.f32 %v4662_v52, %v9281_v22  ;;  %v4664_v47 = vpop.f32.mrb[91].mxu0  ;;  %5086 = vmatmul.mubr.bf16.gmra.mrb[116].mxu1 %v4831_v16  ;;  %v4781_v48 = vmax.f32 %v6662_v35, 0.0 }
 0x42c   : > { %v6665_v27 = vadd.f32 %v4664_v47, %v9285_v11  ;;  %v4782_v4 = vmax.f32 %v6663_v42, 0.0 }
 0x42d   : > { %v4783_v34 = vmax.f32 %v6664_v58, 0.0 }
 0x42e   : > { %v4784_v59 = vmax.f32 %v6665_v27, 0.0 }
 0x42f   : > { %v4833_v40 = vpack.c.bf16 %v4783_v34, %v4781_v48 }
 0x430   : > { %v4834_v8 = vpack.c.bf16 %v4784_v59, %v4782_v4  ;;  %v4668_v14 = vpop.f32.mrb[92].mxu0 }
 0x431   : > { %v6666_v50 = vadd.f32 %v4668_v14, %v9281_v22  ;;  %v4670_v28 = vpop.f32.mrb[93].mxu0 }
 0x432   : > { %v6667_v56 = vadd.f32 %v4670_v28, %v9285_v11  ;;  %v4672_v3 = vpop.f32.mrb[94].mxu0  ;;  %6371 = vmatprep.mubr.msk.bf16.mxu1 %vm4960_vm2, %v4834_v8 }
 0x433   : > { %v6668_v24 = vadd.f32 %v4672_v3, %v9281_v22  ;;  %v4674_v43 = vpop.f32.mrb[95].mxu0  ;;  %5094 = vmatmul.mubr.bf16.gmra.mrb[120].mxu1 %v4833_v40  ;;  %v4785_v44 = vmax.f32 %v6666_v50, 0.0 }
 0x434   : > { %v6669_v38 = vadd.f32 %v4674_v43, %v9285_v11  ;;  %v4786_v51 = vmax.f32 %v6667_v56, 0.0 }
 0x435   : > { %v4787_v12 = vmax.f32 %v6668_v24, 0.0 }
 0x436   : > { %v4788_v19 = vmax.f32 %v6669_v38, 0.0 }
 0x437   : > { %v4835_v6 = vpack.c.bf16 %v4787_v12, %v4785_v44 }
 0x438   : > { %v4836_v32 = vpack.c.bf16 %v4788_v19, %v4786_v51  ;;  %v4678_v61 = vpop.f32.mrb[96].mxu0 }
 0x439   : > { %v6670_v46 = vadd.f32 %v4678_v61, %v9281_v22  ;;  %v4680_v57 = vpop.f32.mrb[97].mxu0 }
 0x43a   : > { %v6671_v17 = vadd.f32 %v4680_v57, %v9285_v11  ;;  %v4682_v29 = vpop.f32.mrb[98].mxu0  ;;  %6372 = vmatprep.mubr.msk.bf16.mxu1 %vm4960_vm2, %v4836_v32  ;;  %v7675_v32 = vld [vmem:[%s9878_s7 + $0x20] sm:$0xff]  }
 0x43b   : > { %v6672_v2 = vadd.f32 %v4682_v29, %v9281_v22  ;;  %v4684_v41 = vpop.f32.mrb[99].mxu0  ;;  %5102 = vmatmul.mubr.bf16.gmra.mrb[124].mxu1 %v4835_v6  ;;  %v4789_v13 = vmax.f32 %v6670_v46, 0.0  ;;  %6438 = vmatprep.subr.bf16.mxu1 %v7675_v32 }
 0x43c   : > { %v6673_v18 = vadd.f32 %v4684_v41, %v9285_v11  ;;  %v4790_v10 = vmax.f32 %v6671_v17, 0.0  ;;  %6439 = vmatpush3.bf16.msra.mxu1 %v7675_v32 }
 0x43d   : > { %v4791_v5 = vmax.f32 %v6672_v2, 0.0 }
 0x43e   : > { %v4792_v55 = vmax.f32 %v6673_v18, 0.0  ;;  %v7676_v18 = vld [vmem:[%s9878_s7 + $0x28] sm:$0xff]  }
 0x43f   : > { %v4837_v9 = vpack.c.bf16 %v4791_v5, %v4789_v13  ;;  %6440 = vmatprep.subr.bf16.mxu1 %v7676_v18 }
 0x440   : > { %v4838_v20 = vpack.c.bf16 %v4792_v55, %v4790_v10  ;;  %v4688_v33 = vpop.f32.mrb[100].mxu0  ;;  %6441 = vmatpush3.bf16.msra.mxu1 %v7676_v18 }
 0x441   : > { %v6674_v31 = vadd.f32 %v4688_v33, %v9281_v22  ;;  %v4690_v49 = vpop.f32.mrb[101].mxu0 }
 0x442   : > { %v6675_v7 = vadd.f32 %v4690_v49, %v9285_v11  ;;  %v4692_v45 = vpop.f32.mrb[102].mxu0  ;;  %6373 = vmatprep.mubr.msk.bf16.mxu1 %vm4960_vm2, %v4838_v20 }
 0x443   : > { %v6676_v53 = vadd.f32 %v4692_v45, %v9281_v22  ;;  %v4694_v23 = vpop.f32.mrb[103].mxu0  ;;  %5110 = vmatmul.mubr.bf16.gmra.mrb[128].mxu1 %v4837_v9  ;;  %v4793_v63 = vmax.f32 %v6674_v31, 0.0  ;;  %v7677_v31 = vld [vmem:[%s9878_s7 + $0x30] ss:$0 sps:$4 sm:$0x33]  }
 0x444   : > { %v6677_v26 = vadd.f32 %v4694_v23, %v9285_v11  ;;  %v4794_v21 = vmax.f32 %v6675_v7, 0.0  ;;  %7118 = vmatprep.subr.msk.bf16.mxu1 %vm5330_vm3, %v7677_v31 }
 0x445   : > { %v4795_v1 = vmax.f32 %v6676_v53, 0.0  ;;  %v5332_v53 = vsel %vm5330_vm3, %v7677_v31, 0 }
 0x446   : > { %v4796_v0 = vmax.f32 %v6677_v26, 0.0  ;;  %6443 = vmatpush3.bf16.msra.mxu1 %v5332_v53 }
 0x447   : > { %v4839_v60 = vpack.c.bf16 %v4795_v1, %v4793_v63 }
 0x448   : > { %v4840_v62 = vpack.c.bf16 %v4796_v0, %v4794_v21  ;;  %v4698_v15 = vpop.f32.mrb[104].mxu0 }
 0x449   : > { %v6678_v25 = vadd.f32 %v4698_v15, %v9281_v22  ;;  %v4700_v36 = vpop.f32.mrb[105].mxu0 }
 0x44a   : > { %v6679_v39 = vadd.f32 %v4700_v36, %v9285_v11  ;;  %v4702_v16 = vpop.f32.mrb[106].mxu0  ;;  %6374 = vmatprep.mubr.msk.bf16.mxu1 %vm4960_vm2, %v4840_v62 }
 0x44b   : > { %v6680_v30 = vadd.f32 %v4702_v16, %v9281_v22  ;;  %v4704_v54 = vpop.f32.mrb[107].mxu0  ;;  %5118 = vmatmul.mubr.bf16.gmra.mrb[132].mxu1 %v4839_v60  ;;  %v4797_v37 = vmax.f32 %v6678_v25, 0.0 }
 0x44c   : > { %v6681_v35 = vadd.f32 %v4704_v54, %v9285_v11  ;;  %v4798_v52 = vmax.f32 %v6679_v39, 0.0 }
 0x44d   : > { %v4799_v42 = vmax.f32 %v6680_v30, 0.0 }
 0x44e   : > { %v4800_v58 = vmax.f32 %v6681_v35, 0.0 }
 0x44f   : > { %v4841_v47 = vpack.c.bf16 %v4799_v42, %v4797_v37 }
 0x450   : > { %v4842_v27 = vpack.c.bf16 %v4800_v58, %v4798_v52  ;;  %v4708_v48 = vpop.f32.mrb[108].mxu0 }
 0x451   : > { %v6682_v34 = vadd.f32 %v4708_v48, %v9281_v22  ;;  %v4710_v4 = vpop.f32.mrb[109].mxu0 }
 0x452   : > { %v6683_v59 = vadd.f32 %v4710_v4, %v9285_v11  ;;  %v4712_v40 = vpop.f32.mrb[110].mxu0  ;;  %6375 = vmatprep.mubr.msk.bf16.mxu1 %vm4960_vm2, %v4842_v27 }
 0x453   : > { %v6684_v8 = vadd.f32 %v4712_v40, %v9281_v22  ;;  %v4714_v14 = vpop.f32.mrb[111].mxu0  ;;  %5126 = vmatmul.mubr.bf16.gmra.mrb[136].mxu1 %v4841_v47  ;;  %v4801_v28 = vmax.f32 %v6682_v34, 0.0 }
 0x454   : > { %v6685_v50 = vadd.f32 %v4714_v14, %v9285_v11  ;;  %v4802_v3 = vmax.f32 %v6683_v59, 0.0 }
 0x455   : > { %v4803_v56 = vmax.f32 %v6684_v8, 0.0 }
 0x456   : > { %v4804_v24 = vmax.f32 %v6685_v50, 0.0 }
 0x457   : > { %v4843_v43 = vpack.c.bf16 %v4803_v56, %v4801_v28 }
 0x458   : > { %v4844_v38 = vpack.c.bf16 %v4804_v24, %v4802_v3  ;;  %v4718_v44 = vpop.f32.mrb[112].mxu0 }
 0x459   : > { %v6686_v12 = vadd.f32 %v4718_v44, %v9281_v22  ;;  %v4720_v51 = vpop.f32.mrb[113].mxu0 }
 0x45a   : > { %v6687_v19 = vadd.f32 %v4720_v51, %v9285_v11  ;;  %v4722_v6 = vpop.f32.mrb[114].mxu0  ;;  %6376 = vmatprep.mubr.msk.bf16.mxu1 %vm4960_vm2, %v4844_v38 }
 0x45b   : > { %v6688_v61 = vadd.f32 %v4722_v6, %v9281_v22  ;;  %v4724_v46 = vpop.f32.mrb[115].mxu0  ;;  %5134 = vmatmul.mubr.bf16.gmra.mrb[140].mxu1 %v4843_v43  ;;  %v4805_v17 = vmax.f32 %v6686_v12, 0.0  ;;  %v9391_v43 = vld [vmem:[%s9877_s6] ss:$0 sm:$0xff] }
 0x45c   : > { %v6689_v57 = vadd.f32 %v4724_v46, %v9285_v11  ;;  %v4806_v2 = vmax.f32 %v6687_v19, 0.0 }
 0x45d   : > { %v4807_v29 = vmax.f32 %v6688_v61, 0.0 }
 0x45e   : > { %v4808_v41 = vmax.f32 %v6689_v57, 0.0 }
 0x45f   : > { %v4845_v13 = vpack.c.bf16 %v4807_v29, %v4805_v17 }
 0x460   : > { %v4846_v5 = vpack.c.bf16 %v4808_v41, %v4806_v2  ;;  %v4728_v10 = vpop.f32.mrb[116].mxu0 }
 0x461   : > { %v6690_v55 = vadd.f32 %v4728_v10, %v9281_v22  ;;  %v4730_v9 = vpop.f32.mrb[117].mxu0 }
 0x462   : > { %v6691_v20 = vadd.f32 %v4730_v9, %v9285_v11  ;;  %v4732_v33 = vpop.f32.mrb[118].mxu0  ;;  %6377 = vmatprep.mubr.msk.bf16.mxu1 %vm4960_vm2, %v4846_v5 }
 0x463   : > { %v6692_v49 = vadd.f32 %v4732_v33, %v9281_v22  ;;  %v4734_v7 = vpop.f32.mrb[119].mxu0  ;;  %5142 = vmatmul.mubr.bf16.gmra.mrb[144].mxu1 %v4845_v13  ;;  %v4809_v23 = vmax.f32 %v6690_v55, 0.0 }
 0x464   : > { %v6693_v45 = vadd.f32 %v4734_v7, %v9285_v11  ;;  %v4810_v63 = vmax.f32 %v6691_v20, 0.0 }
 0x465   : > { %v4811_v26 = vmax.f32 %v6692_v49, 0.0 }
 0x466   : > { %v4812_v1 = vmax.f32 %v6693_v45, 0.0 }
 0x467   : > { %v4847_v21 = vpack.c.bf16 %v4811_v26, %v4809_v23 }
 0x468   : > { %v4848_v0 = vpack.c.bf16 %v4812_v1, %v4810_v63  ;;  %v4738_v60 = vpop.f32.mrb[120].mxu0 }
 0x469   : > { %v6694_v62 = vadd.f32 %v4738_v60, %v9281_v22  ;;  %v4740_v15 = vpop.f32.mrb[121].mxu0 }
 0x46a   : > { %v6695_v25 = vadd.f32 %v4740_v15, %v9285_v11  ;;  %v4742_v36 = vpop.f32.mrb[122].mxu0  ;;  %6378 = vmatprep.mubr.msk.bf16.mxu1 %vm4960_vm2, %v4848_v0 }
 0x46b   : > { %v6696_v39 = vadd.f32 %v4742_v36, %v9281_v22  ;;  %v4744_v16 = vpop.f32.mrb[123].mxu0  ;;  %5150 = vmatmul.mubr.bf16.gmra.mrb[148].mxu1 %v4847_v21  ;;  %v4813_v54 = vmax.f32 %v6694_v62, 0.0 }
 0x46c   : > { %v6697_v30 = vadd.f32 %v4744_v16, %v9285_v11  ;;  %v4814_v37 = vmax.f32 %v6695_v25, 0.0 }
 0x46d   : > { %v4815_v35 = vmax.f32 %v6696_v39, 0.0 }
 0x46e   : > { %v4816_v42 = vmax.f32 %v6697_v30, 0.0 }
 0x46f   : > { %v4849_v52 = vpack.c.bf16 %v4815_v35, %v4813_v54 }
 0x470   : > { %v4850_v58 = vpack.c.bf16 %v4816_v42, %v4814_v37  ;;  %v4748_v47 = vpop.f32.mrb[124].mxu0 }
 0x471   : > { %v6698_v27 = vadd.f32 %v4748_v47, %v9281_v22  ;;  %v4750_v48 = vpop.f32.mrb[125].mxu0 }
 0x472   : > { %v6699_v34 = vadd.f32 %v4750_v48, %v9285_v11  ;;  %v4752_v4 = vpop.f32.mrb[126].mxu0  ;;  %6379 = vmatprep.mubr.msk.bf16.mxu1 %vm4960_vm2, %v4850_v58 }
 0x473   : > { %v6700_v59 = vadd.f32 %v4752_v4, %v9281_v22  ;;  %v4754_v40 = vpop.f32.mrb[127].mxu0  ;;  %5158 = vmatmul.mubr.bf16.gmra.mrb[152].mxu1 %v4849_v52  ;;  %v4817_v14 = vmax.f32 %v6698_v27, 0.0 }
 0x474   : > { %v6701_v8 = vadd.f32 %v4754_v40, %v9285_v11  ;;  %v4818_v28 = vmax.f32 %v6699_v34, 0.0 }
 0x475   : > { %v4819_v50 = vmax.f32 %v6700_v59, 0.0 }
 0x476   : > { %v4820_v56 = vmax.f32 %v6701_v8, 0.0 }
 0x477   : > { %v4851_v3 = vpack.c.bf16 %v4819_v50, %v4817_v14 }
 0x478   : > { %v4852_v24 = vpack.c.bf16 %v4820_v56, %v4818_v28 }
 0x47a   : > { %6380 = vmatprep.mubr.msk.bf16.mxu1 %vm4960_vm2, %v4852_v24 }
 0x47b   : > { %5166 = vmatmul.mubr.bf16.gmra.mrb[156].mxu1 %v4851_v3 }
 0x4d6   : > { %v5047_v38 = vpop.f32.mrb[96].mxu1 }
 0x4d7   : > { %v5048_v22 = vadd.f32 %v9391_v43, %v5047_v38  ;;  %v5049_v44 = vpop.f32.mrb[97].mxu1 }
 0x4d8   : > { %v5050_v12 = vpop.f32.mrb[98].mxu1 }
 0x4d9   : > { %v5051_v11 = vadd.f32 %v9391_v43, %v5050_v12  ;;  %v5052_v51 = vpop.f32.mrb[99].mxu1  ;;  %v5174_v19 = vmax.f32 %v5048_v22, 0.0 }
 0x4db   : > { %v5175_v6 = vmax.f32 %v5051_v11, 0.0 }
 0x4dd   : > { %v5206_v32 = vpack.c.bf16 %v5175_v6, %v5174_v19 }
 0x4de   : > { %v5055_v61 = vpop.f32.mrb[100].mxu1 }
 0x4df   : > { %v5056_v46 = vadd.f32 %v9391_v43, %v5055_v61  ;;  %v5057_v57 = vpop.f32.mrb[101].mxu1  ;;  %6444 = vmatprep.mubr.msk.bf16.mxu1 %vm5281_vm4, %v5206_v32 }
 0x4e0   : > { %v5058_v17 = vpop.f32.mrb[102].mxu1 }
 0x4e1   : > { %v5059_v29 = vadd.f32 %v9391_v43, %v5058_v17  ;;  %v5060_v2 = vpop.f32.mrb[103].mxu1  ;;  %v5176_v41 = vmax.f32 %v5056_v46, 0.0 }
 0x4e3   : > { %v5177_v18 = vmax.f32 %v5059_v29, 0.0 }
 0x4e5   : > { %v5207_v13 = vpack.c.bf16 %v5177_v18, %v5176_v41 }
 0x4e6   : > { %v5063_v5 = vpop.f32.mrb[104].mxu1 }
 0x4e7   : > { %v5064_v10 = vadd.f32 %v9391_v43, %v5063_v5  ;;  %v5065_v55 = vpop.f32.mrb[105].mxu1  ;;  %6445 = vmatmul.mubr.msk.bf16.vlgmr.msra.gmra.mrb[160].mxu1 %vm5281_vm4, %v5207_v13 }
 0x4e8   : > { %v5066_v9 = vpop.f32.mrb[106].mxu1 }
 0x4e9   : > { %v5067_v20 = vadd.f32 %v9391_v43, %v5066_v9  ;;  %v5068_v33 = vpop.f32.mrb[107].mxu1  ;;  %v5178_v31 = vmax.f32 %v5064_v10, 0.0 }
 0x4eb   : > { %v5179_v49 = vmax.f32 %v5067_v20, 0.0 }
 0x4ed   : > { %v5208_v7 = vpack.c.bf16 %v5179_v49, %v5178_v31 }
 0x4ee   : > { %v5071_v45 = vpop.f32.mrb[108].mxu1 }
 0x4ef   : > { %v5072_v53 = vadd.f32 %v9391_v43, %v5071_v45  ;;  %v5073_v23 = vpop.f32.mrb[109].mxu1  ;;  %6448 = vmatprep.mubr.msk.bf16.mxu1 %vm5281_vm4, %v5208_v7 }
 0x4f0   : > { %v5074_v26 = vpop.f32.mrb[110].mxu1 }
 0x4f1   : > { %v5075_v63 = vadd.f32 %v9391_v43, %v5074_v26  ;;  %v5076_v1 = vpop.f32.mrb[111].mxu1  ;;  %v5180_v21 = vmax.f32 %v5072_v53, 0.0 }
 0x4f3   : > { %v5181_v0 = vmax.f32 %v5075_v63, 0.0 }
 0x4f5   : > { %v5209_v60 = vpack.c.bf16 %v5181_v0, %v5180_v21 }
 0x4f6   : > { %v5079_v62 = vpop.f32.mrb[112].mxu1 }
 0x4f7   : > { %v5080_v15 = vadd.f32 %v9391_v43, %v5079_v62  ;;  %v5081_v25 = vpop.f32.mrb[113].mxu1  ;;  %6449 = vmatmul.mubr.msk.bf16.gmra.mrb[164].mxu1 %vm5281_vm4, %v5209_v60 }
 0x4f8   : > { %v5082_v36 = vpop.f32.mrb[114].mxu1 }
 0x4f9   : > { %v5083_v39 = vadd.f32 %v9391_v43, %v5082_v36  ;;  %v5084_v16 = vpop.f32.mrb[115].mxu1  ;;  %v5182_v30 = vmax.f32 %v5080_v15, 0.0 }
 0x4fb   : > { %v5183_v54 = vmax.f32 %v5083_v39, 0.0 }
 0x4fd   : > { %v5210_v35 = vpack.c.bf16 %v5183_v54, %v5182_v30 }
 0x4fe   : > { %v5087_v37 = vpop.f32.mrb[116].mxu1 }
 0x4ff   : > { %v5088_v42 = vadd.f32 %v9391_v43, %v5087_v37  ;;  %v5089_v52 = vpop.f32.mrb[117].mxu1  ;;  %6452 = vmatprep.mubr.msk.bf16.mxu1 %vm5281_vm4, %v5210_v35 }
 0x500   : > { %v5090_v58 = vpop.f32.mrb[118].mxu1 }
 0x501   : > { %v5091_v47 = vadd.f32 %v9391_v43, %v5090_v58  ;;  %v5092_v27 = vpop.f32.mrb[119].mxu1  ;;  %v5184_v48 = vmax.f32 %v5088_v42, 0.0 }
 0x503   : > { %v5185_v34 = vmax.f32 %v5091_v47, 0.0 }
 0x505   : > { %v5211_v4 = vpack.c.bf16 %v5185_v34, %v5184_v48 }
 0x506   : > { %v5095_v59 = vpop.f32.mrb[120].mxu1 }
 0x507   : > { %v5096_v40 = vadd.f32 %v9391_v43, %v5095_v59  ;;  %v5097_v8 = vpop.f32.mrb[121].mxu1  ;;  %6453 = vmatmul.mubr.msk.bf16.gmra.mrb[168].mxu1 %vm5281_vm4, %v5211_v4 }
 0x508   : > { %v5098_v14 = vpop.f32.mrb[122].mxu1 }
 0x509   : > { %v5099_v50 = vadd.f32 %v9391_v43, %v5098_v14  ;;  %v5100_v28 = vpop.f32.mrb[123].mxu1  ;;  %v5186_v56 = vmax.f32 %v5096_v40, 0.0 }
 0x50b   : > { %v5187_v3 = vmax.f32 %v5099_v50, 0.0 }
 0x50d   : > { %v5212_v24 = vpack.c.bf16 %v5187_v3, %v5186_v56 }
 0x50e   : > { %v5103_v38 = vpop.f32.mrb[124].mxu1 }
 0x50f   : > { %v5104_v22 = vadd.f32 %v9391_v43, %v5103_v38  ;;  %v5105_v44 = vpop.f32.mrb[125].mxu1  ;;  %6456 = vmatprep.mubr.msk.bf16.mxu1 %vm5281_vm4, %v5212_v24 }
 0x510   : > { %v5106_v12 = vpop.f32.mrb[126].mxu1 }
 0x511   : > { %v5107_v11 = vadd.f32 %v9391_v43, %v5106_v12  ;;  %v5108_v51 = vpop.f32.mrb[127].mxu1  ;;  %v5188_v19 = vmax.f32 %v5104_v22, 0.0 }
 0x513   : > { %v5189_v6 = vmax.f32 %v5107_v11, 0.0 }
 0x515   : > { %v5213_v32 = vpack.c.bf16 %v5189_v6, %v5188_v19 }
 0x516   : > { %v5111_v61 = vpop.f32.mrb[128].mxu1 }
 0x517   : > { %v5112_v46 = vadd.f32 %v9391_v43, %v5111_v61  ;;  %v5113_v57 = vpop.f32.mrb[129].mxu1  ;;  %6457 = vmatmul.mubr.msk.bf16.gmra.mrb[172].mxu1 %vm5281_vm4, %v5213_v32 }
 0x518   : > { %v5114_v17 = vpop.f32.mrb[130].mxu1 }
 0x519   : > { %v5115_v29 = vadd.f32 %v9391_v43, %v5114_v17  ;;  %v5116_v2 = vpop.f32.mrb[131].mxu1  ;;  %v5190_v41 = vmax.f32 %v5112_v46, 0.0 }
 0x51b   : > { %v5191_v18 = vmax.f32 %v5115_v29, 0.0 }
 0x51d   : > { %v5214_v13 = vpack.c.bf16 %v5191_v18, %v5190_v41 }
 0x51e   : > { %v5119_v5 = vpop.f32.mrb[132].mxu1 }
 0x51f   : > { %v5120_v10 = vadd.f32 %v9391_v43, %v5119_v5  ;;  %v5121_v55 = vpop.f32.mrb[133].mxu1  ;;  %6460 = vmatprep.mubr.msk.bf16.mxu1 %vm5281_vm4, %v5214_v13  ;;  %v9444_v5 = vld [vmem:[%s9879_s8] ss:$0 sm:$0xff] }
 0x520   : > { %v5122_v9 = vpop.f32.mrb[134].mxu1 }
 0x521   : > { %v5123_v20 = vadd.f32 %v9391_v43, %v5122_v9  ;;  %v5124_v33 = vpop.f32.mrb[135].mxu1  ;;  %v5192_v31 = vmax.f32 %v5120_v10, 0.0 }
 0x523   : > { %v5193_v49 = vmax.f32 %v5123_v20, 0.0 }
 0x525   : > { %v5215_v7 = vpack.c.bf16 %v5193_v49, %v5192_v31 }
 0x526   : > { %v5127_v45 = vpop.f32.mrb[136].mxu1 }
 0x527   : > { %v5128_v53 = vadd.f32 %v9391_v43, %v5127_v45  ;;  %v5129_v23 = vpop.f32.mrb[137].mxu1  ;;  %6461 = vmatmul.mubr.msk.bf16.gmra.mrb[176].mxu1 %vm5281_vm4, %v5215_v7 }
 0x528   : > { %v5130_v26 = vpop.f32.mrb[138].mxu1 }
 0x529   : > { %v5131_v63 = vadd.f32 %v9391_v43, %v5130_v26  ;;  %v5132_v1 = vpop.f32.mrb[139].mxu1  ;;  %v5194_v21 = vmax.f32 %v5128_v53, 0.0 }
 0x52b   : > { %v5195_v0 = vmax.f32 %v5131_v63, 0.0 }
 0x52d   : > { %v5216_v60 = vpack.c.bf16 %v5195_v0, %v5194_v21 }
 0x52e   : > { %v5135_v62 = vpop.f32.mrb[140].mxu1 }
 0x52f   : > { %v5136_v15 = vadd.f32 %v9391_v43, %v5135_v62  ;;  %v5137_v25 = vpop.f32.mrb[141].mxu1  ;;  %6464 = vmatprep.mubr.msk.bf16.mxu1 %vm5281_vm4, %v5216_v60 }
 0x530   : > { %v5138_v36 = vpop.f32.mrb[142].mxu1 }
 0x531   : > { %v5139_v39 = vadd.f32 %v9391_v43, %v5138_v36  ;;  %v5140_v16 = vpop.f32.mrb[143].mxu1  ;;  %v5196_v30 = vmax.f32 %v5136_v15, 0.0 }
 0x533   : > { %v5197_v54 = vmax.f32 %v5139_v39, 0.0 }
 0x535   : > { %v5217_v35 = vpack.c.bf16 %v5197_v54, %v5196_v30 }
 0x536   : > { %v5143_v37 = vpop.f32.mrb[144].mxu1 }
 0x537   : > { %v5144_v42 = vadd.f32 %v9391_v43, %v5143_v37  ;;  %v5145_v52 = vpop.f32.mrb[145].mxu1  ;;  %6465 = vmatmul.mubr.msk.bf16.gmra.mrb[180].mxu1 %vm5281_vm4, %v5217_v35 }
 0x538   : > { %v5146_v58 = vpop.f32.mrb[146].mxu1 }
 0x539   : > { %v5147_v47 = vadd.f32 %v9391_v43, %v5146_v58  ;;  %v5148_v27 = vpop.f32.mrb[147].mxu1  ;;  %v5198_v48 = vmax.f32 %v5144_v42, 0.0 }
 0x53b   : > { %v5199_v34 = vmax.f32 %v5147_v47, 0.0 }
 0x53d   : > { %v5218_v4 = vpack.c.bf16 %v5199_v34, %v5198_v48 }
 0x53e   : > { %v5151_v59 = vpop.f32.mrb[148].mxu1 }
 0x53f   : > { %v5152_v40 = vadd.f32 %v9391_v43, %v5151_v59  ;;  %v5153_v8 = vpop.f32.mrb[149].mxu1  ;;  %6468 = vmatprep.mubr.msk.bf16.mxu1 %vm5281_vm4, %v5218_v4 }
 0x540   : > { %v5154_v14 = vpop.f32.mrb[150].mxu1 }
 0x541   : > { %v5155_v50 = vadd.f32 %v9391_v43, %v5154_v14  ;;  %v5156_v28 = vpop.f32.mrb[151].mxu1  ;;  %v5200_v56 = vmax.f32 %v5152_v40, 0.0 }
 0x543   : > { %v5201_v3 = vmax.f32 %v5155_v50, 0.0 }
 0x545   : > { %v5219_v24 = vpack.c.bf16 %v5201_v3, %v5200_v56 }
 0x546   : > { %v5159_v38 = vpop.f32.mrb[152].mxu1 }
 0x547   : > { %v5160_v22 = vadd.f32 %v9391_v43, %v5159_v38  ;;  %v5161_v44 = vpop.f32.mrb[153].mxu1  ;;  %6469 = vmatmul.mubr.msk.bf16.gmra.mrb[184].mxu1 %vm5281_vm4, %v5219_v24 }
 0x548   : > { %v5162_v12 = vpop.f32.mrb[154].mxu1 }
 0x549   : > { %v5163_v11 = vadd.f32 %v9391_v43, %v5162_v12  ;;  %v5164_v51 = vpop.f32.mrb[155].mxu1  ;;  %v5202_v19 = vmax.f32 %v5160_v22, 0.0 }
 0x54b   : > { %v5203_v6 = vmax.f32 %v5163_v11, 0.0 }
 0x54d   : > { %v5220_v32 = vpack.c.bf16 %v5203_v6, %v5202_v19 }
 0x54e   : > { %v5167_v61 = vpop.f32.mrb[156].mxu1 }
 0x54f   : > { %v5168_v46 = vadd.f32 %v9391_v43, %v5167_v61  ;;  %v5169_v57 = vpop.f32.mrb[157].mxu1  ;;  %6472 = vmatprep.mubr.msk.bf16.mxu1 %vm5281_vm4, %v5220_v32 }
 0x550   : > { %v5170_v17 = vpop.f32.mrb[158].mxu1 }
 0x551   : > { %v5171_v29 = vadd.f32 %v9391_v43, %v5170_v17  ;;  %v5172_v2 = vpop.f32.mrb[159].mxu1  ;;  %v5204_v41 = vmax.f32 %v5168_v46, 0.0 }
 0x553   : > { %v5205_v18 = vmax.f32 %v5171_v29, 0.0 }
 0x555   : > { %v5221_v13 = vpack.c.bf16 %v5205_v18, %v5204_v41 }
 0x557   : > { %6473 = vmatmul.mubr.msk.bf16.gmra.mrb[188].mxu1 %vm5281_vm4, %v5221_v13 }
 0x5ba   : > { %v6446_v10 = vpop.f32.mrb[160].mxu1 }
 0x5bb   : > { %v9447_v55 = vadd.f32 %v6446_v10, %v9444_v5  ;;  %v5368_v9 = vpop.f32.mrb[161].mxu1 }
 0x5bc   : > { %v9450_v20 = vadd.f32 %v9444_v5, %v5368_v9  ;;  %v6447_v43 = vpop.f32.mrb[162].mxu1 }
 0x5bd   : > { %v9453_v33 = vadd.f32 %v6447_v43, %v9444_v5  ;;  %v5371_v31 = vpop.f32.mrb[163].mxu1  ;;  %v5502_v49 = vsel %vm5495_vm5, %v9447_v55, -inf }
 0x5be   : > { %v9458_v7 = vadd.f32 %v9444_v5, %v5371_v31  ;;  %5503 = vmax.xlane.f32.xlu1 %v5502_v49  ;;  %v5496_v45 = vsel %vm5495_vm5, %v9450_v20, -inf }
 0x5bf   : > { %5497 = vmax.xlane.f32.xlu0 %v5496_v45  ;;  %v5505_v53 = vsel %vm5495_vm5, %v9453_v33, -inf }
 0x5c0   : > { %v5499_v23 = vsel %vm5495_vm5, %v9458_v7, -inf }
 0x5c2   : > { %5506 = vmax.xlane.f32.xlu1 %v5505_v53 }
 0x5c3   : > { %5500 = vmax.xlane.f32.xlu0 %v5499_v23 }
 0x5ca   : > { %v6450_v26 = vpop.f32.mrb[164].mxu1 }
 0x5cb   : > { %v9467_v63 = vadd.f32 %v6450_v26, %v9444_v5  ;;  %v5384_v1 = vpop.f32.mrb[165].mxu1 }
 0x5cc   : > { %v6451_v21 = vpop.f32.mrb[166].mxu1  ;;  %v9470_v0 = vadd.f32 %v9444_v5, %v5384_v1 }
 0x5cd   : > { %v9473_v60 = vadd.f32 %v6451_v21, %v9444_v5  ;;  %v5387_v62 = vpop.f32.mrb[167].mxu1  ;;  %v5514_v15 = vsel %vm5495_vm5, %v9467_v63, -inf }
 0x5ce   : > { %5515 = vmax.xlane.f32.xlu0 %v5514_v15  ;;  %v9478_v25 = vadd.f32 %v9444_v5, %v5387_v62  ;;  %v5508_v39 = vsel %vm5495_vm5, %v9470_v0, -inf }
 0x5cf   : > { %v5517_v36 = vsel %vm5495_vm5, %v9473_v60, -inf }
 0x5d0   : > { %5518 = vmax.xlane.f32.xlu1 %v5517_v36  ;;  %v5511_v16 = vsel %vm5495_vm5, %v9478_v25, -inf }
 0x5d2   : > { %5509 = vmax.xlane.f32.xlu0 %v5508_v39 }
 0x5d4   : > { %5512 = vmax.xlane.f32.xlu1 %v5511_v16 }
 0x5da   : > { %v6454_v30 = vpop.f32.mrb[168].mxu1 }
 0x5db   : > { %v9487_v54 = vadd.f32 %v6454_v30, %v9444_v5  ;;  %v5400_v35 = vpop.f32.mrb[169].mxu1 }
 0x5dc   : > { %v6455_v37 = vpop.f32.mrb[170].mxu1  ;;  %v9490_v42 = vadd.f32 %v9444_v5, %v5400_v35 }
 0x5dd   : > { %v9493_v52 = vadd.f32 %v6455_v37, %v9444_v5  ;;  %v5403_v58 = vpop.f32.mrb[171].mxu1  ;;  %v5526_v47 = vsel %vm5495_vm5, %v9487_v54, -inf }
 0x5de   : > { %5527 = vmax.xlane.f32.xlu0 %v5526_v47  ;;  %v9498_v27 = vadd.f32 %v9444_v5, %v5403_v58  ;;  %v5520_v34 = vsel %vm5495_vm5, %v9490_v42, -inf }
 0x5df   : > { %v5529_v48 = vsel %vm5495_vm5, %v9493_v52, -inf }
 0x5e0   : > { %5530 = vmax.xlane.f32.xlu1 %v5529_v48  ;;  %v5523_v4 = vsel %vm5495_vm5, %v9498_v27, -inf }
 0x5e2   : > { %5521 = vmax.xlane.f32.xlu0 %v5520_v34 }
 0x5e4   : > { %5524 = vmax.xlane.f32.xlu1 %v5523_v4 }
 0x5ea   : > { %v6458_v59 = vpop.f32.mrb[172].mxu1 }
 0x5eb   : > { %v9507_v40 = vadd.f32 %v6458_v59, %v9444_v5  ;;  %v5416_v8 = vpop.f32.mrb[173].mxu1 }
 0x5ec   : > { %v6459_v14 = vpop.f32.mrb[174].mxu1  ;;  %v9510_v50 = vadd.f32 %v9444_v5, %v5416_v8 }
 0x5ed   : > { %v9513_v28 = vadd.f32 %v6459_v14, %v9444_v5  ;;  %v5419_v56 = vpop.f32.mrb[175].mxu1  ;;  %v5538_v3 = vsel %vm5495_vm5, %v9507_v40, -inf }
 0x5ee   : > { %5539 = vmax.xlane.f32.xlu0 %v5538_v3  ;;  %v9518_v24 = vadd.f32 %v9444_v5, %v5419_v56  ;;  %v5532_v22 = vsel %vm5495_vm5, %v9510_v50, -inf }
 0x5ef   : > { %v5541_v38 = vsel %vm5495_vm5, %v9513_v28, -inf }
 0x5f0   : > { %5542 = vmax.xlane.f32.xlu1 %v5541_v38  ;;  %v5535_v44 = vsel %vm5495_vm5, %v9518_v24, -inf }
 0x5f2   : > { %5533 = vmax.xlane.f32.xlu0 %v5532_v22 }
 0x5f4   : > { %5536 = vmax.xlane.f32.xlu1 %v5535_v44 }
 0x5fa   : > { %v6462_v12 = vpop.f32.mrb[176].mxu1 }
 0x5fb   : > { %v9527_v11 = vadd.f32 %v6462_v12, %v9444_v5  ;;  %v5432_v51 = vpop.f32.mrb[177].mxu1 }
 0x5fc   : > { %v6463_v19 = vpop.f32.mrb[178].mxu1  ;;  %v9530_v6 = vadd.f32 %v9444_v5, %v5432_v51 }
 0x5fd   : > { %v9533_v32 = vadd.f32 %v6463_v19, %v9444_v5  ;;  %v5435_v61 = vpop.f32.mrb[179].mxu1  ;;  %v5550_v46 = vsel %vm5495_vm5, %v9527_v11, -inf }
 0x5fe   : > { %5551 = vmax.xlane.f32.xlu0 %v5550_v46  ;;  %v9538_v57 = vadd.f32 %v9444_v5, %v5435_v61  ;;  %v5544_v29 = vsel %vm5495_vm5, %v9530_v6, -inf }
 0x5ff   : > { %v5553_v17 = vsel %vm5495_vm5, %v9533_v32, -inf }
 0x600   : > { %5554 = vmax.xlane.f32.xlu1 %v5553_v17  ;;  %v5547_v2 = vsel %vm5495_vm5, %v9538_v57, -inf }
 0x602   : > { %5545 = vmax.xlane.f32.xlu0 %v5544_v29 }
 0x604   : > { %5548 = vmax.xlane.f32.xlu1 %v5547_v2 }
 0x60a   : > { %v6466_v41 = vpop.f32.mrb[180].mxu1 }
 0x60b   : > { %v9547_v18 = vadd.f32 %v6466_v41, %v9444_v5  ;;  %v5448_v13 = vpop.f32.mrb[181].mxu1 }
 0x60c   : > { %v6467_v10 = vpop.f32.mrb[182].mxu1  ;;  %v9550_v9 = vadd.f32 %v9444_v5, %v5448_v13 }
 0x60d   : > { %v9553_v43 = vadd.f32 %v6467_v10, %v9444_v5  ;;  %v5451_v31 = vpop.f32.mrb[183].mxu1  ;;  %v5562_v49 = vsel %vm5495_vm5, %v9547_v18, -inf }
 0x60e   : > { %5563 = vmax.xlane.f32.xlu0 %v5562_v49  ;;  %v9558_v45 = vadd.f32 %v9444_v5, %v5451_v31  ;;  %v5556_v23 = vsel %vm5495_vm5, %v9550_v9, -inf }
 0x60f   : > { %v5565_v53 = vsel %vm5495_vm5, %v9553_v43, -inf }
 0x610   : > { %5566 = vmax.xlane.f32.xlu1 %v5565_v53  ;;  %v5559_v26 = vsel %vm5495_vm5, %v9558_v45, -inf }
 0x612   : > { %5557 = vmax.xlane.f32.xlu0 %v5556_v23 }
 0x614   : > { %5560 = vmax.xlane.f32.xlu1 %v5559_v26 }
 0x61a   : > { %v6470_v1 = vpop.f32.mrb[184].mxu1 }
 0x61b   : > { %v9567_v21 = vadd.f32 %v6470_v1, %v9444_v5  ;;  %v5464_v62 = vpop.f32.mrb[185].mxu1 }
 0x61c   : > { %v6471_v15 = vpop.f32.mrb[186].mxu1  ;;  %v9570_v36 = vadd.f32 %v9444_v5, %v5464_v62 }
 0x61d   : > { %v9573_v39 = vadd.f32 %v6471_v15, %v9444_v5  ;;  %v5467_v16 = vpop.f32.mrb[187].mxu1  ;;  %v5574_v30 = vsel %vm5495_vm5, %v9567_v21, -inf }
 0x61e   : > { %5575 = vmax.xlane.f32.xlu0 %v5574_v30  ;;  %v9578_v35 = vadd.f32 %v9444_v5, %v5467_v16  ;;  %v5568_v58 = vsel %vm5495_vm5, %v9570_v36, -inf }
 0x61f   : > { %v5577_v37 = vsel %vm5495_vm5, %v9573_v39, -inf }
 0x620   : > { %5578 = vmax.xlane.f32.xlu1 %v5577_v37  ;;  %v5571_v47 = vsel %vm5495_vm5, %v9578_v35, -inf }
 0x622   : > { %5569 = vmax.xlane.f32.xlu0 %v5568_v58 }
 0x624   : > { %5572 = vmax.xlane.f32.xlu1 %v5571_v47 }
 0x62a   : > { %v6474_v48 = vpop.f32.mrb[188].mxu1 }
 0x62b   : > { %v5480_v34 = vpop.f32.mrb[189].mxu1  ;;  %v9590_v14 = vadd.f32 %v6474_v48, %v9444_v5 }
 0x62c   : > { %v9587_v4 = vadd.f32 %v9444_v5, %v5480_v34  ;;  %v6475_v59 = vpop.f32.mrb[190].mxu1 }
 0x62d   : > { %v5483_v8 = vpop.f32.mrb[191].mxu1  ;;  %v9598_v38 = vadd.f32 %v6475_v59, %v9444_v5  ;;  %v5586_v44 = vsel %vm5495_vm5, %v9590_v14, -inf }
 0x62e   : > { %v9593_v56 = vadd.f32 %v9444_v5, %v5483_v8  ;;  %v5580_v3 = vsel %vm5495_vm5, %v9587_v4, -inf }
 0x62f   : > { %5581 = vmax.xlane.f32.xlu0 %v5580_v3  ;;  %v5589_v12 = vsel %vm5495_vm5, %v9598_v38, -inf }
 0x630   : > { %v5583_v22 = vsel %vm5495_vm5, %v9593_v56, -inf }
 0x631   : > { %5584 = vmax.xlane.f32.xlu1 %v5583_v22 }
 0x633   : > { %5587 = vmax.xlane.f32.xlu0 %v5586_v44 }
 0x635   : > { %5590 = vmax.xlane.f32.xlu1 %v5589_v12 }
 0x64b   : > { %v5504_v51 = vpop.xlane.xlu1 %5503 }
 0x64c   : > { %v5594_v19 = vsub.f32 %v9447_v55, %v5504_v51  ;;  %v5498_v61 = vpop.xlane.xlu0 %5497 }
 0x64d   : > { %v5592_v46 = vsub.f32 %v9450_v20, %v5498_v61 }
 0x64e   : > { %v5628_v5 = vmul.f32 1.442695, %v5594_v19 }
 0x64f   : > { %v5624_v17 = vmul.f32 1.442695, %v5592_v46  ;;  %v5507_v29 = vpop.xlane.xlu1 %5506 }
 0x650   : > { %7678 = vpow2.f32 %v5628_v5  ;;  %v5595_v2 = vsub.f32 %v9453_v33, %v5507_v29  ;;  %v5501_v41 = vpop.xlane.xlu0 %5500 }
 0x651   : > { %v5593_v13 = vsub.f32 %v9458_v7, %v5501_v41  ;;  %7680 = vpow2.f32 %v5624_v17 }
 0x652   : > { %v5630_v10 = vmul.f32 1.442695, %v5595_v2 }
 0x653   : > { %v5626_v31 = vmul.f32 1.442695, %v5593_v13 }
 0x654   : > { %7682 = vpow2.f32 %v5630_v10 }
 0x655   : > { %7684 = vpow2.f32 %v5626_v31 }
 0x65a   : > { %v9610_v49 = vpop.eup %7678 }
 0x65b   : > { %v5516_v55 = vpop.xlane.xlu0 %5515  ;;  %v5694_v20 = vsel %vm5495_vm5, %v9610_v49, 0.0  ;;  %v9614_v53 = vpop.eup %7680 }
 0x65c   : > { %v5598_v23 = vsub.f32 %v9467_v63, %v5516_v55  ;;  %5695 = vadd.xlane.f32.xlu0 %v5694_v20  ;;  %v5688_v16 = vsel %vm5495_vm5, %v9614_v53, 0.0 }
 0x65d   : > { %v5519_v33 = vpop.xlane.xlu1 %5518 }
 0x65e   : > { %v9617_v26 = vpop.eup %7682  ;;  %v5636_v7 = vmul.f32 1.442695, %v5598_v23  ;;  %v5599_v1 = vsub.f32 %v9473_v60, %v5519_v33 }
 0x65f   : > { %v5510_v62 = vpop.xlane.xlu0 %5509  ;;  %v5697_v15 = vsel %vm5495_vm5, %v9617_v26, 0.0  ;;  %v9624_v30 = vpop.eup %7684 }
 0x660   : > { %7686 = vpow2.f32 %v5636_v7  ;;  %v5638_v37 = vmul.f32 1.442695, %v5599_v1  ;;  %v5596_v63 = vsub.f32 %v9470_v0, %v5510_v62  ;;  %5698 = vadd.xlane.f32.xlu1 %v5697_v15  ;;  %5689 = vadd.xlane.f32.xlu0 %v5688_v16  ;;  %v5691_v48 = vsel %vm5495_vm5, %v9624_v30, 0.0 }
 0x661   : > { %v5513_v58 = vpop.xlane.xlu1 %5512 }
 0x662   : > { %7688 = vpow2.f32 %v5638_v37  ;;  %v5632_v47 = vmul.f32 1.442695, %v5596_v63  ;;  %v5597_v60 = vsub.f32 %v9478_v25, %v5513_v58 }
 0x664   : > { %7690 = vpow2.f32 %v5632_v47  ;;  %v5634_v34 = vmul.f32 1.442695, %v5597_v60  ;;  %5692 = vadd.xlane.f32.xlu1 %v5691_v48 }
 0x666   : > { %7692 = vpow2.f32 %v5634_v34 }
 0x66a   : > { %v9630_v59 = vpop.eup %7686 }
 0x66b   : > { %v5528_v8 = vpop.xlane.xlu0 %5527  ;;  %v5706_v0 = vsel %vm5495_vm5, %v9630_v59, 0.0 }
 0x66c   : > { %v9634_v3 = vpop.eup %7688  ;;  %v5602_v22 = vsub.f32 %v9487_v54, %v5528_v8  ;;  %5707 = vadd.xlane.f32.xlu0 %v5706_v0 }
 0x66d   : > { %v5531_v44 = vpop.xlane.xlu1 %5530  ;;  %v5709_v25 = vsel %vm5495_vm5, %v9634_v3, 0.0 }
 0x66e   : > { %v9639_v12 = vpop.eup %7690  ;;  %v5644_v51 = vmul.f32 1.442695, %v5602_v22  ;;  %v5603_v19 = vsub.f32 %v9493_v52, %v5531_v44  ;;  %5710 = vadd.xlane.f32.xlu1 %v5709_v25 }
 0x66f   : > { %v5522_v61 = vpop.xlane.xlu0 %5521  ;;  %v5700_v46 = vsel %vm5495_vm5, %v9639_v12, 0.0 }
 0x670   : > { %v9644_v5 = vpop.eup %7692  ;;  %7694 = vpow2.f32 %v5644_v51  ;;  %v5646_v17 = vmul.f32 1.442695, %v5603_v19  ;;  %v5600_v54 = vsub.f32 %v9490_v42, %v5522_v61  ;;  %5701 = vadd.xlane.f32.xlu0 %v5700_v46 }
 0x671   : > { %v5525_v29 = vpop.xlane.xlu1 %5524  ;;  %v5703_v2 = vsel %vm5495_vm5, %v9644_v5, 0.0 }
 0x672   : > { %7696 = vpow2.f32 %v5646_v17  ;;  %v5640_v41 = vmul.f32 1.442695, %v5600_v54  ;;  %v5601_v52 = vsub.f32 %v9498_v27, %v5525_v29  ;;  %5704 = vadd.xlane.f32.xlu1 %v5703_v2 }
 0x674   : > { %7698 = vpow2.f32 %v5640_v41  ;;  %v5642_v13 = vmul.f32 1.442695, %v5601_v52 }
 0x676   : > { %7700 = vpow2.f32 %v5642_v13 }
 0x67a   : > { %v9650_v10 = vpop.eup %7694 }
 0x67b   : > { %v5540_v31 = vpop.xlane.xlu0 %5539  ;;  %v5718_v55 = vsel %vm5495_vm5, %v9650_v10, 0.0 }
 0x67c   : > { %v9654_v42 = vpop.eup %7696  ;;  %v5606_v20 = vsub.f32 %v9507_v40, %v5540_v31  ;;  %5719 = vadd.xlane.f32.xlu0 %v5718_v55 }
 0x67d   : > { %v5543_v23 = vpop.xlane.xlu1 %5542  ;;  %v5721_v33 = vsel %vm5495_vm5, %v9654_v42, 0.0 }
 0x67e   : > { %v9659_v27 = vpop.eup %7698  ;;  %v5652_v7 = vmul.f32 1.442695, %v5606_v20  ;;  %v5607_v1 = vsub.f32 %v9513_v28, %v5543_v23  ;;  %5722 = vadd.xlane.f32.xlu1 %v5721_v33 }
 0x67f   : > { %v5534_v62 = vpop.xlane.xlu0 %5533  ;;  %v5712_v15 = vsel %vm5495_vm5, %v9659_v27, 0.0 }
 0x680   : > { %v9664_v16 = vpop.eup %7700  ;;  %7702 = vpow2.f32 %v5652_v7  ;;  %v5654_v37 = vmul.f32 1.442695, %v5607_v1  ;;  %v5604_v40 = vsub.f32 %v9510_v50, %v5534_v62  ;;  %5713 = vadd.xlane.f32.xlu0 %v5712_v15 }
 0x681   : > { %v5537_v63 = vpop.xlane.xlu1 %5536  ;;  %v5715_v58 = vsel %vm5495_vm5, %v9664_v16, 0.0 }
 0x682   : > { %7704 = vpow2.f32 %v5654_v37  ;;  %v5648_v47 = vmul.f32 1.442695, %v5604_v40  ;;  %v5605_v28 = vsub.f32 %v9518_v24, %v5537_v63  ;;  %5716 = vadd.xlane.f32.xlu1 %v5715_v58 }
 0x684   : > { %7706 = vpow2.f32 %v5648_v47  ;;  %v5650_v60 = vmul.f32 1.442695, %v5605_v28 }
 0x686   : > { %7708 = vpow2.f32 %v5650_v60 }
 0x68a   : > { %v9670_v48 = vpop.eup %7702 }
 0x68b   : > { %v5552_v34 = vpop.xlane.xlu0 %5551  ;;  %v5730_v8 = vsel %vm5495_vm5, %v9670_v48, 0.0 }
 0x68c   : > { %v9674_v50 = vpop.eup %7704  ;;  %v5610_v0 = vsub.f32 %v9527_v11, %v5552_v34  ;;  %5731 = vadd.xlane.f32.xlu0 %v5730_v8 }
 0x68d   : > { %v5555_v22 = vpop.xlane.xlu1 %5554  ;;  %v5733_v44 = vsel %vm5495_vm5, %v9674_v50, 0.0 }
 0x68e   : > { %v9679_v24 = vpop.eup %7706  ;;  %v5660_v25 = vmul.f32 1.442695, %v5610_v0  ;;  %v5611_v51 = vsub.f32 %v9533_v32, %v5555_v22  ;;  %5734 = vadd.xlane.f32.xlu1 %v5733_v44 }
 0x68f   : > { %v5546_v19 = vpop.xlane.xlu0 %5545  ;;  %v5724_v61 = vsel %vm5495_vm5, %v9679_v24, 0.0 }
 0x690   : > { %v9684_v46 = vpop.eup %7708  ;;  %7710 = vpow2.f32 %v5660_v25  ;;  %v5662_v17 = vmul.f32 1.442695, %v5611_v51  ;;  %v5608_v11 = vsub.f32 %v9530_v6, %v5546_v19  ;;  %5725 = vadd.xlane.f32.xlu0 %v5724_v61 }
 0x691   : > { %v5549_v54 = vpop.xlane.xlu1 %5548  ;;  %v5727_v29 = vsel %vm5495_vm5, %v9684_v46, 0.0 }
 0x692   : > { %7712 = vpow2.f32 %v5662_v17  ;;  %v5656_v2 = vmul.f32 1.442695, %v5608_v11  ;;  %v5609_v32 = vsub.f32 %v9538_v57, %v5549_v54  ;;  %5728 = vadd.xlane.f32.xlu1 %v5727_v29 }
 0x694   : > { %7714 = vpow2.f32 %v5656_v2  ;;  %v5658_v41 = vmul.f32 1.442695, %v5609_v32 }
 0x696   : > { %7716 = vpow2.f32 %v5658_v41 }
 0x69a   : > { %v9690_v52 = vpop.eup %7710 }
 0x69b   : > { %v5564_v13 = vpop.xlane.xlu0 %5563  ;;  %v5742_v31 = vsel %vm5495_vm5, %v9690_v52, 0.0 }
 0x69c   : > { %v9694_v6 = vpop.eup %7712  ;;  %v5614_v55 = vsub.f32 %v9547_v18, %v5564_v13  ;;  %5743 = vadd.xlane.f32.xlu0 %v5742_v31 }
 0x69d   : > { %v5567_v20 = vpop.xlane.xlu1 %5566  ;;  %v5745_v23 = vsel %vm5495_vm5, %v9694_v6, 0.0 }
 0x69e   : > { %v9699_v57 = vpop.eup %7714  ;;  %v5668_v33 = vmul.f32 1.442695, %v5614_v55  ;;  %v5615_v7 = vsub.f32 %v9553_v43, %v5567_v20  ;;  %5746 = vadd.xlane.f32.xlu1 %v5745_v23 }
 0x69f   : > { %v5558_v1 = vpop.xlane.xlu0 %5557  ;;  %v5736_v62 = vsel %vm5495_vm5, %v9699_v57, 0.0 }
 0x6a0   : > { %v9704_v15 = vpop.eup %7716  ;;  %7718 = vpow2.f32 %v5668_v33  ;;  %v5670_v37 = vmul.f32 1.442695, %v5615_v7  ;;  %v5612_v18 = vsub.f32 %v9550_v9, %v5558_v1  ;;  %5737 = vadd.xlane.f32.xlu0 %v5736_v62 }
 0x6a1   : > { %v5561_v40 = vpop.xlane.xlu1 %5560  ;;  %v5739_v63 = vsel %vm5495_vm5, %v9704_v15, 0.0 }
 0x6a2   : > { %7720 = vpow2.f32 %v5670_v37  ;;  %v5664_v58 = vmul.f32 1.442695, %v5612_v18  ;;  %v5613_v43 = vsub.f32 %v9558_v45, %v5561_v40  ;;  %5740 = vadd.xlane.f32.xlu1 %v5739_v63 }
 0x6a4   : > { %7722 = vpow2.f32 %v5664_v58  ;;  %v5666_v47 = vmul.f32 1.442695, %v5613_v43 }
 0x6a6   : > { %7724 = vpow2.f32 %v5666_v47 }
 0x6aa   : > { %v9710_v28 = vpop.eup %7718 }
 0x6ab   : > { %v5576_v60 = vpop.xlane.xlu0 %5575  ;;  %v5754_v34 = vsel %vm5495_vm5, %v9710_v28, 0.0 }
 0x6ac   : > { %v9714_v9 = vpop.eup %7720  ;;  %v5618_v8 = vsub.f32 %v9567_v21, %v5576_v60  ;;  %5755 = vadd.xlane.f32.xlu0 %v5754_v34 }
 0x6ad   : > { %v5579_v0 = vpop.xlane.xlu1 %5578  ;;  %v5757_v22 = vsel %vm5495_vm5, %v9714_v9, 0.0 }
 0x6ae   : > { %v9719_v45 = vpop.eup %7722  ;;  %v5676_v44 = vmul.f32 1.442695, %v5618_v8  ;;  %v5619_v25 = vsub.f32 %v9573_v39, %v5579_v0  ;;  %5758 = vadd.xlane.f32.xlu1 %v5757_v22 }
 0x6af   : > { %v5570_v51 = vpop.xlane.xlu0 %5569  ;;  %v5748_v19 = vsel %vm5495_vm5, %v9719_v45, 0.0 }
 0x6b0   : > { %v9724_v61 = vpop.eup %7724  ;;  %7726 = vpow2.f32 %v5676_v44  ;;  %v5678_v17 = vmul.f32 1.442695, %v5619_v25  ;;  %v5616_v21 = vsub.f32 %v9570_v36, %v5570_v51  ;;  %5749 = vadd.xlane.f32.xlu0 %v5748_v19 }
 0x6b1   : > { %v5573_v11 = vpop.xlane.xlu1 %5572  ;;  %v5751_v54 = vsel %vm5495_vm5, %v9724_v61, 0.0 }
 0x6b2   : > { %7728 = vpow2.f32 %v5678_v17  ;;  %v5672_v29 = vmul.f32 1.442695, %v5616_v21  ;;  %v5617_v39 = vsub.f32 %v9578_v35, %v5573_v11  ;;  %5752 = vadd.xlane.f32.xlu1 %v5751_v54 }
 0x6b4   : > { %7730 = vpow2.f32 %v5672_v29  ;;  %v5674_v2 = vmul.f32 1.442695, %v5617_v39 }
 0x6b6   : > { %7732 = vpow2.f32 %v5674_v2 }
 0x6ba   : > { %v9730_v32 = vpop.eup %7726 }
 0x6bb   : > { %v5766_v41 = vsel %vm5495_vm5, %v9730_v32, 0.0 }
 0x6bc   : > { %v9734_v13 = vpop.eup %7728  ;;  %5767 = vadd.xlane.f32.xlu0 %v5766_v41  ;;  %v5582_v36 = vpop.xlane.xlu0 %5581 }
 0x6bd   : > { %v5620_v31 = vsub.f32 %v9587_v4, %v5582_v36  ;;  %v5769_v55 = vsel %vm5495_vm5, %v9734_v13, 0.0 }
 0x6be   : > { %v9739_v20 = vpop.eup %7730  ;;  %v5585_v35 = vpop.xlane.xlu1 %5584  ;;  %5770 = vadd.xlane.f32.xlu1 %v5769_v55 }
 0x6bf   : > { %v5680_v23 = vmul.f32 1.442695, %v5620_v31  ;;  %v5621_v33 = vsub.f32 %v9593_v56, %v5585_v35  ;;  %v5760_v7 = vsel %vm5495_vm5, %v9739_v20, 0.0 }
 0x6c0   : > { %v9744_v1 = vpop.eup %7732  ;;  %5761 = vadd.xlane.f32.xlu0 %v5760_v7  ;;  %v5588_v62 = vpop.xlane.xlu0 %5587 }
 0x6c1   : > { %7734 = vpow2.f32 %v5680_v23  ;;  %v5682_v37 = vmul.f32 1.442695, %v5621_v33  ;;  %v5622_v4 = vsub.f32 %v9590_v14, %v5588_v62  ;;  %v5763_v18 = vsel %vm5495_vm5, %v9744_v1, 0.0 }
 0x6c2   : > { %v5591_v40 = vpop.xlane.xlu1 %5590  ;;  %5764 = vadd.xlane.f32.xlu1 %v5763_v18 }
 0x6c3   : > { %7736 = vpow2.f32 %v5682_v37  ;;  %v5684_v63 = vmul.f32 1.442695, %v5622_v4  ;;  %v5623_v56 = vsub.f32 %v9598_v38, %v5591_v40 }
 0x6c5   : > { %7738 = vpow2.f32 %v5684_v63  ;;  %v5686_v58 = vmul.f32 1.442695, %v5623_v56 }
 0x6c7   : > { %7740 = vpow2.f32 %v5686_v58 }
 0x6cb   : > { %v9750_v43 = vpop.eup %7734 }
 0x6cc   : > { %v5772_v47 = vsel %vm5495_vm5, %v9750_v43, 0.0 }
 0x6cd   : > { %v9754_v60 = vpop.eup %7736  ;;  %5773 = vadd.xlane.f32.xlu0 %v5772_v47 }
 0x6ce   : > { %v5775_v14 = vsel %vm5495_vm5, %v9754_v60, 0.0 }
 0x6cf   : > { %v9758_v34 = vpop.eup %7738  ;;  %5776 = vadd.xlane.f32.xlu1 %v5775_v14 }
 0x6d0   : > { %v5778_v38 = vsel %vm5495_vm5, %v9758_v34, 0.0 }
 0x6d1   : > { %v9762_v8 = vpop.eup %7740  ;;  %5779 = vadd.xlane.f32.xlu0 %v5778_v38 }
 0x6d2   : > { %v5781_v0 = vsel %vm5495_vm5, %v9762_v8, 0.0 }
 0x6d3   : > { %5782 = vadd.xlane.f32.xlu1 %v5781_v0 }
 0x6e9   : > { %v5696_v22 = vpop.xlane.xlu0 %5695 }
 0x6ea   : > { %7742 = vrcp.f32 %v5696_v22 }
 0x6ed   : > { %v5699_v44 = vpop.xlane.xlu1 %5698  ;;  %v5690_v25 = vpop.xlane.xlu0 %5689 }
 0x6ee   : > { %7744 = vrcp.f32 %v5699_v44 }
 0x6ef   : > { %7746 = vrcp.f32 %v5690_v25 }
 0x6f1   : > { %v5693_v51 = vpop.xlane.xlu1 %5692 }
 0x6f2   : > { %7748 = vrcp.f32 %v5693_v51 }
 0x6f4   : > { %v7743_v19 = vpop.eup %7742 }
 0x6f5   : > { %v5818_v17 = vmul.f32 %v7743_v19, %v9610_v49 }
 0x6f7   : > { %5850 = vst.msk [vmem:[%s9770_s17 + $0x10] sm:$0xff] %vm5495_vm5, %v5818_v17 }
 0x6f8   : > { %v7745_v21 = vpop.eup %7744 }
 0x6f9   : > { %v7747_v11 = vpop.eup %7746  ;;  %v5819_v54 = vmul.f32 %v7745_v21, %v9617_v26  ;;  %v5708_v29 = vpop.xlane.xlu0 %5707 }
 0x6fa   : > { %v5816_v39 = vmul.f32 %v7747_v11, %v9614_v53  ;;  %7750 = vrcp.f32 %v5708_v29 }
 0x6fb   : > { %5851 = vst.msk [vmem:[%s9770_s17 + $0x18] sm:$0xff] %vm5495_vm5, %v5819_v54  ;;  %v5711_v2 = vpop.xlane.xlu1 %5710 }
 0x6fc   : > { %v7749_v41 = vpop.eup %7748  ;;  %5848 = vst.msk [vmem:[%s9770_s17] sm:$0xff] %vm5495_vm5, %v5816_v39  ;;  %7752 = vrcp.f32 %v5711_v2 }
 0x6fd   : > { %v5817_v49 = vmul.f32 %v7749_v41, %v9624_v30  ;;  %v5702_v36 = vpop.xlane.xlu0 %5701 }
 0x6fe   : > { %7754 = vrcp.f32 %v5702_v36 }
 0x6ff   : > { %5849 = vst.msk [vmem:[%s9770_s17 + $0x8] sm:$0xff] %vm5495_vm5, %v5817_v49  ;;  %v5705_v26 = vpop.xlane.xlu1 %5704 }
 0x700   : > { %7756 = vrcp.f32 %v5705_v26 }
 0x704   : > { %v7751_v53 = vpop.eup %7750 }
 0x705   : > { %v5822_v31 = vmul.f32 %v7751_v53, %v9630_v59 }
 0x706   : > { %v7753_v55 = vpop.eup %7752 }
 0x707   : > { %5854 = vst.msk [vmem:[%s9770_s17 + $0x30] sm:$0xff] %vm5495_vm5, %v5822_v31  ;;  %v5823_v35 = vmul.f32 %v7753_v55, %v9634_v3 }
 0x708   : > { %v7755_v23 = vpop.eup %7754 }
 0x709   : > { %5855 = vst.msk [vmem:[%s9770_s17 + $0x38] sm:$0xff] %vm5495_vm5, %v5823_v35  ;;  %v5820_v30 = vmul.f32 %v7755_v23, %v9639_v12  ;;  %v5720_v33 = vpop.xlane.xlu0 %5719 }
 0x70a   : > { %v7757_v7 = vpop.eup %7756  ;;  %7758 = vrcp.f32 %v5720_v33 }
 0x70b   : > { %5852 = vst.msk [vmem:[%s9770_s17 + $0x20] sm:$0xff] %vm5495_vm5, %v5820_v30  ;;  %v5821_v62 = vmul.f32 %v7757_v7, %v9644_v5  ;;  %v5723_v59 = vpop.xlane.xlu1 %5722 }
 0x70c   : > { %7760 = vrcp.f32 %v5723_v59 }
 0x70d   : > { %5853 = vst.msk [vmem:[%s9770_s17 + $0x28] sm:$0xff] %vm5495_vm5, %v5821_v62  ;;  %v5714_v3 = vpop.xlane.xlu0 %5713 }
 0x70e   : > { %7762 = vrcp.f32 %v5714_v3 }
 0x70f   : > { %v5717_v37 = vpop.xlane.xlu1 %5716 }
 0x710   : > { %7764 = vrcp.f32 %v5717_v37 }
 0x714   : > { %v7759_v12 = vpop.eup %7758 }
 0x715   : > { %v5826_v4 = vmul.f32 %v7759_v12, %v9650_v10 }
 0x716   : > { %v7761_v18 = vpop.eup %7760 }
 0x717   : > { %5858 = vst.msk [vmem:[%s9770_s17 + $0x50] sm:$0xff] %vm5495_vm5, %v5826_v4  ;;  %v5827_v40 = vmul.f32 %v7761_v18, %v9654_v42 }
 0x718   : > { %v7763_v63 = vpop.eup %7762 }
 0x719   : > { %5859 = vst.msk [vmem:[%s9770_s17 + $0x58] sm:$0xff] %vm5495_vm5, %v5827_v40  ;;  %v5824_v5 = vmul.f32 %v7763_v63, %v9659_v27  ;;  %v5732_v56 = vpop.xlane.xlu0 %5731 }
 0x71a   : > { %v7765_v58 = vpop.eup %7764  ;;  %7766 = vrcp.f32 %v5732_v56 }
 0x71b   : > { %5856 = vst.msk [vmem:[%s9770_s17 + $0x40] sm:$0xff] %vm5495_vm5, %v5824_v5  ;;  %v5825_v47 = vmul.f32 %v7765_v58, %v9664_v16  ;;  %v5735_v10 = vpop.xlane.xlu1 %5734 }
 0x71c   : > { %7768 = vrcp.f32 %v5735_v10 }
 0x71d   : > { %5857 = vst.msk [vmem:[%s9770_s17 + $0x48] sm:$0xff] %vm5495_vm5, %v5825_v47  ;;  %v5726_v42 = vpop.xlane.xlu0 %5725 }
 0x71e   : > { %7770 = vrcp.f32 %v5726_v42 }
 0x71f   : > { %v5729_v14 = vpop.xlane.xlu1 %5728 }
 0x720   : > { %7772 = vrcp.f32 %v5729_v14 }
 0x724   : > { %v7767_v27 = vpop.eup %7766 }
 0x725   : > { %v5830_v38 = vmul.f32 %v7767_v27, %v9670_v48 }
 0x726   : > { %v7769_v0 = vpop.eup %7768 }
 0x727   : > { %5862 = vst.msk [vmem:[%s9770_s17 + $0x70] sm:$0xff] %vm5495_vm5, %v5830_v38  ;;  %v5831_v22 = vmul.f32 %v7769_v0, %v9674_v50 }
 0x728   : > { %v7771_v44 = vpop.eup %7770 }
 0x729   : > { %5863 = vst.msk [vmem:[%s9770_s17 + $0x78] sm:$0xff] %vm5495_vm5, %v5831_v22  ;;  %v5828_v16 = vmul.f32 %v7771_v44, %v9679_v24  ;;  %v5744_v25 = vpop.xlane.xlu0 %5743 }
 0x72a   : > { %v7773_v51 = vpop.eup %7772  ;;  %7774 = vrcp.f32 %v5744_v25 }
 0x72b   : > { %5860 = vst.msk [vmem:[%s9770_s17 + $0x60] sm:$0xff] %vm5495_vm5, %v5828_v16  ;;  %v5829_v19 = vmul.f32 %v7773_v51, %v9684_v46  ;;  %v5747_v48 = vpop.xlane.xlu1 %5746 }
 0x72c   : > { %7776 = vrcp.f32 %v5747_v48 }
 0x72d   : > { %5861 = vst.msk [vmem:[%s9770_s17 + $0x68] sm:$0xff] %vm5495_vm5, %v5829_v19  ;;  %v5738_v50 = vpop.xlane.xlu0 %5737 }
 0x72e   : > { %7778 = vrcp.f32 %v5738_v50 }
 0x72f   : > { %v5741_v17 = vpop.xlane.xlu1 %5740 }
 0x730   : > { %7780 = vrcp.f32 %v5741_v17 }
 0x734   : > { %v7775_v24 = vpop.eup %7774 }
 0x735   : > { %v5834_v21 = vmul.f32 %v7775_v24, %v9690_v52 }
 0x736   : > { %v7777_v11 = vpop.eup %7776 }
 0x737   : > { %5866 = vst.msk [vmem:[%s9770_s17 + $0x90] sm:$0xff] %vm5495_vm5, %v5834_v21  ;;  %v5835_v54 = vmul.f32 %v7777_v11, %v9694_v6 }
 0x738   : > { %v7779_v29 = vpop.eup %7778 }
 0x739   : > { %5867 = vst.msk [vmem:[%s9770_s17 + $0x98] sm:$0xff] %vm5495_vm5, %v5835_v54  ;;  %v5832_v46 = vmul.f32 %v7779_v29, %v9699_v57  ;;  %v5756_v39 = vpop.xlane.xlu0 %5755 }
 0x73a   : > { %v7781_v2 = vpop.eup %7780  ;;  %7782 = vrcp.f32 %v5756_v39 }
 0x73b   : > { %5864 = vst.msk [vmem:[%s9770_s17 + $0x80] sm:$0xff] %vm5495_vm5, %v5832_v46  ;;  %v5833_v41 = vmul.f32 %v7781_v2, %v9704_v15  ;;  %v5759_v52 = vpop.xlane.xlu1 %5758 }
 0x73c   : > { %7784 = vrcp.f32 %v5759_v52 }
 0x73d   : > { %5865 = vst.msk [vmem:[%s9770_s17 + $0x88] sm:$0xff] %vm5495_vm5, %v5833_v41  ;;  %v5750_v6 = vpop.xlane.xlu0 %5749 }
 0x73e   : > { %7786 = vrcp.f32 %v5750_v6 }
 0x73f   : > { %v5753_v49 = vpop.xlane.xlu1 %5752 }
 0x740   : > { %7788 = vrcp.f32 %v5753_v49 }
 0x744   : > { %v7783_v57 = vpop.eup %7782 }
 0x745   : > { %v5838_v36 = vmul.f32 %v7783_v57, %v9710_v28 }
 0x746   : > { %v7785_v26 = vpop.eup %7784 }
 0x747   : > { %5870 = vst.msk [vmem:[%s9770_s17 + $0xb0] sm:$0xff] %vm5495_vm5, %v5838_v36  ;;  %v5839_v53 = vmul.f32 %v7785_v26, %v9714_v9 }
 0x748   : > { %v7787_v31 = vpop.eup %7786 }
 0x749   : > { %5871 = vst.msk [vmem:[%s9770_s17 + $0xb8] sm:$0xff] %vm5495_vm5, %v5839_v53  ;;  %v5836_v15 = vmul.f32 %v7787_v31, %v9719_v45  ;;  %v5768_v55 = vpop.xlane.xlu0 %5767 }
 0x74a   : > { %v7789_v35 = vpop.eup %7788  ;;  %7790 = vrcp.f32 %v5768_v55 }
 0x74b   : > { %5868 = vst.msk [vmem:[%s9770_s17 + $0xa0] sm:$0xff] %vm5495_vm5, %v5836_v15  ;;  %v5837_v23 = vmul.f32 %v7789_v35, %v9724_v61  ;;  %v5771_v28 = vpop.xlane.xlu1 %5770 }
 0x74c   : > { %7792 = vrcp.f32 %v5771_v28 }
 0x74d   : > { %5869 = vst.msk [vmem:[%s9770_s17 + $0xa8] sm:$0xff] %vm5495_vm5, %v5837_v23  ;;  %v5762_v9 = vpop.xlane.xlu0 %5761 }
 0x74e   : > { %7794 = vrcp.f32 %v5762_v9 }
 0x74f   : > { %v5765_v30 = vpop.xlane.xlu1 %5764 }
 0x750   : > { %7796 = vrcp.f32 %v5765_v30 }
 0x754   : > { %v7791_v45 = vpop.eup %7790 }
 0x755   : > { %v5842_v33 = vmul.f32 %v7791_v45, %v9730_v32 }
 0x756   : > { %v7793_v7 = vpop.eup %7792 }
 0x757   : > { %5874 = vst.msk [vmem:[%s9770_s17 + $0xd0] sm:$0xff] %vm5495_vm5, %v5842_v33  ;;  %v5843_v62 = vmul.f32 %v7793_v7, %v9734_v13 }
 0x758   : > { %v7795_v59 = vpop.eup %7794 }
 0x759   : > { %5875 = vst.msk [vmem:[%s9770_s17 + $0xd8] sm:$0xff] %vm5495_vm5, %v5843_v62  ;;  %v5840_v61 = vmul.f32 %v7795_v59, %v9739_v20 }
 0x75a   : > { %v7797_v3 = vpop.eup %7796  ;;  %v5774_v37 = vpop.xlane.xlu0 %5773 }
 0x75b   : > { %5872 = vst.msk [vmem:[%s9770_s17 + $0xc0] sm:$0xff] %vm5495_vm5, %v5840_v61  ;;  %v5841_v12 = vmul.f32 %v7797_v3, %v9744_v1  ;;  %7798 = vrcp.f32 %v5774_v37 }
 0x75c   : > { %v5777_v32 = vpop.xlane.xlu1 %5776 }
 0x75d   : > { %5873 = vst.msk [vmem:[%s9770_s17 + $0xc8] sm:$0xff] %vm5495_vm5, %v5841_v12  ;;  %7800 = vrcp.f32 %v5777_v32 }
 0x75e   : > { %v5780_v13 = vpop.xlane.xlu0 %5779 }
 0x75f   : > { %7802 = vrcp.f32 %v5780_v13 }
 0x760   : > { %v5783_v4 = vpop.xlane.xlu1 %5782 }
 0x761   : > { %7804 = vrcp.f32 %v5783_v4 }
 0x765   : > { %v7799_v20 = vpop.eup %7798 }
 0x766   : > { %v5844_v18 = vmul.f32 %v7799_v20, %v9750_v43 }
 0x767   : > { %v7801_v40 = vpop.eup %7800 }
 0x768   : > { %5876 = vst.msk [vmem:[%s9770_s17 + $0xe0] sm:$0xff] %vm5495_vm5, %v5844_v18  ;;  %v5845_v63 = vmul.f32 %v7801_v40, %v9754_v60 }
 0x769   : > { %v7803_v1 = vpop.eup %7802 }
 0x76a   : > { %5877 = vst.msk [vmem:[%s9770_s17 + $0xe8] sm:$0xff] %vm5495_vm5, %v5845_v63  ;;  %v5846_v5 = vmul.f32 %v7803_v1, %v9758_v34 }
 0x76b   : > { %v7805_v56 = vpop.eup %7804 }
 0x76c   : > { %5878 = vst.msk [vmem:[%s9770_s17 + $0xf0] sm:$0xff] %vm5495_vm5, %v5846_v5  ;;  %v5847_v58 = vmul.f32 %v7805_v56, %v9762_v8 }
 0x76e   : > { %5879 = vst.msk [vmem:[%s9770_s17 + $0xf8] sm:$0xff] %vm5495_vm5, %v5847_v58 }
 0x76f PF: > { %s19_s30 = sadd.s32 1, %s7822_s30  }
 0x770   : > { %p16_p4 = scmp.ge.s32.totalorder %s19_s30, 4  }
 0x772   :  { %18 = sbr.rel (!%p16_p4) target bundleno = 1 (0x1), region = 86 }

</bundles_post_ra>
